<compile_context>
chip_gen: v7x
topology: tpu7x:2x2x1
jax: 0.10.0
libtpu: 0.0.40
codegen_flags: <defaults>
</compile_context>

<pallas_src>
import functools

import numpy as np
import jax
import jax.numpy as jnp
from jax import lax
from jax.experimental import pallas as pl
from jax.experimental.pallas import tpu as pltpu


def _round_up(x, m):
    return (x + m - 1) // m * m


# ------------------------------ Pallas kernel --------------------------------

def _inception_kernel(x_ref, m_ref, wa_ref, ba_ref, w2_ref, b2_ref, w3_ref,
                      b3_ref, w4_ref, b4_ref, o_ref, p2_ref, p3_ref, *,
                      W, out_1x1, g1, g2, g3, out_3x3, out_5x5, out_pool):
    """One grid step = B packed images, activations laid out as (chan, B*H*W)."""
    L = x_ref.shape[-1]
    bf16 = jnp.bfloat16
    x = x_ref[...]                                     # (Cin, L) f32

    def shift(a, dy, dx):
        # a[:, p] -> a[:, p + dy*W + dx]; out-of-image taps handled by masks
        # (in-bounds taps never cross an image segment of the packed slab).
        off = dy * W + dx
        return a if off == 0 else pltpu.roll(a, (-off) % L, axis=1)

    def tap(a, dy, dx):
        # Zero-filled "same"-padding tap via precomputed multiplicative mask.
        t = (dy + 2) * 5 + (dx + 2)
        return shift(a, dy, dx) * m_ref[t:t + 1, :]

    # --- branch-1 1x1 conv + branch-2/3 1x1 reduces: one fused matmul --------
    a1 = jnp.dot(wa_ref[...], x.astype(bf16), preferred_element_type=jnp.float32)
    a1 = jnp.maximum(a1 + ba_ref[...], 0.0)            # (CA, L) f32
    y1 = a1[0:out_1x1]                                  # (out_1x1, L)
    r2 = a1[g1:g1 + g2]                                 # (g2, L) chan-padded
    r3 = a1[g1 + g2:g1 + g2 + g3]                       # (g3, L) chan-padded

    # --- branch 2: 3x3 "same" conv as a single im2col matmul (bf16 taps) -----
    for dy in range(-1, 2):
        for dx in range(-1, 2):
            t = (dy + 1) * 3 + (dx + 1)
            p2_ref[t * g2:(t + 1) * g2, :] = tap(r2, dy, dx).astype(bf16)
    y2 = jnp.dot(w2_ref[...], p2_ref[...], preferred_element_type=jnp.float32)
    y2 = jnp.maximum(y2 + b2_ref[...], 0.0)             # (out_3x3, L)

    # --- branch 3: 5x5 "same" conv as a single im2col matmul (bf16 taps) -----
    for dy in range(-2, 3):
        for dx in range(-2, 3):
            t = (dy + 2) * 5 + (dx + 2)
            p3_ref[t * g3:(t + 1) * g3, :] = tap(r3, dy, dx).astype(bf16)
    y3 = jnp.dot(w3_ref[...], p3_ref[...], preferred_element_type=jnp.float32)
    y3 = jnp.maximum(y3 + b3_ref[...], 0.0)             # (out_5x5, L)

    # --- branch 4: separable 3x3/s1 maxpool (additive -1e30 halo), 1x1 conv --
    hmax = jnp.maximum(x, jnp.maximum(shift(x, 0, -1) + m_ref[25:26, :],
                                      shift(x, 0, 1) + m_ref[26:27, :]))
    pooled = jnp.maximum(hmax,
                         jnp.maximum(shift(hmax, -1, 0) + m_ref[27:28, :],
                                     shift(hmax, 1, 0) + m_ref[28:29, :]))
    y4 = jnp.dot(w4_ref[...], pooled.astype(bf16),
                 preferred_element_type=jnp.float32)
    y4 = jnp.maximum(y4 + b4_ref[...], 0.0)             # (out_pool, L)

    # --- channel concat: lane-dense (C_total, L) store ------------------------
    c = 0
    o_ref[c:c + out_1x1, :] = y1.astype(o_ref.dtype); c += out_1x1
    o_ref[c:c + out_3x3, :] = y2.astype(o_ref.dtype); c += out_3x3
    o_ref[c:c + out_5x5, :] = y3.astype(o_ref.dtype); c += out_5x5
    o_ref[c:c + out_pool, :] = y4.astype(o_ref.dtype)


# ------------------------------ JAX wrapper -----------------------------------

def _build_masks(B, H, W):
    """Trace-time halo masks for a B-image packed slab.

    Rows 0..24:  multiplicative 5x5 tap masks (1.0 in-bounds / 0.0 outside).
    Rows 25..28: additive pool masks (0.0 in-bounds / -1e30 outside) for
                 dx=-1, dx=+1, dy=-1, dy=+1.  Rows 29..31: padding.
    """
    HW = H * W
    pos = np.arange(B * HW)
    q = pos % HW
    row = q // W
    col = q % W
    m = np.zeros((32, B * HW), np.float32)
    for dy in range(-2, 3):
        for dx in range(-2, 3):
            t = (dy + 2) * 5 + (dx + 2)
            ok = ((row + dy >= 0) & (row + dy < H) &
                  (col + dx >= 0) & (col + dx < W))
            m[t] = ok.astype(np.float32)
    NEG = np.float32(-1e30)
    m[25] = np.where(col - 1 >= 0, 0.0, NEG)
    m[26] = np.where(col + 1 < W, 0.0, NEG)
    m[27] = np.where(row - 1 >= 0, 0.0, NEG)
    m[28] = np.where(row + 1 < H, 0.0, NEG)
    return jnp.asarray(m)


def inception_block(x_nchw, params):
    """Forward pass matching the PyTorch InceptionBlock. Input/output NCHW."""
    N, Cin, H, W = x_nchw.shape
    HW = H * W
    f32, bf16 = jnp.float32, jnp.bfloat16

    out_1x1 = params["b1_w"].shape[0]
    red_3x3 = params["b2_w1"].shape[0]
    out_3x3 = params["b2_w2"].shape[0]
    red_5x5 = params["b3_w1"].shape[0]
    out_5x5 = params["b3_w2"].shape[0]
    out_pool = params["b4_w"].shape[0]
    C_total = out_1x1 + out_3x3 + out_5x5 + out_pool

    # --- image packing along the lane axis: B images per grid step -----------
    B = max(1, min(N, max(1, 2048 // HW)))     # target ~2K lanes per slab
    n_steps = -(-N // B)
    Npad = n_steps * B
    L = B * HW

    # Channel groups padded to 16 so every f32 slice of the fused-1x1 result
    # and every bf16 im2col scratch store stays tile-aligned.
    g1 = _round_up(out_1x1, 16)
    g2 = _round_up(red_3x3, 16)
    g3 = _round_up(red_5x5, 16)
    CA = g1 + g2 + g3

    def w1x1(w):                       # (Cout, Cin, 1, 1) -> (Cout, Cin) bf16
        return w.reshape(w.shape[0], w.shape[1]).astype(bf16)

    # Merge the three 1x1 convs over x into one bf16 weight matrix (zero rows
    # in the padded channel slots -> padded r2/r3 channels are exactly 0).
    wa = jnp.zeros((CA, Cin), bf16)
    wa = wa.at[0:out_1x1].set(w1x1(params["b1_w"]))
    wa = wa.at[g1:g1 + red_3x3].set(w1x1(params["b2_w1"]))
    wa = wa.at[g1 + g2:g1 + g2 + red_5x5].set(w1x1(params["b3_w1"]))
    ba = jnp.zeros((CA, 1), f32)
    ba = ba.at[0:out_1x1, 0].set(params["b1_b"])
    ba = ba.at[g1:g1 + red_3x3, 0].set(params["b2_b1"])
    ba = ba.at[g1 + g2:g1 + g2 + red_5x5, 0].set(params["b3_b1"])

    def im2col_w(w, gpad):             # (Cout, Cin, K, K) -> (Cout, K*K*gpad)
        cout, cin, k, _ = w.shape
        wt = jnp.transpose(w, (0, 2, 3, 1)).astype(f32)   # (Cout, K, K, Cin)
        wt = jnp.pad(wt, ((0, 0), (0, 0), (0, 0), (0, gpad - cin)))
        return wt.reshape(cout, k * k * gpad).astype(bf16)

    w2 = im2col_w(params["b2_w2"], g2)          # (out_3x3, 9*g2)   bf16
    b2 = params["b2_b2"].reshape(out_3x3, 1).astype(f32)
    w3 = im2col_w(params["b3_w2"], g3)          # (out_5x5, 25*g3)  bf16
    b3 = params["b3_b2"].reshape(out_5x5, 1).astype(f32)
    w4 = w1x1(params["b4_w"])                   # (out_pool, Cin)   bf16
    b4 = params["b4_b"].reshape(out_pool, 1).astype(f32)

    masks = _build_masks(B, H, W)               # (32, L) f32, resident

    # Pack B images per slab: (Npad, Cin, HW) -> (n_steps, Cin, B*HW).
    xf = x_nchw.reshape(N, Cin, HW)
    if Npad != N:
        xf = jnp.pad(xf, ((0, Npad - N), (0, 0), (0, 0)))
    xp = xf.reshape(n_steps, B, Cin, HW).transpose(0, 2, 1, 3) \
           .reshape(n_steps, Cin, L)

    kernel = functools.partial(
        _inception_kernel, W=W, out_1x1=out_1x1, g1=g1, g2=g2, g3=g3,
        out_3x3=out_3x3, out_5x5=out_5x5, out_pool=out_pool)

    # VMEM budget: double-buffered streaming blocks + resident weights/masks +
    # both im2col scratches; cap keeps the request valid on v7x's 64 MiB VMEM.
    itemsize = jnp.dtype(x_nchw.dtype).itemsize
    need = (2 * Cin * L * itemsize + 2 * C_total * L * itemsize      # x, out
            + 32 * L * 4                                             # masks
            + (CA * Cin + out_3x3 * 9 * g2 + out_5x5 * 25 * g3
               + out_pool * Cin) * 2 + CA * 4 * 2                    # weights
            + (9 * g2 + 25 * g3) * L * 2)                            # scratch
    vmem_limit = int(min(40 * 2**20, max(3 * need, 16 * 2**20)))

    # Real two-TensorCore split on v7x when there is >1 slab (plain "parallel"
    # vs "arbitrary" does not change codegen); single-slab case stays simple.
    core_parallel = getattr(pltpu, "CORE_PARALLEL", "parallel")
    dim_sem = (core_parallel,) if n_steps >= 2 else ("arbitrary",)

    flops = 2 * Npad * HW * (CA * Cin + out_3x3 * 9 * g2
                             + out_5x5 * 25 * g3 + out_pool * Cin)
    bytes_accessed = (Npad * Cin * HW + Npad * C_total * HW) * itemsize

    out = pl.pallas_call(
        kernel,
        out_shape=jax.ShapeDtypeStruct((n_steps, C_total, L), x_nchw.dtype),
        grid_spec=pltpu.PrefetchScalarGridSpec(
            num_scalar_prefetch=0,
            grid=(n_steps,),
            in_specs=[
                pl.BlockSpec((None, Cin, L), lambda s: (s, 0, 0)),    # x slab
                pl.BlockSpec((32, L), lambda s: (0, 0)),              # masks
                pl.BlockSpec((CA, Cin), lambda s: (0, 0)),            # wa
                pl.BlockSpec((CA, 1), lambda s: (0, 0)),              # ba
                pl.BlockSpec((out_3x3, 9 * g2), lambda s: (0, 0)),    # w2
                pl.BlockSpec((out_3x3, 1), lambda s: (0, 0)),         # b2
                pl.BlockSpec((out_5x5, 25 * g3), lambda s: (0, 0)),   # w3
                pl.BlockSpec((out_5x5, 1), lambda s: (0, 0)),         # b3
                pl.BlockSpec((out_pool, Cin), lambda s: (0, 0)),      # w4
                pl.BlockSpec((out_pool, 1), lambda s: (0, 0)),        # b4
            ],
            out_specs=pl.BlockSpec((None, C_total, L), lambda s: (s, 0, 0)),
            scratch_shapes=[
                pltpu.VMEM((9 * g2, L), bf16),     # 3x3 im2col patches
                pltpu.VMEM((25 * g3, L), bf16),    # 5x5 im2col patches
            ],
        ),
        compiler_params=pltpu.CompilerParams(
            dimension_semantics=dim_sem,
            vmem_limit_bytes=vmem_limit),
        cost_estimate=pl.CostEstimate(
            flops=flops, transcendentals=0, bytes_accessed=bytes_accessed),
    )(xp, masks, wa, ba, w2, b2, w3, b3, w4, b4)

    # Unpack: (n_steps, C_total, B*HW) -> (N, C_total, H, W).
    out = out.reshape(n_steps, C_total, B, HW).transpose(0, 2, 1, 3)
    return out.reshape(Npad, C_total, H, W)[:N]


# ------------------------------ parameters ------------------------------------

def init_inception_params(key, in_channels, out_1x1, red_3x3, out_3x3,
                          red_5x5, out_5x5, out_1x1pool):
    """PyTorch-layout params: conv weights (Cout, Cin, K, K), biases (Cout,)."""
    keys = jax.random.split(key, 12)
    s = 0.1

    def w(k, co, ci, ksz):
        return jax.random.normal(k, (co, ci, ksz, ksz), jnp.float32) * s

    def b(k, co):
        return jax.random.normal(k, (co,), jnp.float32) * s

    return {
        "b1_w": w(keys[0], out_1x1, in_channels, 1), "b1_b": b(keys[1], out_1x1),
        "b2_w1": w(keys[2], red_3x3, in_channels, 1), "b2_b1": b(keys[3], red_3x3),
        "b2_w2": w(keys[4], out_3x3, red_3x3, 3), "b2_b2": b(keys[5], out_3x3),
        "b3_w1": w(keys[6], red_5x5, in_channels, 1), "b3_b1": b(keys[7], red_5x5),
        "b3_w2": w(keys[8], out_5x5, red_5x5, 5), "b3_b2": b(keys[9], out_5x5),
        "b4_w": w(keys[10], out_1x1pool, in_channels, 1),
        "b4_b": b(keys[11], out_1x1pool),
    }


# ------------------------------ JAX reference ----------------------------------

def _ref_convblock(x, w, b, pad):
    y = lax.conv_general_dilated(
        x, w, window_strides=(1, 1), padding=[(pad, pad), (pad, pad)],
        dimension_numbers=("NCHW", "OIHW", "NCHW"),
        precision=lax.Precision.HIGHEST)
    return jnp.maximum(y + b.reshape(1, -1, 1, 1), 0.0)


def inception_block_ref(x, params):
    y1 = _ref_convblock(x, params["b1_w"], params["b1_b"], 0)
    y2 = _ref_convblock(_ref_convblock(x, params["b2_w1"], params["b2_b1"], 0),
                        params["b2_w2"], params["b2_b2"], 1)
    y3 = _ref_convblock(_ref_convblock(x, params["b3_w1"], params["b3_b1"], 0),
                        params["b3_w2"], params["b3_b2"], 2)
    pooled = lax.reduce_window(x, -jnp.inf, lax.max, (1, 1, 3, 3), (1, 1, 1, 1),
                               [(0, 0), (0, 0), (1, 1), (1, 1)])
    y4 = _ref_convblock(pooled, params["b4_w"], params["b4_b"], 0)
    return jnp.concatenate([y1, y2, y3, y4], axis=1)


# --------------------------------- main ----------------------------------------

if __name__ == "__main__":
    key = jax.random.PRNGKey(0)
    kx, kp = jax.random.split(key)

    in_channels = 4
    out_1x1, red_3x3, out_3x3, red_5x5, out_5x5, out_1x1pool = 8, 4, 8, 4, 8, 8

    x = jax.random.normal(kx, (2, in_channels, 16, 16), jnp.float32)
    params = init_inception_params(kp, in_channels, out_1x1, red_3x3, out_3x3,
                                   red_5x5, out_5x5, out_1x1pool)

    out = jax.block_until_ready(jax.jit(inception_block)(x, params))

    expected_c = out_1x1 + out_3x3 + out_5x5 + out_1x1pool
    assert out.shape == (2, expected_c, 16, 16), out.shape

    ref = jax.block_until_ready(inception_block_ref(x, params))
    max_err = float(jnp.max(jnp.abs(out - ref)))
    # bf16 MXU operands with f32 accumulation -> looser tolerance than pure f32.
    assert jnp.allclose(out, ref, rtol=2e-2, atol=2e-2), max_err

    print("KERNEL_OK")
</pallas_src>

<mosaic_0001>
module attributes {stable_mosaic.version = 11 : i64} {
  func.func @_inception_kernel(%arg0: i32, %arg1: memref<1x4x512xf32, #tpu.memory_space<vmem>>, %arg2: memref<32x512xf32, #tpu.memory_space<vmem>>, %arg3: memref<48x4xbf16, #tpu.memory_space<vmem>>, %arg4: memref<48x1xf32, #tpu.memory_space<vmem>>, %arg5: memref<8x144xbf16, #tpu.memory_space<vmem>>, %arg6: memref<8x1xf32, #tpu.memory_space<vmem>>, %arg7: memref<8x400xbf16, #tpu.memory_space<vmem>>, %arg8: memref<8x1xf32, #tpu.memory_space<vmem>>, %arg9: memref<8x4xbf16, #tpu.memory_space<vmem>>, %arg10: memref<8x1xf32, #tpu.memory_space<vmem>>, %arg11: memref<1x32x512xf32, #tpu.memory_space<vmem>>, %arg12: memref<144x512xbf16, #tpu.memory_space<vmem>>, %arg13: memref<400x512xbf16, #tpu.memory_space<vmem>>) attributes {dimension_semantics = [#tpu.dimension_semantics<arbitrary>], iteration_bounds = array<i64: 1>, scalar_prefetch = 0 : i64, scratch_operands = 2 : i64, tpu.core_type = #tpu.core_type<tc>, window_params = [{transform_indices = @transform_0, window_bounds = array<i64: 1, 4, 512>}, {pipeline_mode = #tpu.pipeline_mode<synchronous>, transform_indices = @transform_1, window_bounds = array<i64: 32, 512>}, {pipeline_mode = #tpu.pipeline_mode<synchronous>, transform_indices = @transform_2, window_bounds = array<i64: 48, 4>}, {pipeline_mode = #tpu.pipeline_mode<synchronous>, transform_indices = @transform_3, window_bounds = array<i64: 48, 1>}, {pipeline_mode = #tpu.pipeline_mode<synchronous>, transform_indices = @transform_4, window_bounds = array<i64: 8, 144>}, {pipeline_mode = #tpu.pipeline_mode<synchronous>, transform_indices = @transform_5, window_bounds = array<i64: 8, 1>}, {pipeline_mode = #tpu.pipeline_mode<synchronous>, transform_indices = @transform_6, window_bounds = array<i64: 8, 400>}, {pipeline_mode = #tpu.pipeline_mode<synchronous>, transform_indices = @transform_7, window_bounds = array<i64: 8, 1>}, {pipeline_mode = #tpu.pipeline_mode<synchronous>, transform_indices = @transform_8, window_bounds = array<i64: 8, 4>}, {pipeline_mode = #tpu.pipeline_mode<synchronous>, transform_indices = @transform_9, window_bounds = array<i64: 8, 1>}, {transform_indices = @transform_10, window_bounds = array<i64: 1, 32, 512>}]} {
    %c0 = arith.constant 0 : index
    %c0_0 = arith.constant 0 : index
    %c0_1 = arith.constant 0 : index
    %0 = vector.load %arg1[%c0, %c0_0, %c0_1] : memref<1x4x512xf32, #tpu.memory_space<vmem>>, vector<1x4x512xf32>
    %1 = vector.shape_cast %0 : vector<1x4x512xf32> to vector<4x512xf32>
    %c0_2 = arith.constant 0 : index
    %c0_3 = arith.constant 0 : index
    %2 = vector.load %arg3[%c0_2, %c0_3] : memref<48x4xbf16, #tpu.memory_space<vmem>>, vector<48x4xbf16>
    %3 = arith.truncf %1 : vector<4x512xf32> to vector<4x512xbf16>
    %cst = arith.constant dense<0.000000e+00> : vector<48x512xf32>
    %4 = tpu.matmul %2, %3, %cst {dimension_numbers = #tpu.dot_dimension_numbers<[1], [0], [0], [1], [0, 0, 1, 1], [], []>} : vector<48x4xbf16>, vector<4x512xbf16>, vector<48x512xf32> -> vector<48x512xf32>
    %c0_4 = arith.constant 0 : index
    %c0_5 = arith.constant 0 : index
    %5 = vector.load %arg4[%c0_4, %c0_5] : memref<48x1xf32, #tpu.memory_space<vmem>>, vector<48x1xf32>
    %6 = vector.broadcast %5 : vector<48x1xf32> to vector<48x512xf32>
    %7 = arith.addf %4, %6 : vector<48x512xf32>
    %cst_6 = arith.constant 0.000000e+00 : f32
    %8 = vector.broadcast %cst_6 : f32 to vector<48x512xf32>
    %9 = arith.maximumf %7, %8 : vector<48x512xf32>
    %10 = vector.extract_strided_slice %9 {offsets = [0, 0], sizes = [8, 512], strides = [1, 1]} : vector<48x512xf32> to vector<8x512xf32>
    %11 = vector.extract_strided_slice %9 {offsets = [16, 0], sizes = [16, 512], strides = [1, 1]} : vector<48x512xf32> to vector<16x512xf32>
    %12 = vector.extract_strided_slice %9 {offsets = [32, 0], sizes = [16, 512], strides = [1, 1]} : vector<48x512xf32> to vector<16x512xf32>
    %c17_i32 = arith.constant 17 : i32
    %13 = tpu.dynamic_rotate %11 by %c17_i32 dim 1 : vector<16x512xf32>, i32 -> vector<16x512xf32>
    %c6 = arith.constant 6 : index
    %c0_7 = arith.constant 0 : index
    %14 = vector.load %arg2[%c6, %c0_7] : memref<32x512xf32, #tpu.memory_space<vmem>>, vector<1x512xf32>
    %15 = vector.broadcast %14 : vector<1x512xf32> to vector<16x512xf32>
    %16 = arith.mulf %13, %15 : vector<16x512xf32>
    %17 = arith.truncf %16 : vector<16x512xf32> to vector<16x512xbf16>
    %c0_8 = arith.constant 0 : index
    %c0_9 = arith.constant 0 : index
    %18 = vector.load %arg12[%c0_8, %c0_9] : memref<144x512xbf16, #tpu.memory_space<vmem>>, vector<16x512xbf16>
    tpu.vector_store %arg12[%c0_8, %c0_9], %17 {strides = array<i32>} : memref<144x512xbf16, #tpu.memory_space<vmem>>, vector<16x512xbf16>,
    %c16_i32 = arith.constant 16 : i32
    %19 = tpu.dynamic_rotate %11 by %c16_i32 dim 1 : vector<16x512xf32>, i32 -> vector<16x512xf32>
    %c7 = arith.constant 7 : index
    %c0_10 = arith.constant 0 : index
    %20 = vector.load %arg2[%c7, %c0_10] : memref<32x512xf32, #tpu.memory_space<vmem>>, vector<1x512xf32>
    %21 = vector.broadcast %20 : vector<1x512xf32> to vector<16x512xf32>
    %22 = arith.mulf %19, %21 : vector<16x512xf32>
    %23 = arith.truncf %22 : vector<16x512xf32> to vector<16x512xbf16>
    %c16 = arith.constant 16 : index
    %c0_11 = arith.constant 0 : index
    %24 = vector.load %arg12[%c16, %c0_11] : memref<144x512xbf16, #tpu.memory_space<vmem>>, vector<16x512xbf16>
    tpu.vector_store %arg12[%c16, %c0_11], %23 {strides = array<i32>} : memref<144x512xbf16, #tpu.memory_space<vmem>>, vector<16x512xbf16>,
    %c15_i32 = arith.constant 15 : i32
    %25 = tpu.dynamic_rotate %11 by %c15_i32 dim 1 : vector<16x512xf32>, i32 -> vector<16x512xf32>
    %c8 = arith.constant 8 : index
    %c0_12 = arith.constant 0 : index
    %26 = vector.load %arg2[%c8, %c0_12] : memref<32x512xf32, #tpu.memory_space<vmem>>, vector<1x512xf32>
    %27 = vector.broadcast %26 : vector<1x512xf32> to vector<16x512xf32>
    %28 = arith.mulf %25, %27 : vector<16x512xf32>
    %29 = arith.truncf %28 : vector<16x512xf32> to vector<16x512xbf16>
    %c32 = arith.constant 32 : index
    %c0_13 = arith.constant 0 : index
    %30 = vector.load %arg12[%c32, %c0_13] : memref<144x512xbf16, #tpu.memory_space<vmem>>, vector<16x512xbf16>
    tpu.vector_store %arg12[%c32, %c0_13], %29 {strides = array<i32>} : memref<144x512xbf16, #tpu.memory_space<vmem>>, vector<16x512xbf16>,
    %c1_i32 = arith.constant 1 : i32
    %31 = tpu.dynamic_rotate %11 by %c1_i32 dim 1 : vector<16x512xf32>, i32 -> vector<16x512xf32>
    %c11 = arith.constant 11 : index
    %c0_14 = arith.constant 0 : index
    %32 = vector.load %arg2[%c11, %c0_14] : memref<32x512xf32, #tpu.memory_space<vmem>>, vector<1x512xf32>
    %33 = vector.broadcast %32 : vector<1x512xf32> to vector<16x512xf32>
    %34 = arith.mulf %31, %33 : vector<16x512xf32>
    %35 = arith.truncf %34 : vector<16x512xf32> to vector<16x512xbf16>
    %c48 = arith.constant 48 : index
    %c0_15 = arith.constant 0 : index
    %36 = vector.load %arg12[%c48, %c0_15] : memref<144x512xbf16, #tpu.memory_space<vmem>>, vector<16x512xbf16>
    tpu.vector_store %arg12[%c48, %c0_15], %35 {strides = array<i32>} : memref<144x512xbf16, #tpu.memory_space<vmem>>, vector<16x512xbf16>,
    %c12 = arith.constant 12 : index
    %c0_16 = arith.constant 0 : index
    %37 = vector.load %arg2[%c12, %c0_16] : memref<32x512xf32, #tpu.memory_space<vmem>>, vector<1x512xf32>
    %38 = vector.broadcast %37 : vector<1x512xf32> to vector<16x512xf32>
    %39 = arith.mulf %11, %38 : vector<16x512xf32>
    %40 = arith.truncf %39 : vector<16x512xf32> to vector<16x512xbf16>
    %c64 = arith.constant 64 : index
    %c0_17 = arith.constant 0 : index
    %41 = vector.load %arg12[%c64, %c0_17] : memref<144x512xbf16, #tpu.memory_space<vmem>>, vector<16x512xbf16>
    tpu.vector_store %arg12[%c64, %c0_17], %40 {strides = array<i32>} : memref<144x512xbf16, #tpu.memory_space<vmem>>, vector<16x512xbf16>,
    %c511_i32 = arith.constant 511 : i32
    %42 = tpu.dynamic_rotate %11 by %c511_i32 dim 1 : vector<16x512xf32>, i32 -> vector<16x512xf32>
    %c13 = arith.constant 13 : index
    %c0_18 = arith.constant 0 : index
    %43 = vector.load %arg2[%c13, %c0_18] : memref<32x512xf32, #tpu.memory_space<vmem>>, vector<1x512xf32>
    %44 = vector.broadcast %43 : vector<1x512xf32> to vector<16x512xf32>
    %45 = arith.mulf %42, %44 : vector<16x512xf32>
    %46 = arith.truncf %45 : vector<16x512xf32> to vector<16x512xbf16>
    %c80 = arith.constant 80 : index
    %c0_19 = arith.constant 0 : index
    %47 = vector.load %arg12[%c80, %c0_19] : memref<144x512xbf16, #tpu.memory_space<vmem>>, vector<16x512xbf16>
    tpu.vector_store %arg12[%c80, %c0_19], %46 {strides = array<i32>} : memref<144x512xbf16, #tpu.memory_space<vmem>>, vector<16x512xbf16>,
    %c497_i32 = arith.constant 497 : i32
    %48 = tpu.dynamic_rotate %11 by %c497_i32 dim 1 : vector<16x512xf32>, i32 -> vector<16x512xf32>
    %c16_20 = arith.constant 16 : index
    %c0_21 = arith.constant 0 : index
    %49 = vector.load %arg2[%c16_20, %c0_21] : memref<32x512xf32, #tpu.memory_space<vmem>>, vector<1x512xf32>
    %50 = vector.broadcast %49 : vector<1x512xf32> to vector<16x512xf32>
    %51 = arith.mulf %48, %50 : vector<16x512xf32>
    %52 = arith.truncf %51 : vector<16x512xf32> to vector<16x512xbf16>
    %c96 = arith.constant 96 : index
    %c0_22 = arith.constant 0 : index
    %53 = vector.load %arg12[%c96, %c0_22] : memref<144x512xbf16, #tpu.memory_space<vmem>>, vector<16x512xbf16>
    tpu.vector_store %arg12[%c96, %c0_22], %52 {strides = array<i32>} : memref<144x512xbf16, #tpu.memory_space<vmem>>, vector<16x512xbf16>,
    %c496_i32 = arith.constant 496 : i32
    %54 = tpu.dynamic_rotate %11 by %c496_i32 dim 1 : vector<16x512xf32>, i32 -> vector<16x512xf32>
    %c17 = arith.constant 17 : index
    %c0_23 = arith.constant 0 : index
    %55 = vector.load %arg2[%c17, %c0_23] : memref<32x512xf32, #tpu.memory_space<vmem>>, vector<1x512xf32>
    %56 = vector.broadcast %55 : vector<1x512xf32> to vector<16x512xf32>
    %57 = arith.mulf %54, %56 : vector<16x512xf32>
    %58 = arith.truncf %57 : vector<16x512xf32> to vector<16x512xbf16>
    %c112 = arith.constant 112 : index
    %c0_24 = arith.constant 0 : index
    %59 = vector.load %arg12[%c112, %c0_24] : memref<144x512xbf16, #tpu.memory_space<vmem>>, vector<16x512xbf16>
    tpu.vector_store %arg12[%c112, %c0_24], %58 {strides = array<i32>} : memref<144x512xbf16, #tpu.memory_space<vmem>>, vector<16x512xbf16>,
    %c495_i32 = arith.constant 495 : i32
    %60 = tpu.dynamic_rotate %11 by %c495_i32 dim 1 : vector<16x512xf32>, i32 -> vector<16x512xf32>
    %c18 = arith.constant 18 : index
    %c0_25 = arith.constant 0 : index
    %61 = vector.load %arg2[%c18, %c0_25] : memref<32x512xf32, #tpu.memory_space<vmem>>, vector<1x512xf32>
    %62 = vector.broadcast %61 : vector<1x512xf32> to vector<16x512xf32>
    %63 = arith.mulf %60, %62 : vector<16x512xf32>
    %64 = arith.truncf %63 : vector<16x512xf32> to vector<16x512xbf16>
    %c128 = arith.constant 128 : index
    %c0_26 = arith.constant 0 : index
    %65 = vector.load %arg12[%c128, %c0_26] : memref<144x512xbf16, #tpu.memory_space<vmem>>, vector<16x512xbf16>
    tpu.vector_store %arg12[%c128, %c0_26], %64 {strides = array<i32>} : memref<144x512xbf16, #tpu.memory_space<vmem>>, vector<16x512xbf16>,
    %c0_27 = arith.constant 0 : index
    %c0_28 = arith.constant 0 : index
    %66 = vector.load %arg5[%c0_27, %c0_28] : memref<8x144xbf16, #tpu.memory_space<vmem>>, vector<8x144xbf16>
    %c0_29 = arith.constant 0 : index
    %c0_30 = arith.constant 0 : index
    %67 = vector.load %arg12[%c0_29, %c0_30] : memref<144x512xbf16, #tpu.memory_space<vmem>>, vector<144x512xbf16>
    %cst_31 = arith.constant dense<0.000000e+00> : vector<8x512xf32>
    %68 = tpu.matmul %66, %67, %cst_31 {dimension_numbers = #tpu.dot_dimension_numbers<[1], [0], [0], [1], [0, 0, 1, 1], [], []>} : vector<8x144xbf16>, vector<144x512xbf16>, vector<8x512xf32> -> vector<8x512xf32>
    %c0_32 = arith.constant 0 : index
    %c0_33 = arith.constant 0 : index
    %69 = vector.load %arg6[%c0_32, %c0_33] : memref<8x1xf32, #tpu.memory_space<vmem>>, vector<8x1xf32>
    %70 = vector.broadcast %69 : vector<8x1xf32> to vector<8x512xf32>
    %71 = arith.addf %68, %70 : vector<8x512xf32>
    %cst_34 = arith.constant 0.000000e+00 : f32
    %72 = vector.broadcast %cst_34 : f32 to vector<8x512xf32>
    %73 = arith.maximumf %71, %72 : vector<8x512xf32>
    %c34_i32 = arith.constant 34 : i32
    %74 = tpu.dynamic_rotate %12 by %c34_i32 dim 1 : vector<16x512xf32>, i32 -> vector<16x512xf32>
    %c0_35 = arith.constant 0 : index
    %c0_36 = arith.constant 0 : index
    %75 = vector.load %arg2[%c0_35, %c0_36] : memref<32x512xf32, #tpu.memory_space<vmem>>, vector<1x512xf32>
    %76 = vector.broadcast %75 : vector<1x512xf32> to vector<16x512xf32>
    %77 = arith.mulf %74, %76 : vector<16x512xf32>
    %78 = arith.truncf %77 : vector<16x512xf32> to vector<16x512xbf16>
    %c0_37 = arith.constant 0 : index
    %c0_38 = arith.constant 0 : index
    %79 = vector.load %arg13[%c0_37, %c0_38] : memref<400x512xbf16, #tpu.memory_space<vmem>>, vector<16x512xbf16>
    tpu.vector_store %arg13[%c0_37, %c0_38], %78 {strides = array<i32>} : memref<400x512xbf16, #tpu.memory_space<vmem>>, vector<16x512xbf16>,
    %c33_i32 = arith.constant 33 : i32
    %80 = tpu.dynamic_rotate %12 by %c33_i32 dim 1 : vector<16x512xf32>, i32 -> vector<16x512xf32>
    %c1 = arith.constant 1 : index
    %c0_39 = arith.constant 0 : index
    %81 = vector.load %arg2[%c1, %c0_39] : memref<32x512xf32, #tpu.memory_space<vmem>>, vector<1x512xf32>
    %82 = vector.broadcast %81 : vector<1x512xf32> to vector<16x512xf32>
    %83 = arith.mulf %80, %82 : vector<16x512xf32>
    %84 = arith.truncf %83 : vector<16x512xf32> to vector<16x512xbf16>
    %c16_40 = arith.constant 16 : index
    %c0_41 = arith.constant 0 : index
    %85 = vector.load %arg13[%c16_40, %c0_41] : memref<400x512xbf16, #tpu.memory_space<vmem>>, vector<16x512xbf16>
    tpu.vector_store %arg13[%c16_40, %c0_41], %84 {strides = array<i32>} : memref<400x512xbf16, #tpu.memory_space<vmem>>, vector<16x512xbf16>,
    %c32_i32 = arith.constant 32 : i32
    %86 = tpu.dynamic_rotate %12 by %c32_i32 dim 1 : vector<16x512xf32>, i32 -> vector<16x512xf32>
    %c2 = arith.constant 2 : index
    %c0_42 = arith.constant 0 : index
    %87 = vector.load %arg2[%c2, %c0_42] : memref<32x512xf32, #tpu.memory_space<vmem>>, vector<1x512xf32>
    %88 = vector.broadcast %87 : vector<1x512xf32> to vector<16x512xf32>
    %89 = arith.mulf %86, %88 : vector<16x512xf32>
    %90 = arith.truncf %89 : vector<16x512xf32> to vector<16x512xbf16>
    %c32_43 = arith.constant 32 : index
    %c0_44 = arith.constant 0 : index
    %91 = vector.load %arg13[%c32_43, %c0_44] : memref<400x512xbf16, #tpu.memory_space<vmem>>, vector<16x512xbf16>
    tpu.vector_store %arg13[%c32_43, %c0_44], %90 {strides = array<i32>} : memref<400x512xbf16, #tpu.memory_space<vmem>>, vector<16x512xbf16>,
    %c31_i32 = arith.constant 31 : i32
    %92 = tpu.dynamic_rotate %12 by %c31_i32 dim 1 : vector<16x512xf32>, i32 -> vector<16x512xf32>
    %c3 = arith.constant 3 : index
    %c0_45 = arith.constant 0 : index
    %93 = vector.load %arg2[%c3, %c0_45] : memref<32x512xf32, #tpu.memory_space<vmem>>, vector<1x512xf32>
    %94 = vector.broadcast %93 : vector<1x512xf32> to vector<16x512xf32>
    %95 = arith.mulf %92, %94 : vector<16x512xf32>
    %96 = arith.truncf %95 : vector<16x512xf32> to vector<16x512xbf16>
    %c48_46 = arith.constant 48 : index
    %c0_47 = arith.constant 0 : index
    %97 = vector.load %arg13[%c48_46, %c0_47] : memref<400x512xbf16, #tpu.memory_space<vmem>>, vector<16x512xbf16>
    tpu.vector_store %arg13[%c48_46, %c0_47], %96 {strides = array<i32>} : memref<400x512xbf16, #tpu.memory_space<vmem>>, vector<16x512xbf16>,
    %c30_i32 = arith.constant 30 : i32
    %98 = tpu.dynamic_rotate %12 by %c30_i32 dim 1 : vector<16x512xf32>, i32 -> vector<16x512xf32>
    %c4 = arith.constant 4 : index
    %c0_48 = arith.constant 0 : index
    %99 = vector.load %arg2[%c4, %c0_48] : memref<32x512xf32, #tpu.memory_space<vmem>>, vector<1x512xf32>
    %100 = vector.broadcast %99 : vector<1x512xf32> to vector<16x512xf32>
    %101 = arith.mulf %98, %100 : vector<16x512xf32>
    %102 = arith.truncf %101 : vector<16x512xf32> to vector<16x512xbf16>
    %c64_49 = arith.constant 64 : index
    %c0_50 = arith.constant 0 : index
    %103 = vector.load %arg13[%c64_49, %c0_50] : memref<400x512xbf16, #tpu.memory_space<vmem>>, vector<16x512xbf16>
    tpu.vector_store %arg13[%c64_49, %c0_50], %102 {strides = array<i32>} : memref<400x512xbf16, #tpu.memory_space<vmem>>, vector<16x512xbf16>,
    %c18_i32 = arith.constant 18 : i32
    %104 = tpu.dynamic_rotate %12 by %c18_i32 dim 1 : vector<16x512xf32>, i32 -> vector<16x512xf32>
    %c5 = arith.constant 5 : index
    %c0_51 = arith.constant 0 : index
    %105 = vector.load %arg2[%c5, %c0_51] : memref<32x512xf32, #tpu.memory_space<vmem>>, vector<1x512xf32>
    %106 = vector.broadcast %105 : vector<1x512xf32> to vector<16x512xf32>
    %107 = arith.mulf %104, %106 : vector<16x512xf32>
    %108 = arith.truncf %107 : vector<16x512xf32> to vector<16x512xbf16>
    %c80_52 = arith.constant 80 : index
    %c0_53 = arith.constant 0 : index
    %109 = vector.load %arg13[%c80_52, %c0_53] : memref<400x512xbf16, #tpu.memory_space<vmem>>, vector<16x512xbf16>
    tpu.vector_store %arg13[%c80_52, %c0_53], %108 {strides = array<i32>} : memref<400x512xbf16, #tpu.memory_space<vmem>>, vector<16x512xbf16>,
    %c17_i32_54 = arith.constant 17 : i32
    %110 = tpu.dynamic_rotate %12 by %c17_i32_54 dim 1 : vector<16x512xf32>, i32 -> vector<16x512xf32>
    %c6_55 = arith.constant 6 : index
    %c0_56 = arith.constant 0 : index
    %111 = vector.load %arg2[%c6_55, %c0_56] : memref<32x512xf32, #tpu.memory_space<vmem>>, vector<1x512xf32>
    %112 = vector.broadcast %111 : vector<1x512xf32> to vector<16x512xf32>
    %113 = arith.mulf %110, %112 : vector<16x512xf32>
    %114 = arith.truncf %113 : vector<16x512xf32> to vector<16x512xbf16>
    %c96_57 = arith.constant 96 : index
    %c0_58 = arith.constant 0 : index
    %115 = vector.load %arg13[%c96_57, %c0_58] : memref<400x512xbf16, #tpu.memory_space<vmem>>, vector<16x512xbf16>
    tpu.vector_store %arg13[%c96_57, %c0_58], %114 {strides = array<i32>} : memref<400x512xbf16, #tpu.memory_space<vmem>>, vector<16x512xbf16>,
    %c16_i32_59 = arith.constant 16 : i32
    %116 = tpu.dynamic_rotate %12 by %c16_i32_59 dim 1 : vector<16x512xf32>, i32 -> vector<16x512xf32>
    %c7_60 = arith.constant 7 : index
    %c0_61 = arith.constant 0 : index
    %117 = vector.load %arg2[%c7_60, %c0_61] : memref<32x512xf32, #tpu.memory_space<vmem>>, vector<1x512xf32>
    %118 = vector.broadcast %117 : vector<1x512xf32> to vector<16x512xf32>
    %119 = arith.mulf %116, %118 : vector<16x512xf32>
    %120 = arith.truncf %119 : vector<16x512xf32> to vector<16x512xbf16>
    %c112_62 = arith.constant 112 : index
    %c0_63 = arith.constant 0 : index
    %121 = vector.load %arg13[%c112_62, %c0_63] : memref<400x512xbf16, #tpu.memory_space<vmem>>, vector<16x512xbf16>
    tpu.vector_store %arg13[%c112_62, %c0_63], %120 {strides = array<i32>} : memref<400x512xbf16, #tpu.memory_space<vmem>>, vector<16x512xbf16>,
    %c15_i32_64 = arith.constant 15 : i32
    %122 = tpu.dynamic_rotate %12 by %c15_i32_64 dim 1 : vector<16x512xf32>, i32 -> vector<16x512xf32>
    %c8_65 = arith.constant 8 : index
    %c0_66 = arith.constant 0 : index
    %123 = vector.load %arg2[%c8_65, %c0_66] : memref<32x512xf32, #tpu.memory_space<vmem>>, vector<1x512xf32>
    %124 = vector.broadcast %123 : vector<1x512xf32> to vector<16x512xf32>
    %125 = arith.mulf %122, %124 : vector<16x512xf32>
    %126 = arith.truncf %125 : vector<16x512xf32> to vector<16x512xbf16>
    %c128_67 = arith.constant 128 : index
    %c0_68 = arith.constant 0 : index
    %127 = vector.load %arg13[%c128_67, %c0_68] : memref<400x512xbf16, #tpu.memory_space<vmem>>, vector<16x512xbf16>
    tpu.vector_store %arg13[%c128_67, %c0_68], %126 {strides = array<i32>} : memref<400x512xbf16, #tpu.memory_space<vmem>>, vector<16x512xbf16>,
    %c14_i32 = arith.constant 14 : i32
    %128 = tpu.dynamic_rotate %12 by %c14_i32 dim 1 : vector<16x512xf32>, i32 -> vector<16x512xf32>
    %c9 = arith.constant 9 : index
    %c0_69 = arith.constant 0 : index
    %129 = vector.load %arg2[%c9, %c0_69] : memref<32x512xf32, #tpu.memory_space<vmem>>, vector<1x512xf32>
    %130 = vector.broadcast %129 : vector<1x512xf32> to vector<16x512xf32>
    %131 = arith.mulf %128, %130 : vector<16x512xf32>
    %132 = arith.truncf %131 : vector<16x512xf32> to vector<16x512xbf16>
    %c144 = arith.constant 144 : index
    %c0_70 = arith.constant 0 : index
    %133 = vector.load %arg13[%c144, %c0_70] : memref<400x512xbf16, #tpu.memory_space<vmem>>, vector<16x512xbf16>
    tpu.vector_store %arg13[%c144, %c0_70], %132 {strides = array<i32>} : memref<400x512xbf16, #tpu.memory_space<vmem>>, vector<16x512xbf16>,
    %c2_i32 = arith.constant 2 : i32
    %134 = tpu.dynamic_rotate %12 by %c2_i32 dim 1 : vector<16x512xf32>, i32 -> vector<16x512xf32>
    %c10 = arith.constant 10 : index
    %c0_71 = arith.constant 0 : index
    %135 = vector.load %arg2[%c10, %c0_71] : memref<32x512xf32, #tpu.memory_space<vmem>>, vector<1x512xf32>
    %136 = vector.broadcast %135 : vector<1x512xf32> to vector<16x512xf32>
    %137 = arith.mulf %134, %136 : vector<16x512xf32>
    %138 = arith.truncf %137 : vector<16x512xf32> to vector<16x512xbf16>
    %c160 = arith.constant 160 : index
    %c0_72 = arith.constant 0 : index
    %139 = vector.load %arg13[%c160, %c0_72] : memref<400x512xbf16, #tpu.memory_space<vmem>>, vector<16x512xbf16>
    tpu.vector_store %arg13[%c160, %c0_72], %138 {strides = array<i32>} : memref<400x512xbf16, #tpu.memory_space<vmem>>, vector<16x512xbf16>,
    %c1_i32_73 = arith.constant 1 : i32
    %140 = tpu.dynamic_rotate %12 by %c1_i32_73 dim 1 : vector<16x512xf32>, i32 -> vector<16x512xf32>
    %c11_74 = arith.constant 11 : index
    %c0_75 = arith.constant 0 : index
    %141 = vector.load %arg2[%c11_74, %c0_75] : memref<32x512xf32, #tpu.memory_space<vmem>>, vector<1x512xf32>
    %142 = vector.broadcast %141 : vector<1x512xf32> to vector<16x512xf32>
    %143 = arith.mulf %140, %142 : vector<16x512xf32>
    %144 = arith.truncf %143 : vector<16x512xf32> to vector<16x512xbf16>
    %c176 = arith.constant 176 : index
    %c0_76 = arith.constant 0 : index
    %145 = vector.load %arg13[%c176, %c0_76] : memref<400x512xbf16, #tpu.memory_space<vmem>>, vector<16x512xbf16>
    tpu.vector_store %arg13[%c176, %c0_76], %144 {strides = array<i32>} : memref<400x512xbf16, #tpu.memory_space<vmem>>, vector<16x512xbf16>,
    %c12_77 = arith.constant 12 : index
    %c0_78 = arith.constant 0 : index
    %146 = vector.load %arg2[%c12_77, %c0_78] : memref<32x512xf32, #tpu.memory_space<vmem>>, vector<1x512xf32>
    %147 = vector.broadcast %146 : vector<1x512xf32> to vector<16x512xf32>
    %148 = arith.mulf %12, %147 : vector<16x512xf32>
    %149 = arith.truncf %148 : vector<16x512xf32> to vector<16x512xbf16>
    %c192 = arith.constant 192 : index
    %c0_79 = arith.constant 0 : index
    %150 = vector.load %arg13[%c192, %c0_79] : memref<400x512xbf16, #tpu.memory_space<vmem>>, vector<16x512xbf16>
    tpu.vector_store %arg13[%c192, %c0_79], %149 {strides = array<i32>} : memref<400x512xbf16, #tpu.memory_space<vmem>>, vector<16x512xbf16>,
    %c511_i32_80 = arith.constant 511 : i32
    %151 = tpu.dynamic_rotate %12 by %c511_i32_80 dim 1 : vector<16x512xf32>, i32 -> vector<16x512xf32>
    %c13_81 = arith.constant 13 : index
    %c0_82 = arith.constant 0 : index
    %152 = vector.load %arg2[%c13_81, %c0_82] : memref<32x512xf32, #tpu.memory_space<vmem>>, vector<1x512xf32>
    %153 = vector.broadcast %152 : vector<1x512xf32> to vector<16x512xf32>
    %154 = arith.mulf %151, %153 : vector<16x512xf32>
    %155 = arith.truncf %154 : vector<16x512xf32> to vector<16x512xbf16>
    %c208 = arith.constant 208 : index
    %c0_83 = arith.constant 0 : index
    %156 = vector.load %arg13[%c208, %c0_83] : memref<400x512xbf16, #tpu.memory_space<vmem>>, vector<16x512xbf16>
    tpu.vector_store %arg13[%c208, %c0_83], %155 {strides = array<i32>} : memref<400x512xbf16, #tpu.memory_space<vmem>>, vector<16x512xbf16>,
    %c510_i32 = arith.constant 510 : i32
    %157 = tpu.dynamic_rotate %12 by %c510_i32 dim 1 : vector<16x512xf32>, i32 -> vector<16x512xf32>
    %c14 = arith.constant 14 : index
    %c0_84 = arith.constant 0 : index
    %158 = vector.load %arg2[%c14, %c0_84] : memref<32x512xf32, #tpu.memory_space<vmem>>, vector<1x512xf32>
    %159 = vector.broadcast %158 : vector<1x512xf32> to vector<16x512xf32>
    %160 = arith.mulf %157, %159 : vector<16x512xf32>
    %161 = arith.truncf %160 : vector<16x512xf32> to vector<16x512xbf16>
    %c224 = arith.constant 224 : index
    %c0_85 = arith.constant 0 : index
    %162 = vector.load %arg13[%c224, %c0_85] : memref<400x512xbf16, #tpu.memory_space<vmem>>, vector<16x512xbf16>
    tpu.vector_store %arg13[%c224, %c0_85], %161 {strides = array<i32>} : memref<400x512xbf16, #tpu.memory_space<vmem>>, vector<16x512xbf16>,
    %c498_i32 = arith.constant 498 : i32
    %163 = tpu.dynamic_rotate %12 by %c498_i32 dim 1 : vector<16x512xf32>, i32 -> vector<16x512xf32>
    %c15 = arith.constant 15 : index
    %c0_86 = arith.constant 0 : index
    %164 = vector.load %arg2[%c15, %c0_86] : memref<32x512xf32, #tpu.memory_space<vmem>>, vector<1x512xf32>
    %165 = vector.broadcast %164 : vector<1x512xf32> to vector<16x512xf32>
    %166 = arith.mulf %163, %165 : vector<16x512xf32>
    %167 = arith.truncf %166 : vector<16x512xf32> to vector<16x512xbf16>
    %c240 = arith.constant 240 : index
    %c0_87 = arith.constant 0 : index
    %168 = vector.load %arg13[%c240, %c0_87] : memref<400x512xbf16, #tpu.memory_space<vmem>>, vector<16x512xbf16>
    tpu.vector_store %arg13[%c240, %c0_87], %167 {strides = array<i32>} : memref<400x512xbf16, #tpu.memory_space<vmem>>, vector<16x512xbf16>,
    %c497_i32_88 = arith.constant 497 : i32
    %169 = tpu.dynamic_rotate %12 by %c497_i32_88 dim 1 : vector<16x512xf32>, i32 -> vector<16x512xf32>
    %c16_89 = arith.constant 16 : index
    %c0_90 = arith.constant 0 : index
    %170 = vector.load %arg2[%c16_89, %c0_90] : memref<32x512xf32, #tpu.memory_space<vmem>>, vector<1x512xf32>
    %171 = vector.broadcast %170 : vector<1x512xf32> to vector<16x512xf32>
    %172 = arith.mulf %169, %171 : vector<16x512xf32>
    %173 = arith.truncf %172 : vector<16x512xf32> to vector<16x512xbf16>
    %c256 = arith.constant 256 : index
    %c0_91 = arith.constant 0 : index
    %174 = vector.load %arg13[%c256, %c0_91] : memref<400x512xbf16, #tpu.memory_space<vmem>>, vector<16x512xbf16>
    tpu.vector_store %arg13[%c256, %c0_91], %173 {strides = array<i32>} : memref<400x512xbf16, #tpu.memory_space<vmem>>, vector<16x512xbf16>,
    %c496_i32_92 = arith.constant 496 : i32
    %175 = tpu.dynamic_rotate %12 by %c496_i32_92 dim 1 : vector<16x512xf32>, i32 -> vector<16x512xf32>
    %c17_93 = arith.constant 17 : index
    %c0_94 = arith.constant 0 : index
    %176 = vector.load %arg2[%c17_93, %c0_94] : memref<32x512xf32, #tpu.memory_space<vmem>>, vector<1x512xf32>
    %177 = vector.broadcast %176 : vector<1x512xf32> to vector<16x512xf32>
    %178 = arith.mulf %175, %177 : vector<16x512xf32>
    %179 = arith.truncf %178 : vector<16x512xf32> to vector<16x512xbf16>
    %c272 = arith.constant 272 : index
    %c0_95 = arith.constant 0 : index
    %180 = vector.load %arg13[%c272, %c0_95] : memref<400x512xbf16, #tpu.memory_space<vmem>>, vector<16x512xbf16>
    tpu.vector_store %arg13[%c272, %c0_95], %179 {strides = array<i32>} : memref<400x512xbf16, #tpu.memory_space<vmem>>, vector<16x512xbf16>,
    %c495_i32_96 = arith.constant 495 : i32
    %181 = tpu.dynamic_rotate %12 by %c495_i32_96 dim 1 : vector<16x512xf32>, i32 -> vector<16x512xf32>
    %c18_97 = arith.constant 18 : index
    %c0_98 = arith.constant 0 : index
    %182 = vector.load %arg2[%c18_97, %c0_98] : memref<32x512xf32, #tpu.memory_space<vmem>>, vector<1x512xf32>
    %183 = vector.broadcast %182 : vector<1x512xf32> to vector<16x512xf32>
    %184 = arith.mulf %181, %183 : vector<16x512xf32>
    %185 = arith.truncf %184 : vector<16x512xf32> to vector<16x512xbf16>
    %c288 = arith.constant 288 : index
    %c0_99 = arith.constant 0 : index
    %186 = vector.load %arg13[%c288, %c0_99] : memref<400x512xbf16, #tpu.memory_space<vmem>>, vector<16x512xbf16>
    tpu.vector_store %arg13[%c288, %c0_99], %185 {strides = array<i32>} : memref<400x512xbf16, #tpu.memory_space<vmem>>, vector<16x512xbf16>,
    %c494_i32 = arith.constant 494 : i32
    %187 = tpu.dynamic_rotate %12 by %c494_i32 dim 1 : vector<16x512xf32>, i32 -> vector<16x512xf32>
    %c19 = arith.constant 19 : index
    %c0_100 = arith.constant 0 : index
    %188 = vector.load %arg2[%c19, %c0_100] : memref<32x512xf32, #tpu.memory_space<vmem>>, vector<1x512xf32>
    %189 = vector.broadcast %188 : vector<1x512xf32> to vector<16x512xf32>
    %190 = arith.mulf %187, %189 : vector<16x512xf32>
    %191 = arith.truncf %190 : vector<16x512xf32> to vector<16x512xbf16>
    %c304 = arith.constant 304 : index
    %c0_101 = arith.constant 0 : index
    %192 = vector.load %arg13[%c304, %c0_101] : memref<400x512xbf16, #tpu.memory_space<vmem>>, vector<16x512xbf16>
    tpu.vector_store %arg13[%c304, %c0_101], %191 {strides = array<i32>} : memref<400x512xbf16, #tpu.memory_space<vmem>>, vector<16x512xbf16>,
    %c482_i32 = arith.constant 482 : i32
    %193 = tpu.dynamic_rotate %12 by %c482_i32 dim 1 : vector<16x512xf32>, i32 -> vector<16x512xf32>
    %c20 = arith.constant 20 : index
    %c0_102 = arith.constant 0 : index
    %194 = vector.load %arg2[%c20, %c0_102] : memref<32x512xf32, #tpu.memory_space<vmem>>, vector<1x512xf32>
    %195 = vector.broadcast %194 : vector<1x512xf32> to vector<16x512xf32>
    %196 = arith.mulf %193, %195 : vector<16x512xf32>
    %197 = arith.truncf %196 : vector<16x512xf32> to vector<16x512xbf16>
    %c320 = arith.constant 320 : index
    %c0_103 = arith.constant 0 : index
    %198 = vector.load %arg13[%c320, %c0_103] : memref<400x512xbf16, #tpu.memory_space<vmem>>, vector<16x512xbf16>
    tpu.vector_store %arg13[%c320, %c0_103], %197 {strides = array<i32>} : memref<400x512xbf16, #tpu.memory_space<vmem>>, vector<16x512xbf16>,
    %c481_i32 = arith.constant 481 : i32
    %199 = tpu.dynamic_rotate %12 by %c481_i32 dim 1 : vector<16x512xf32>, i32 -> vector<16x512xf32>
    %c21 = arith.constant 21 : index
    %c0_104 = arith.constant 0 : index
    %200 = vector.load %arg2[%c21, %c0_104] : memref<32x512xf32, #tpu.memory_space<vmem>>, vector<1x512xf32>
    %201 = vector.broadcast %200 : vector<1x512xf32> to vector<16x512xf32>
    %202 = arith.mulf %199, %201 : vector<16x512xf32>
    %203 = arith.truncf %202 : vector<16x512xf32> to vector<16x512xbf16>
    %c336 = arith.constant 336 : index
    %c0_105 = arith.constant 0 : index
    %204 = vector.load %arg13[%c336, %c0_105] : memref<400x512xbf16, #tpu.memory_space<vmem>>, vector<16x512xbf16>
    tpu.vector_store %arg13[%c336, %c0_105], %203 {strides = array<i32>} : memref<400x512xbf16, #tpu.memory_space<vmem>>, vector<16x512xbf16>,
    %c480_i32 = arith.constant 480 : i32
    %205 = tpu.dynamic_rotate %12 by %c480_i32 dim 1 : vector<16x512xf32>, i32 -> vector<16x512xf32>
    %c22 = arith.constant 22 : index
    %c0_106 = arith.constant 0 : index
    %206 = vector.load %arg2[%c22, %c0_106] : memref<32x512xf32, #tpu.memory_space<vmem>>, vector<1x512xf32>
    %207 = vector.broadcast %206 : vector<1x512xf32> to vector<16x512xf32>
    %208 = arith.mulf %205, %207 : vector<16x512xf32>
    %209 = arith.truncf %208 : vector<16x512xf32> to vector<16x512xbf16>
    %c352 = arith.constant 352 : index
    %c0_107 = arith.constant 0 : index
    %210 = vector.load %arg13[%c352, %c0_107] : memref<400x512xbf16, #tpu.memory_space<vmem>>, vector<16x512xbf16>
    tpu.vector_store %arg13[%c352, %c0_107], %209 {strides = array<i32>} : memref<400x512xbf16, #tpu.memory_space<vmem>>, vector<16x512xbf16>,
    %c479_i32 = arith.constant 479 : i32
    %211 = tpu.dynamic_rotate %12 by %c479_i32 dim 1 : vector<16x512xf32>, i32 -> vector<16x512xf32>
    %c23 = arith.constant 23 : index
    %c0_108 = arith.constant 0 : index
    %212 = vector.load %arg2[%c23, %c0_108] : memref<32x512xf32, #tpu.memory_space<vmem>>, vector<1x512xf32>
    %213 = vector.broadcast %212 : vector<1x512xf32> to vector<16x512xf32>
    %214 = arith.mulf %211, %213 : vector<16x512xf32>
    %215 = arith.truncf %214 : vector<16x512xf32> to vector<16x512xbf16>
    %c368 = arith.constant 368 : index
    %c0_109 = arith.constant 0 : index
    %216 = vector.load %arg13[%c368, %c0_109] : memref<400x512xbf16, #tpu.memory_space<vmem>>, vector<16x512xbf16>
    tpu.vector_store %arg13[%c368, %c0_109], %215 {strides = array<i32>} : memref<400x512xbf16, #tpu.memory_space<vmem>>, vector<16x512xbf16>,
    %c478_i32 = arith.constant 478 : i32
    %217 = tpu.dynamic_rotate %12 by %c478_i32 dim 1 : vector<16x512xf32>, i32 -> vector<16x512xf32>
    %c24 = arith.constant 24 : index
    %c0_110 = arith.constant 0 : index
    %218 = vector.load %arg2[%c24, %c0_110] : memref<32x512xf32, #tpu.memory_space<vmem>>, vector<1x512xf32>
    %219 = vector.broadcast %218 : vector<1x512xf32> to vector<16x512xf32>
    %220 = arith.mulf %217, %219 : vector<16x512xf32>
    %221 = arith.truncf %220 : vector<16x512xf32> to vector<16x512xbf16>
    %c384 = arith.constant 384 : index
    %c0_111 = arith.constant 0 : index
    %222 = vector.load %arg13[%c384, %c0_111] : memref<400x512xbf16, #tpu.memory_space<vmem>>, vector<16x512xbf16>
    tpu.vector_store %arg13[%c384, %c0_111], %221 {strides = array<i32>} : memref<400x512xbf16, #tpu.memory_space<vmem>>, vector<16x512xbf16>,
    %c0_112 = arith.constant 0 : index
    %c0_113 = arith.constant 0 : index
    %223 = vector.load %arg7[%c0_112, %c0_113] : memref<8x400xbf16, #tpu.memory_space<vmem>>, vector<8x400xbf16>
    %c0_114 = arith.constant 0 : index
    %c0_115 = arith.constant 0 : index
    %224 = vector.load %arg13[%c0_114, %c0_115] : memref<400x512xbf16, #tpu.memory_space<vmem>>, vector<400x512xbf16>
    %cst_116 = arith.constant dense<0.000000e+00> : vector<8x512xf32>
    %225 = tpu.matmul %223, %224, %cst_116 {dimension_numbers = #tpu.dot_dimension_numbers<[1], [0], [0], [1], [0, 0, 1, 1], [], []>} : vector<8x400xbf16>, vector<400x512xbf16>, vector<8x512xf32> -> vector<8x512xf32>
    %c0_117 = arith.constant 0 : index
    %c0_118 = arith.constant 0 : index
    %226 = vector.load %arg8[%c0_117, %c0_118] : memref<8x1xf32, #tpu.memory_space<vmem>>, vector<8x1xf32>
    %227 = vector.broadcast %226 : vector<8x1xf32> to vector<8x512xf32>
    %228 = arith.addf %225, %227 : vector<8x512xf32>
    %cst_119 = arith.constant 0.000000e+00 : f32
    %229 = vector.broadcast %cst_119 : f32 to vector<8x512xf32>
    %230 = arith.maximumf %228, %229 : vector<8x512xf32>
    %c1_i32_120 = arith.constant 1 : i32
    %231 = tpu.dynamic_rotate %1 by %c1_i32_120 dim 1 : vector<4x512xf32>, i32 -> vector<4x512xf32>
    %c25 = arith.constant 25 : index
    %c0_121 = arith.constant 0 : index
    %232 = vector.load %arg2[%c25, %c0_121] : memref<32x512xf32, #tpu.memory_space<vmem>>, vector<1x512xf32>
    %233 = vector.broadcast %232 : vector<1x512xf32> to vector<4x512xf32>
    %234 = arith.addf %231, %233 : vector<4x512xf32>
    %c511_i32_122 = arith.constant 511 : i32
    %235 = tpu.dynamic_rotate %1 by %c511_i32_122 dim 1 : vector<4x512xf32>, i32 -> vector<4x512xf32>
    %c26 = arith.constant 26 : index
    %c0_123 = arith.constant 0 : index
    %236 = vector.load %arg2[%c26, %c0_123] : memref<32x512xf32, #tpu.memory_space<vmem>>, vector<1x512xf32>
    %237 = vector.broadcast %236 : vector<1x512xf32> to vector<4x512xf32>
    %238 = arith.addf %235, %237 : vector<4x512xf32>
    %239 = arith.maximumf %234, %238 : vector<4x512xf32>
    %240 = arith.maximumf %1, %239 : vector<4x512xf32>
    %c16_i32_124 = arith.constant 16 : i32
    %241 = tpu.dynamic_rotate %240 by %c16_i32_124 dim 1 : vector<4x512xf32>, i32 -> vector<4x512xf32>
    %c27 = arith.constant 27 : index
    %c0_125 = arith.constant 0 : index
    %242 = vector.load %arg2[%c27, %c0_125] : memref<32x512xf32, #tpu.memory_space<vmem>>, vector<1x512xf32>
    %243 = vector.broadcast %242 : vector<1x512xf32> to vector<4x512xf32>
    %244 = arith.addf %241, %243 : vector<4x512xf32>
    %c496_i32_126 = arith.constant 496 : i32
    %245 = tpu.dynamic_rotate %240 by %c496_i32_126 dim 1 : vector<4x512xf32>, i32 -> vector<4x512xf32>
    %c28 = arith.constant 28 : index
    %c0_127 = arith.constant 0 : index
    %246 = vector.load %arg2[%c28, %c0_127] : memref<32x512xf32, #tpu.memory_space<vmem>>, vector<1x512xf32>
    %247 = vector.broadcast %246 : vector<1x512xf32> to vector<4x512xf32>
    %248 = arith.addf %245, %247 : vector<4x512xf32>
    %249 = arith.maximumf %244, %248 : vector<4x512xf32>
    %250 = arith.maximumf %240, %249 : vector<4x512xf32>
    %c0_128 = arith.constant 0 : index
    %c0_129 = arith.constant 0 : index
    %251 = vector.load %arg9[%c0_128, %c0_129] : memref<8x4xbf16, #tpu.memory_space<vmem>>, vector<8x4xbf16>
    %252 = arith.truncf %250 : vector<4x512xf32> to vector<4x512xbf16>
    %cst_130 = arith.constant dense<0.000000e+00> : vector<8x512xf32>
    %253 = tpu.matmul %251, %252, %cst_130 {dimension_numbers = #tpu.dot_dimension_numbers<[1], [0], [0], [1], [0, 0, 1, 1], [], []>} : vector<8x4xbf16>, vector<4x512xbf16>, vector<8x512xf32> -> vector<8x512xf32>
    %c0_131 = arith.constant 0 : index
    %c0_132 = arith.constant 0 : index
    %254 = vector.load %arg10[%c0_131, %c0_132] : memref<8x1xf32, #tpu.memory_space<vmem>>, vector<8x1xf32>
    %255 = vector.broadcast %254 : vector<8x1xf32> to vector<8x512xf32>
    %256 = arith.addf %253, %255 : vector<8x512xf32>
    %cst_133 = arith.constant 0.000000e+00 : f32
    %257 = vector.broadcast %cst_133 : f32 to vector<8x512xf32>
    %258 = arith.maximumf %256, %257 : vector<8x512xf32>
    %c0_134 = arith.constant 0 : index
    %c0_135 = arith.constant 0 : index
    %c0_136 = arith.constant 0 : index
    %259 = vector.load %arg11[%c0_134, %c0_135, %c0_136] : memref<1x32x512xf32, #tpu.memory_space<vmem>>, vector<1x8x512xf32>
    %260 = vector.shape_cast %259 : vector<1x8x512xf32> to vector<8x512xf32>
    %261 = vector.shape_cast %10 : vector<8x512xf32> to vector<1x8x512xf32>
    tpu.vector_store %arg11[%c0_134, %c0_135, %c0_136], %261 {strides = array<i32>} : memref<1x32x512xf32, #tpu.memory_space<vmem>>, vector<1x8x512xf32>,
    %c0_137 = arith.constant 0 : index
    %c8_138 = arith.constant 8 : index
    %c0_139 = arith.constant 0 : index
    %262 = vector.load %arg11[%c0_137, %c8_138, %c0_139] : memref<1x32x512xf32, #tpu.memory_space<vmem>>, vector<1x8x512xf32>
    %263 = vector.shape_cast %262 : vector<1x8x512xf32> to vector<8x512xf32>
    %264 = vector.shape_cast %73 : vector<8x512xf32> to vector<1x8x512xf32>
    tpu.vector_store %arg11[%c0_137, %c8_138, %c0_139], %264 {strides = array<i32>} : memref<1x32x512xf32, #tpu.memory_space<vmem>>, vector<1x8x512xf32>,
    %c0_140 = arith.constant 0 : index
    %c16_141 = arith.constant 16 : index
    %c0_142 = arith.constant 0 : index
    %265 = vector.load %arg11[%c0_140, %c16_141, %c0_142] : memref<1x32x512xf32, #tpu.memory_space<vmem>>, vector<1x8x512xf32>
    %266 = vector.shape_cast %265 : vector<1x8x512xf32> to vector<8x512xf32>
    %267 = vector.shape_cast %230 : vector<8x512xf32> to vector<1x8x512xf32>
    tpu.vector_store %arg11[%c0_140, %c16_141, %c0_142], %267 {strides = array<i32>} : memref<1x32x512xf32, #tpu.memory_space<vmem>>, vector<1x8x512xf32>,
    %c0_143 = arith.constant 0 : index
    %c24_144 = arith.constant 24 : index
    %c0_145 = arith.constant 0 : index
    %268 = vector.load %arg11[%c0_143, %c24_144, %c0_145] : memref<1x32x512xf32, #tpu.memory_space<vmem>>, vector<1x8x512xf32>
    %269 = vector.shape_cast %268 : vector<1x8x512xf32> to vector<8x512xf32>
    %270 = vector.shape_cast %258 : vector<8x512xf32> to vector<1x8x512xf32>
    tpu.vector_store %arg11[%c0_143, %c24_144, %c0_145], %270 {strides = array<i32>} : memref<1x32x512xf32, #tpu.memory_space<vmem>>, vector<1x8x512xf32>,
    return
  }
  func.func @transform_0(%arg0: i32) -> (i32, i32, i32) {
    %c0_i32 = arith.constant 0 : i32
    %c0_i32_0 = arith.constant 0 : i32
    %c0_i32_1 = arith.constant 0 : i32
    return %arg0, %c0_i32, %c0_i32_0 : i32, i32, i32
  }
  func.func @transform_1(%arg0: i32) -> (i32, i32) {
    %c0_i32 = arith.constant 0 : i32
    %c0_i32_0 = arith.constant 0 : i32
    %c0_i32_1 = arith.constant 0 : i32
    return %c0_i32, %c0_i32_0 : i32, i32
  }
  func.func @transform_2(%arg0: i32) -> (i32, i32) {
    %c0_i32 = arith.constant 0 : i32
    %c0_i32_0 = arith.constant 0 : i32
    %c0_i32_1 = arith.constant 0 : i32
    return %c0_i32, %c0_i32_0 : i32, i32
  }
  func.func @transform_3(%arg0: i32) -> (i32, i32) {
    %c0_i32 = arith.constant 0 : i32
    %c0_i32_0 = arith.constant 0 : i32
    %c0_i32_1 = arith.constant 0 : i32
    return %c0_i32, %c0_i32_0 : i32, i32
  }
  func.func @transform_4(%arg0: i32) -> (i32, i32) {
    %c0_i32 = arith.constant 0 : i32
    %c0_i32_0 = arith.constant 0 : i32
    %c0_i32_1 = arith.constant 0 : i32
    return %c0_i32, %c0_i32_0 : i32, i32
  }
  func.func @transform_5(%arg0: i32) -> (i32, i32) {
    %c0_i32 = arith.constant 0 : i32
    %c0_i32_0 = arith.constant 0 : i32
    %c0_i32_1 = arith.constant 0 : i32
    return %c0_i32, %c0_i32_0 : i32, i32
  }
  func.func @transform_6(%arg0: i32) -> (i32, i32) {
    %c0_i32 = arith.constant 0 : i32
    %c0_i32_0 = arith.constant 0 : i32
    %c0_i32_1 = arith.constant 0 : i32
    return %c0_i32, %c0_i32_0 : i32, i32
  }
  func.func @transform_7(%arg0: i32) -> (i32, i32) {
    %c0_i32 = arith.constant 0 : i32
    %c0_i32_0 = arith.constant 0 : i32
    %c0_i32_1 = arith.constant 0 : i32
    return %c0_i32, %c0_i32_0 : i32, i32
  }
  func.func @transform_8(%arg0: i32) -> (i32, i32) {
    %c0_i32 = arith.constant 0 : i32
    %c0_i32_0 = arith.constant 0 : i32
    %c0_i32_1 = arith.constant 0 : i32
    return %c0_i32, %c0_i32_0 : i32, i32
  }
  func.func @transform_9(%arg0: i32) -> (i32, i32) {
    %c0_i32 = arith.constant 0 : i32
    %c0_i32_0 = arith.constant 0 : i32
    %c0_i32_1 = arith.constant 0 : i32
    return %c0_i32, %c0_i32_0 : i32, i32
  }
  func.func @transform_10(%arg0: i32) -> (i32, i32, i32) {
    %c0_i32 = arith.constant 0 : i32
    %c0_i32_0 = arith.constant 0 : i32
    %c0_i32_1 = arith.constant 0 : i32
    return %arg0, %c0_i32, %c0_i32_0 : i32, i32, i32
  }
}

</mosaic_0001>

<bundles_post_ra>
// kernel: inception_block.1
= control target key start
LH: loop header
LB: loop body
LE: loop exit
PB: predicated region body
PF: predicated region fallthrough
CT: control target
= control target key end

     0   :  { %vm114_vm0 = vcmask 1041408   ;;  %v5269_v2 = vmov 0   ;;  %vm104_vm1 = vcmask 31744   ;;  %v285_v20 = vlaneseq  ;;  %s3255_s22 = smov 17   ;;  %s3256_s23 = smov 16   ;;  %s5258_s0 = inlined_call_operand.vmem [shape: f32[1,4,512], index: 0, kind: input, shape index: {}]   ;;  %s5259_s2 = inlined_call_operand.vmem [shape: bf16[48,4], index: 2, kind: input, shape index: {}]   ;;  %s5260_s3 = inlined_call_operand.vmem [shape: f32[48,1], index: 3, kind: input, shape index: {}]   ;;  %s5261_s5 = inlined_call_operand.vmem [shape: f32[8,1], index: 5, kind: input, shape index: {}]   ;;  %s5262_s10 = inlined_call_operand.vmem [shape: f32[1,32,512], index: 10, kind: output, shape index: {}]   ;;  %s5263_s1 = inlined_call_operand.vmem [shape: f32[32,512], index: 1, kind: input, shape index: {}]   ;;  %s5264_s4 = inlined_call_operand.vmem [shape: bf16[8,144], index: 4, kind: input, shape index: {}]   ;;  %s5265_s6 = inlined_call_operand.vmem [shape: bf16[8,400], index: 6, kind: input, shape index: {}]   ;;  %s5266_s9 = inlined_call_operand.vmem [shape: f32[8,1], index: 9, kind: input, shape index: {}]   ;;  %s5267_s7 = inlined_call_operand.vmem [shape: f32[8,1], index: 7, kind: input, shape index: {}]   ;;  %s5268_s8 = inlined_call_operand.vmem [shape: bf16[8,4], index: 8, kind: input, shape index: {}]  }
   0x1   :  { %v36_v0 = vld [vmem:[%s5258_s0] sm:$0xff]  ;;  %v37_v1 = vld [vmem:[%s5258_s0 + $0x8] sm:$0xff]  ;;  %159 = vmatprep.mubr.bf16.mxu0 %v5269_v2  ;;  %220 = vmatprep.mubr.bf16.mxu1 %v5269_v2  ;;  %v57_v12 = vld [vmem:[%s5260_s3 + $0x18] sm:$0xff]  ;;  %s3257_s24 = smov 15   ;;  %s3258_s25 = smov 1   ;;  %vm871_vm2 = vcmask 130048  }
   0x2   :  { %v3342_v3 = vcombine.high %v36_v0, %v36_v0  ;;  %v3344_v4 = vcombine.high %v37_v1, %v37_v1  ;;  %v50_v5 = vpack.c.bf16 %v36_v0, %v36_v0  ;;  %v52_v6 = vpack.c.bf16 %v37_v1, %v37_v1  ;;  %3237 = vset.pattern.permute.xlu0 %v5269_v2  ;;  %v54_v11 = vld [vmem:[%s5260_s3] sm:$0xff]  ;;  %v56_v14 = vld [vmem:[%s5260_s3 + $0x10] sm:$0xff]  ;;  %v59_v16 = vld [vmem:[%s5260_s3 + $0x28] sm:$0xff]  ;;  %s3259_s26 = smov 127   ;;  %s3260_s27 = smov 113  }
   0x3   :  { %3238 = vset.pattern.permute.xlu1 %v5269_v2  ;;  %62 = vperm.xlu0 %3237, %v54_v11   ;;  %v3241_v13 = vld [vmem:[%s5259_s2] sm:$0xff]   ;;  %v3242_v18 = vld [vmem:[%s5259_s2 + $0x8] sm:$0xff]   ;;  %v3243_v19 = vld [vmem:[%s5259_s2 + $0x10] sm:$0xff]   ;;  %v3394_v32 = vshrl.u32 %v285_v20, 7  ;;  %s3261_s28 = smov 112   ;;  %s3262_s29 = smov 111  }
   0x4   :  { %5290 = vst [vmem:[#allocation4_spill] sm:$0xff] %v3342_v3  ;;  %5291 = vst [vmem:[#allocation5_spill] sm:$0xff] %v3344_v4  ;;  %v51_v7 = vpack.c.bf16 %v3342_v3, %v3342_v3  ;;  %v53_v8 = vpack.c.bf16 %v3344_v4, %v3344_v4  ;;  %v116_v9 = vsel %vm114_vm0, %v50_v5, 0  ;;  %v122_v10 = vsel %vm114_vm0, %v52_v6, 0  ;;  %76 = vperm.xlu1 %3238, %v57_v12   ;;  %v58_v15 = vld [vmem:[%s5260_s3 + $0x20] sm:$0xff]  ;;  %s3264_s12 = smov 33  }
   0x5   :  { %v859_v17 = vld [vmem:[%s5261_s5] sm:$0xff]  ;;  %v3409_v39 = vsub.s32 2, %v3394_v32  ;;  %v3412_v40 = vsub.s32 0, %v3394_v32  ;;  %s3265_s3 = smov 32   ;;  %s3266_s13 = smov 31  }
   0x6   :  { %3141 = vmatprep.subr.msk.bf16.mxu0 %vm114_vm0, %v51_v7  ;;  %3145 = vmatprep.subr.msk.bf16.mxu1 %vm114_vm0, %v53_v8  ;;  %v3421_v43 = vld [vmem:[%s5263_s1 + $0x24] ss:$8 sm:$0xf]  ;;  %s3267_s2 = smov 30   ;;  %s3268_s5 = smov 18  }
   0x7   :  { %128 = vmatpush1.bf16.msra.mxu0 %v116_v9  ;;  %189 = vmatpush1.bf16.msra.mxu1 %v122_v10  ;;  %v533_v52 = vrot.slane %v3421_v43, %v3412_v40  ;;  %v541_v53 = vrot.slane %v3421_v43, %v3409_v39  ;;  %s3269_s17 = smov 14   ;;  %s3270_s21 = smov 2  }
   0x8   :  { %71 = vperm.xlu0 %3237, %v56_v14   ;;  %81 = vperm.xlu1 %3238, %v58_v15   ;;  %s3272_s14 = smov 114   ;;  %s3273_s11 = smov 110  }
   0x9   :  { %s3275_s15 = smov 97   ;;  %s3276_s20 = smov 96  }
   0xa   :  { %3142 = vmatmul.mubr.msk.bf16.vlgmr.msra.gmra.mrb[0].mxu0 %vm104_vm1, %v3241_v13  ;;  %3146 = vmatmul.mubr.msk.bf16.vlgmr.msra.gmra.mrb[0].mxu1 %vm104_vm1, %v3241_v13 }
   0xb   :  { %167 = vmatprep.mubr.bf16.mxu0 %v5269_v2  ;;  %228 = vmatprep.mubr.bf16.mxu1 %v5269_v2 }
   0xc   :  { %86 = vperm.xlu0 %3237, %v59_v16   ;;  %862 = vperm.xlu1 %3238, %v859_v17  }
  0x12   :  { %3143 = vmatmul.mubr.msk.bf16.gmra.mrb[4].mxu0 %vm104_vm1, %v3242_v18  ;;  %3147 = vmatmul.mubr.msk.bf16.gmra.mrb[4].mxu1 %vm104_vm1, %v3242_v18 }
  0x13   :  { %177 = vmatprep.mubr.bf16.mxu0 %v5269_v2  ;;  %238 = vmatprep.mubr.bf16.mxu1 %v5269_v2 }
  0x1a   :  { %3144 = vmatmul.mubr.msk.bf16.gmra.mrb[8].mxu0 %vm104_vm1, %v3243_v19  ;;  %3148 = vmatmul.mubr.msk.bf16.gmra.mrb[8].mxu1 %vm104_vm1, %v3243_v19 }
  0x82   :  { %v63_v21 = vpop.permute.xlu0 %62 }
  0x83   :  { %v3414_v41 = vpop.permute.xlu1 %76 }
  0x87   :  { %v3416_v42 = vpop.permute.xlu0 %71 }
  0xdd   :  { %v161_v22 = vpop.f32.mrb[0].mxu0  ;;  %v222_v23 = vpop.f32.mrb[0].mxu1 }
  0xde   :  { %v162_v24 = vadd.f32 %v161_v22, %v63_v21  ;;  %v163_v25 = vpop.f32.mrb[1].mxu0  ;;  %v223_v26 = vadd.f32 %v222_v23, %v63_v21  ;;  %v224_v27 = vpop.f32.mrb[1].mxu1 }
  0xdf   :  { %v164_v28 = vadd.f32 %v163_v25, %v63_v21  ;;  %v165_v29 = vpop.f32.mrb[2].mxu0  ;;  %v225_v30 = vadd.f32 %v224_v27, %v63_v21  ;;  %v226_v31 = vpop.f32.mrb[2].mxu1 }
  0xe0   :  { %v249_v33 = vmax.f32 %v162_v24, 0.0  ;;  %v251_v34 = vmax.f32 %v223_v26, 0.0  ;;  %v166_v35 = vpop.f32.mrb[3].mxu0  ;;  %v227_v36 = vpop.f32.mrb[3].mxu1 }
  0xe1   :  { %v250_v37 = vmax.f32 %v164_v28, 0.0  ;;  %v252_v38 = vmax.f32 %v225_v30, 0.0  ;;  %v3549_v24 = vpop.permute.xlu1 %81  ;;  %v3561_v26 = vpop.permute.xlu0 %86  ;;  %v3572_v28 = vld [vmem:[%s5264_s4] sm:$0xff]  ;;  %s3263_s4 = smov 34  }
  0xe2   :  { %3118 = vst [vmem:[%s5262_s10] sm:$0xff] %v249_v33  ;;  %3120 = vst [vmem:[%s5262_s10 + $0x10] sm:$0xff] %v251_v34  ;;  %v3159_v30 = vcombine.high %v3572_v28, %v3572_v28 }
  0xe3   :  { %3119 = vst [vmem:[%s5262_s10 + $0x8] sm:$0xff] %v250_v37  ;;  %3121 = vst [vmem:[%s5262_s10 + $0x18] sm:$0xff] %v252_v38 }
  0xe4   :  { %5293 = vst [vmem:[#allocation7_spill] sm:$0xff] %v3572_v28  ;;  %3160 = vmatprep.mubr.msk.bf16.mxu0 %vm871_vm2, %v3159_v30  ;;  %3161 = vmatprep.mubr.msk.bf16.mxu1 %vm871_vm2, %v3159_v30 }
  0xe5   :  { %v169_v44 = vpop.f32.mrb[4].mxu0  ;;  %v230_v45 = vpop.f32.mrb[4].mxu1 }
  0xe6   :  { %v170_v46 = vadd.f32 %v169_v44, %v3416_v42  ;;  %v231_v47 = vadd.f32 %v230_v45, %v3416_v42  ;;  %v3425_v48 = vpop.f32.mrb[5].mxu0  ;;  %v3427_v49 = vpop.f32.mrb[5].mxu1 }
  0xe7   :  { %v173_v50 = vpop.f32.mrb[6].mxu0  ;;  %v234_v51 = vpop.f32.mrb[6].mxu1  ;;  %v172_v15 = vadd.f32 %v3425_v48, %v3416_v42  ;;  %v233_v18 = vadd.f32 %v3427_v49, %v3416_v42 }
  0xe8   :  { %v253_v54 = vmax.f32 %v170_v46, 0.0  ;;  %v255_v55 = vmax.f32 %v231_v47, 0.0  ;;  %v174_v56 = vadd.f32 %v173_v50, %v3414_v41  ;;  %v235_v57 = vadd.f32 %v234_v51, %v3414_v41  ;;  %v175_v58 = vpop.f32.mrb[7].mxu0  ;;  %v236_v59 = vpop.f32.mrb[7].mxu1 }
  0xe9   :  { %v176_v16 = vadd.f32 %v175_v58, %v3414_v41  ;;  %v3497_v17 = vmax.f32 %v172_v15, 0.0  ;;  %v237_v21 = vadd.f32 %v236_v59, %v3414_v41  ;;  %v3507_v22 = vmax.f32 %v233_v18, 0.0  ;;  %v3557_v25 = vpop.permute.xlu1 %862 }
  0xea   :  { %v257_v60 = vmax.f32 %v174_v56, 0.0  ;;  %v259_v61 = vmax.f32 %v235_v57, 0.0  ;;  %269 = vrot.lane.b32.xlu1 %v253_v54, %s3255_s22  ;;  %v3437_v62 = vmul.f32 %v533_v52, %v253_v54  ;;  %v3441_v0 = vmul.f32 %v541_v53, %v255_v55  ;;  %5292 = vst [vmem:[#allocation6_spill] sm:$0xff] %v3557_v25 }
  0xeb   :  { %v3502_v19 = vmax.f32 %v176_v16, 0.0  ;;  %v3511_v23 = vmax.f32 %v237_v21, 0.0 }
  0xec   :  { %271 = vrot.lane.b32.xlu0 %v257_v60, %s3255_s22  ;;  %v3439_v63 = vmul.f32 %v533_v52, %v257_v60  ;;  %v3443_v1 = vmul.f32 %v541_v53, %v259_v61 }
  0xed   :  { %v3445_v5 = vpop.f32.mrb[8].mxu0  ;;  %v3447_v6 = vpop.f32.mrb[8].mxu1 }
  0xee   :  { %v3449_v7 = vpop.f32.mrb[9].mxu0  ;;  %v3451_v8 = vpop.f32.mrb[9].mxu1  ;;  %277 = vrot.lane.b32.xlu1 %v255_v55, %s3255_s22  ;;  %v180_v36 = vadd.f32 %v3445_v5, %v3549_v24  ;;  %v241_v45 = vadd.f32 %v3447_v6, %v3549_v24 }
  0xef   :  { %v3458_v11 = vpop.f32.mrb[10].mxu0  ;;  %v3460_v12 = vpop.f32.mrb[10].mxu1 }
  0xf0   :  { %v3462_v13 = vpop.f32.mrb[11].mxu0  ;;  %v3464_v14 = vpop.f32.mrb[11].mxu1  ;;  %279 = vrot.lane.b32.xlu0 %v259_v61, %s3255_s22  ;;  %v184_v34 = vadd.f32 %v3458_v11, %v3561_v26  ;;  %v245_v41 = vadd.f32 %v3460_v12, %v3561_v26  ;;  %v3610_v44 = vmax.f32 %v180_v36, 0.0  ;;  %v3624_v49 = vmax.f32 %v241_v45, 0.0 }
  0xf1   :  { %v182_v45 = vadd.f32 %v3449_v7, %v3549_v24  ;;  %v186_v10 = vadd.f32 %v3462_v13, %v3561_v26  ;;  %v3745_v13 = vsub.s32 3, %v3394_v32  ;;  %v247_v3 = vadd.f32 %v3464_v14, %v3561_v26 }
  0xf2   :  { %335 = vrot.lane.b32.xlu1 %v253_v54, %s3256_s23  ;;  %v3602_v38 = vmax.f32 %v184_v34, 0.0  ;;  %5295 = vst [vmem:[#allocation9_spill] sm:$0xff] %v3610_v44  ;;  %v3618_v47 = vmax.f32 %v245_v41, 0.0  ;;  %5297 = vst [vmem:[#allocation11_spill] sm:$0xff] %v3624_v49  ;;  %v3711_v34 = vand.u32 127, %v285_v20  ;;  %v3728_v20 = vsub.s32 1, %v3394_v32 }
  0xf3   :  { %v3149_v41 = vld [vmem:[%s5263_s1 + $0x6] ss:$8 sm:$0xf]  ;;  %v3738_v4 = vmax.f32 %v182_v45, 0.0 }
  0xf4   :  { %337 = vrot.lane.b32.xlu0 %v257_v60, %s3256_s23  ;;  %5294 = vst [vmem:[#allocation8_spill] sm:$0xff] %v3602_v38  ;;  %5296 = vst [vmem:[#allocation10_spill] sm:$0xff] %v3618_v47  ;;  %vm287_vm3 = vcmp.lt.s32.totalorder %v3711_v34, 17  ;;  %v306_v9 = vrot.slane %v3149_v41, %v3728_v20  ;;  %v314_v32 = vrot.slane %v3149_v41, %v3745_v13  ;;  %vm351_vm4 = vcmp.lt.s32.totalorder %v3711_v34, 16 }
  0xf5   :  { %v310_v14 = vrot.slane %v3149_v41, %v3409_v39  ;;  %vm415_vm5 = vcmp.lt.s32.totalorder %v3711_v34, 15  ;;  %vm479_vm6 = vcmp.lt.s32.totalorder %v3711_v34, 1  ;;  %vm582_vm7 = vcmp.lt.s32.totalorder %v3711_v34, 127 }
  0xf6   :  { %343 = vrot.lane.b32.xlu1 %v255_v55, %s3256_s23  ;;  %vm646_vm8 = vcmp.lt.s32.totalorder %v3711_v34, 113  ;;  %vm710_vm9 = vcmp.lt.s32.totalorder %v3711_v34, 112  ;;  %vm774_vm10 = vcmp.lt.s32.totalorder %v3711_v34, 111  ;;  %vm977_vm11 = vcmp.lt.s32.totalorder %v3711_v34, 34 }
  0xf7   :  { %vm1040_vm12 = vcmp.lt.s32.totalorder %v3711_v34, 33  ;;  %vm1104_vm13 = vcmp.lt.s32.totalorder %v3711_v34, 32  ;;  %vm1168_vm14 = vcmp.lt.s32.totalorder %v3711_v34, 31  ;;  %vm1232_vm15 = vcmp.lt.s32.totalorder %v3711_v34, 30 }
  0xf8   :  { %345 = vrot.lane.b32.xlu0 %v259_v61, %s3256_s23 }
  0xfa   :  { %399 = vrot.lane.b32.xlu1 %v253_v54, %s3257_s24 }
  0xfc   :  { %401 = vrot.lane.b32.xlu0 %v257_v60, %s3257_s24 }
  0xfe   :  { %407 = vrot.lane.b32.xlu1 %v255_v55, %s3257_s24 }
 0x100   :  { %409 = vrot.lane.b32.xlu0 %v259_v61, %s3257_s24 }
 0x102   :  { %463 = vrot.lane.b32.xlu1 %v253_v54, %s3258_s25 }
 0x104   :  { %465 = vrot.lane.b32.xlu0 %v257_v60, %s3258_s25 }
 0x106   :  { %471 = vrot.lane.b32.xlu1 %v255_v55, %s3258_s25 }
 0x108   :  { %473 = vrot.lane.b32.xlu0 %v259_v61, %s3258_s25 }
 0x10a   :  { %566 = vrot.lane.b32.xlu1 %v253_v54, %s3259_s26 }
 0x10c   :  { %568 = vrot.lane.b32.xlu0 %v257_v60, %s3259_s26 }
 0x10e   :  { %574 = vrot.lane.b32.xlu1 %v255_v55, %s3259_s26 }
 0x110   :  { %576 = vrot.lane.b32.xlu0 %v259_v61, %s3259_s26 }
 0x112   :  { %630 = vrot.lane.b32.xlu1 %v253_v54, %s3260_s27 }
 0x114   :  { %632 = vrot.lane.b32.xlu0 %v257_v60, %s3260_s27 }
 0x116   :  { %638 = vrot.lane.b32.xlu1 %v255_v55, %s3260_s27 }
 0x118   :  { %640 = vrot.lane.b32.xlu0 %v259_v61, %s3260_s27 }
 0x11a   :  { %694 = vrot.lane.b32.xlu1 %v253_v54, %s3261_s28 }
 0x11c   :  { %696 = vrot.lane.b32.xlu0 %v257_v60, %s3261_s28 }
 0x11e   :  { %702 = vrot.lane.b32.xlu1 %v255_v55, %s3261_s28 }
 0x120   :  { %704 = vrot.lane.b32.xlu0 %v259_v61, %s3261_s28 }
 0x122   :  { %758 = vrot.lane.b32.xlu1 %v253_v54, %s3262_s29 }
 0x124   :  { %760 = vrot.lane.b32.xlu0 %v257_v60, %s3262_s29 }
 0x126   :  { %766 = vrot.lane.b32.xlu1 %v255_v55, %s3262_s29 }
 0x128   :  { %768 = vrot.lane.b32.xlu0 %v259_v61, %s3262_s29 }
 0x12a   :  { %273 = vrot.lane.b32.xlu1 %v3497_v17, %s3255_s22 }
 0x12c   :  { %275 = vrot.lane.b32.xlu0 %v3502_v19, %s3255_s22 }
 0x12e   :  { %281 = vrot.lane.b32.xlu1 %v3507_v22, %s3255_s22 }
 0x130   :  { %283 = vrot.lane.b32.xlu0 %v3511_v23, %s3255_s22 }
 0x132   :  { %339 = vrot.lane.b32.xlu1 %v3497_v17, %s3256_s23 }
 0x134   :  { %341 = vrot.lane.b32.xlu0 %v3502_v19, %s3256_s23 }
 0x136   :  { %347 = vrot.lane.b32.xlu1 %v3507_v22, %s3256_s23 }
 0x138   :  { %349 = vrot.lane.b32.xlu0 %v3511_v23, %s3256_s23 }
 0x13a   :  { %403 = vrot.lane.b32.xlu1 %v3497_v17, %s3257_s24 }
 0x13c   :  { %405 = vrot.lane.b32.xlu0 %v3502_v19, %s3257_s24 }
 0x13e   :  { %411 = vrot.lane.b32.xlu1 %v3507_v22, %s3257_s24 }
 0x140   :  { %413 = vrot.lane.b32.xlu0 %v3511_v23, %s3257_s24 }
 0x142   :  { %467 = vrot.lane.b32.xlu1 %v3497_v17, %s3258_s25 }
 0x144   :  { %469 = vrot.lane.b32.xlu0 %v3502_v19, %s3258_s25 }
 0x146   :  { %475 = vrot.lane.b32.xlu1 %v3507_v22, %s3258_s25 }
 0x148   :  { %477 = vrot.lane.b32.xlu0 %v3511_v23, %s3258_s25 }
 0x14a   :  { %570 = vrot.lane.b32.xlu1 %v3497_v17, %s3259_s26 }
 0x14c   :  { %572 = vrot.lane.b32.xlu0 %v3502_v19, %s3259_s26 }
 0x14e   :  { %578 = vrot.lane.b32.xlu1 %v3507_v22, %s3259_s26 }
 0x150   :  { %580 = vrot.lane.b32.xlu0 %v3511_v23, %s3259_s26 }
 0x152   :  { %634 = vrot.lane.b32.xlu1 %v3497_v17, %s3260_s27 }
 0x154   :  { %636 = vrot.lane.b32.xlu0 %v3502_v19, %s3260_s27 }
 0x156   :  { %642 = vrot.lane.b32.xlu1 %v3507_v22, %s3260_s27 }
 0x158   :  { %644 = vrot.lane.b32.xlu0 %v3511_v23, %s3260_s27 }
 0x15a   :  { %698 = vrot.lane.b32.xlu1 %v3497_v17, %s3261_s28 }
 0x15c   :  { %700 = vrot.lane.b32.xlu0 %v3502_v19, %s3261_s28  ;;  %v3567_v27 = vpop.permute.xlu1 %269 }
 0x15e   :  { %v3574_v29 = vpop.permute.xlu0 %271  ;;  %706 = vrot.lane.b32.xlu1 %v3507_v22, %s3261_s28 }
 0x160   :  { %708 = vrot.lane.b32.xlu0 %v3511_v23, %s3261_s28  ;;  %v3582_v31 = vpop.permute.xlu1 %277 }
 0x162   :  { %v3586_v33 = vpop.permute.xlu0 %279  ;;  %762 = vrot.lane.b32.xlu1 %v3497_v17, %s3262_s29 }
 0x164   :  { %764 = vrot.lane.b32.xlu0 %v3502_v19, %s3262_s29  ;;  %v3594_v35 = vpop.permute.xlu1 %335 }
 0x166   :  { %v3598_v37 = vpop.permute.xlu0 %337  ;;  %770 = vrot.lane.b32.xlu1 %v3507_v22, %s3262_s29 }
 0x168   :  { %772 = vrot.lane.b32.xlu0 %v3511_v23, %s3262_s29  ;;  %v3608_v42 = vpop.permute.xlu1 %343 }
 0x16a   :  { %v3614_v46 = vpop.permute.xlu0 %345  ;;  %963 = vrot.lane.b32.xlu1 %v3602_v38, %s3263_s4 }
 0x16c   :  { %961 = vrot.lane.b32.xlu0 %v3610_v44, %s3263_s4  ;;  %v3622_v48 = vpop.permute.xlu1 %399 }
 0x16e   :  { %v3626_v50 = vpop.permute.xlu0 %401  ;;  %971 = vrot.lane.b32.xlu1 %v3618_v47, %s3263_s4 }
 0x170   :  { %969 = vrot.lane.b32.xlu0 %v3624_v49, %s3263_s4  ;;  %v3632_v51 = vpop.permute.xlu1 %407 }
 0x172   :  { %v3634_v52 = vpop.permute.xlu0 %409  ;;  %1026 = vrot.lane.b32.xlu1 %v3602_v38, %s3264_s12 }
 0x174   :  { %1024 = vrot.lane.b32.xlu0 %v3610_v44, %s3264_s12  ;;  %v3640_v53 = vpop.permute.xlu1 %463 }
 0x176   :  { %v3642_v54 = vpop.permute.xlu0 %465  ;;  %1034 = vrot.lane.b32.xlu1 %v3618_v47, %s3264_s12 }
 0x178   :  { %1032 = vrot.lane.b32.xlu0 %v3624_v49, %s3264_s12  ;;  %v3648_v55 = vpop.permute.xlu1 %471 }
 0x17a   :  { %v3650_v56 = vpop.permute.xlu0 %473  ;;  %1090 = vrot.lane.b32.xlu1 %v3602_v38, %s3265_s3 }
 0x17c   :  { %1088 = vrot.lane.b32.xlu0 %v3610_v44, %s3265_s3  ;;  %v3656_v57 = vpop.permute.xlu1 %566 }
 0x17e   :  { %v3658_v58 = vpop.permute.xlu0 %568  ;;  %1098 = vrot.lane.b32.xlu1 %v3618_v47, %s3265_s3 }
 0x180   :  { %1096 = vrot.lane.b32.xlu0 %v3624_v49, %s3265_s3  ;;  %v3664_v59 = vpop.permute.xlu1 %574 }
 0x182   :  { %v3666_v60 = vpop.permute.xlu0 %576  ;;  %1154 = vrot.lane.b32.xlu1 %v3602_v38, %s3266_s13 }
 0x184   :  { %1152 = vrot.lane.b32.xlu0 %v3610_v44, %s3266_s13  ;;  %v3672_v61 = vpop.permute.xlu1 %630 }
 0x186   :  { %v3674_v5 = vpop.permute.xlu0 %632  ;;  %1162 = vrot.lane.b32.xlu1 %v3618_v47, %s3266_s13 }
 0x188   :  { %1160 = vrot.lane.b32.xlu0 %v3624_v49, %s3266_s13  ;;  %v3680_v6 = vpop.permute.xlu1 %638 }
 0x18a   :  { %v3682_v11 = vpop.permute.xlu0 %640  ;;  %1218 = vrot.lane.b32.xlu1 %v3602_v38, %s3267_s2 }
 0x18c   :  { %1216 = vrot.lane.b32.xlu0 %v3610_v44, %s3267_s2  ;;  %v3688_v12 = vpop.permute.xlu1 %694 }
 0x18e   :  { %v3690_v15 = vpop.permute.xlu0 %696  ;;  %1226 = vrot.lane.b32.xlu1 %v3618_v47, %s3267_s2 }
 0x18f   :  { %5298 = vst [vmem:[#allocation12_spill] sm:$0xff] %v3690_v15 }
 0x190   :  { %1224 = vrot.lane.b32.xlu0 %v3624_v49, %s3267_s2  ;;  %v3696_v16 = vpop.permute.xlu1 %702 }
 0x192   :  { %v3698_v18 = vpop.permute.xlu0 %704  ;;  %1282 = vrot.lane.b32.xlu1 %v3602_v38, %s3268_s5 }
 0x194   :  { %1280 = vrot.lane.b32.xlu0 %v3610_v44, %s3268_s5  ;;  %v3704_v21 = vpop.permute.xlu1 %758 }
 0x195   :  { %5299 = vst [vmem:[#allocation13_spill] sm:$0xff] %v3704_v21 }
 0x196   :  { %v3706_v30 = vpop.permute.xlu0 %760  ;;  %1290 = vrot.lane.b32.xlu1 %v3618_v47, %s3268_s5 }
 0x197   :  { %5300 = vst [vmem:[#allocation14_spill] sm:$0xff] %v3706_v30  ;;  %v302_v30 = vrot.slane %v3149_v41, %v3412_v40  ;;  %v3150_v41 = vld [vmem:[%s5263_s1 + $0x7] ss:$8 sm:$0xf] }
 0x198   :  { %1288 = vrot.lane.b32.xlu0 %v3624_v49, %s3268_s5  ;;  %v3715_v36 = vpop.permute.xlu1 %766 }
 0x199   :  { %5301 = vst [vmem:[#allocation15_spill] sm:$0xff] %v3715_v36 }
 0x19a   :  { %v3722_v2 = vpop.permute.xlu0 %768  ;;  %1346 = vrot.lane.b32.xlu1 %v3602_v38, %s3255_s22  ;;  %v243_v38 = vadd.f32 %v3451_v8, %v3549_v24 }
 0x19b   :  { %5302 = vst [vmem:[#allocation16_spill] sm:$0xff] %v3722_v2 }
 0x19c   :  { %1344 = vrot.lane.b32.xlu0 %v3610_v44, %s3255_s22  ;;  %v274_v25 = vpop.permute.xlu1 %273  ;;  %v3747_v44 = vmax.f32 %v186_v10, 0.0 }
 0x19d   :  { %v292_v7 = vsel %vm287_vm3, %v3567_v27, %v274_v25 }
 0x19e   :  { %v276_v28 = vpop.permute.xlu0 %275  ;;  %1354 = vrot.lane.b32.xlu1 %v3618_v47, %s3255_s22  ;;  %v320_v2 = vmul.f32 %v306_v9, %v292_v7  ;;  %v3768_v47 = vmax.f32 %v243_v38, 0.0 }
 0x19f   :  { %v293_v45 = vsel %vm287_vm3, %v3574_v29, %v276_v28  ;;  %v291_v8 = vsel %vm287_vm3, %v276_v28, %v3586_v33 }
 0x1a0   :  { %v324_v24 = vmul.f32 %v306_v9, %v293_v45  ;;  %965 = vrot.lane.b32.xlu0 %v3738_v4, %s3263_s4  ;;  %v282_v10 = vpop.permute.xlu1 %281  ;;  %v290_v9 = vsel %vm287_vm3, %v274_v25, %v3582_v31  ;;  %v325_v36 = vmul.f32 %v310_v14, %v291_v8  ;;  %v370_v8 = vrot.slane %v3150_v41, %v3728_v20 }
 0x1a1   :  { %v288_v26 = vsel %vm287_vm3, %v3582_v31, %v282_v10  ;;  %v294_v7 = vsel %vm287_vm3, %v282_v10, %v3567_v27  ;;  %v3785_v31 = vmax.f32 %v247_v3, 0.0 }
 0x1a2   :  { %v284_v28 = vpop.permute.xlu0 %283  ;;  %967 = vrot.lane.b32.xlu1 %v3747_v44, %s3263_s4  ;;  %v328_v45 = vpack.c.bf16 %v324_v24, %v320_v2  ;;  %v319_v21 = vmul.f32 %v302_v30, %v294_v7  ;;  %v322_v38 = vmul.f32 %v314_v32, %v288_v26  ;;  %v321_v7 = vmul.f32 %v310_v14, %v290_v9 }
 0x1a3   :  { %v289_v27 = vsel %vm287_vm3, %v3586_v33, %v284_v28  ;;  %v295_v25 = vsel %vm287_vm3, %v284_v28, %v3574_v29  ;;  %v374_v28 = vrot.slane %v3150_v41, %v3409_v39 }
 0x1a4   :  { %v323_v2 = vmul.f32 %v302_v30, %v295_v25  ;;  %v326_v24 = vmul.f32 %v314_v32, %v289_v27  ;;  %973 = vrot.lane.b32.xlu0 %v3768_v47, %s3263_s4  ;;  %875 = vmatprep.subr.bf16.mxu0 %v328_v45  ;;  %v340_v10 = vpop.permute.xlu1 %339  ;;  %v366_v30 = vrot.slane %v3150_v41, %v3412_v40 }
 0x1a5   :  { %v356_v33 = vsel %vm351_vm4, %v3594_v35, %v340_v10  ;;  %v378_v32 = vrot.slane %v3150_v41, %v3745_v13  ;;  %v329_v26 = vpack.c.bf16 %v325_v36, %v321_v7 }
 0x1a6   :  { %v327_v49 = vpack.c.bf16 %v323_v2, %v319_v21  ;;  %v342_v15 = vpop.permute.xlu0 %341  ;;  %975 = vrot.lane.b32.xlu1 %v3785_v31, %s3263_s4  ;;  %v330_v3 = vpack.c.bf16 %v326_v24, %v322_v38  ;;  %v384_v45 = vmul.f32 %v370_v8, %v356_v33 }
 0x1a7   :  { %v357_v29 = vsel %vm351_vm4, %v3598_v37, %v342_v15  ;;  %v355_v21 = vsel %vm351_vm4, %v342_v15, %v3614_v46  ;;  %v354_v15 = vsel %vm351_vm4, %v340_v10, %v3608_v42 }
 0x1a8   :  { %v388_v14 = vmul.f32 %v370_v8, %v357_v29  ;;  %1028 = vrot.lane.b32.xlu0 %v3738_v4, %s3264_s12  ;;  %876 = vmatpush1.bf16.msra.mxu0 %v327_v49  ;;  %v348_v9 = vpop.permute.xlu1 %347  ;;  %v3151_v49 = vld [vmem:[%s5263_s1 + $0x20] ss:$8 sm:$0xf]  ;;  %v389_v41 = vmul.f32 %v374_v28, %v355_v21 }
 0x1a9   :  { %916 = vmatprep.subr.bf16.mxu1 %v330_v3  ;;  %v352_v27 = vsel %vm351_vm4, %v3608_v42, %v348_v9  ;;  %v358_v36 = vsel %vm351_vm4, %v348_v9, %v3594_v35  ;;  %v434_v33 = vrot.slane %v3151_v49, %v3728_v20  ;;  %v385_v3 = vmul.f32 %v374_v28, %v354_v15 }
 0x1aa   :  { %917 = vmatpush1.bf16.msra.mxu1 %v329_v26  ;;  %v350_v25 = vpop.permute.xlu0 %349  ;;  %1030 = vrot.lane.b32.xlu1 %v3747_v44, %s3264_s12  ;;  %v392_v38 = vpack.c.bf16 %v388_v14, %v384_v45  ;;  %v383_v2 = vmul.f32 %v366_v30, %v358_v36  ;;  %v386_v24 = vmul.f32 %v378_v32, %v352_v27 }
 0x1ab   :  { %v353_v35 = vsel %vm351_vm4, %v3614_v46, %v350_v25  ;;  %v359_v42 = vsel %vm351_vm4, %v350_v25, %v3598_v37  ;;  %v442_v21 = vrot.slane %v3151_v49, %v3745_v13  ;;  %v393_v14 = vpack.c.bf16 %v389_v41, %v385_v3 }
 0x1ac   :  { %v387_v10 = vmul.f32 %v366_v30, %v359_v42  ;;  %v390_v8 = vmul.f32 %v378_v32, %v353_v35  ;;  %1036 = vrot.lane.b32.xlu0 %v3768_v47, %s3264_s12  ;;  %v404_v7 = vpop.permute.xlu1 %403  ;;  %877 = vmatprep.subr.bf16.mxu0 %v392_v38  ;;  %v430_v32 = vrot.slane %v3151_v49, %v3412_v40 }
 0x1ad   :  { %v420_v46 = vsel %vm415_vm5, %v3622_v48, %v404_v7  ;;  %v438_v27 = vrot.slane %v3151_v49, %v3409_v39  ;;  %v418_v41 = vsel %vm415_vm5, %v404_v7, %v3632_v51  ;;  %v3152_v49 = vld [vmem:[%s5263_s1 + $0x23] ss:$8 sm:$0xf]  ;;  %v537_v42 = vrot.slane %v3421_v43, %v3728_v20 }
 0x1ae   :  { %v391_v29 = vpack.c.bf16 %v387_v10, %v383_v2  ;;  %v406_v26 = vpop.permute.xlu0 %405  ;;  %1038 = vrot.lane.b32.xlu1 %v3785_v31, %s3264_s12  ;;  %v394_v37 = vpack.c.bf16 %v390_v8, %v386_v24  ;;  %v448_v36 = vmul.f32 %v434_v33, %v420_v46  ;;  %v498_v3 = vrot.slane %v3152_v49, %v3728_v20 }
 0x1af   :  { %v421_v30 = vsel %vm415_vm5, %v3626_v50, %v406_v26  ;;  %v419_v9 = vsel %vm415_vm5, %v406_v26, %v3634_v52  ;;  %v449_v46 = vmul.f32 %v438_v27, %v418_v41 }
 0x1b0   :  { %v452_v28 = vmul.f32 %v434_v33, %v421_v30  ;;  %1092 = vrot.lane.b32.xlu0 %v3738_v4, %s3265_s3  ;;  %878 = vmatpush1.bf16.msra.mxu0 %v391_v29  ;;  %v412_v45 = vpop.permute.xlu1 %411  ;;  %v453_v38 = vmul.f32 %v438_v27, %v419_v9  ;;  %v3873_v29 = vmul.f32 %v537_v42, %v3502_v19 }
 0x1b1   :  { %918 = vmatprep.subr.bf16.mxu1 %v394_v37  ;;  %v416_v15 = vsel %vm415_vm5, %v3632_v51, %v412_v45  ;;  %v422_v25 = vsel %vm415_vm5, %v412_v45, %v3622_v48  ;;  %v494_v19 = vrot.slane %v3152_v49, %v3412_v40  ;;  %v502_v27 = vrot.slane %v3152_v49, %v3409_v39 }
 0x1b2   :  { %919 = vmatpush1.bf16.msra.mxu1 %v393_v14  ;;  %v414_v35 = vpop.permute.xlu0 %413  ;;  %1094 = vrot.lane.b32.xlu1 %v3747_v44, %s3265_s3  ;;  %v456_v2 = vpack.c.bf16 %v452_v28, %v448_v36  ;;  %v447_v24 = vmul.f32 %v430_v32, %v422_v25  ;;  %v450_v10 = vmul.f32 %v442_v21, %v416_v15 }
 0x1b3   :  { %v417_v48 = vsel %vm415_vm5, %v3634_v52, %v414_v35  ;;  %v423_v51 = vsel %vm415_vm5, %v414_v35, %v3626_v50  ;;  %v545_v52 = vrot.slane %v3421_v43, %v3745_v13  ;;  %v457_v14 = vpack.c.bf16 %v453_v38, %v449_v46  ;;  %v3154_v35 = vld [vmem:[%s5263_s1 + $0x25] ss:$8 sm:$0xf] }
 0x1b4   :  { %v451_v8 = vmul.f32 %v430_v32, %v423_v51  ;;  %v454_v7 = vmul.f32 %v442_v21, %v417_v48  ;;  %1100 = vrot.lane.b32.xlu0 %v3768_v47, %s3265_s3  ;;  %v468_v33 = vpop.permute.xlu1 %467  ;;  %879 = vmatprep.subr.bf16.mxu0 %v456_v2  ;;  %v506_v21 = vrot.slane %v3152_v49, %v3745_v13 }
 0x1b5   :  { %v484_v26 = vsel %vm479_vm6, %v3640_v53, %v468_v33  ;;  %v3888_v43 = vmul.f32 %v545_v52, %v3511_v23  ;;  %v482_v25 = vsel %vm479_vm6, %v468_v33, %v3648_v55  ;;  %v551_v49 = vmul.f32 %v537_v42, %v3497_v17 }
 0x1b6   :  { %v455_v50 = vpack.c.bf16 %v451_v8, %v447_v24  ;;  %v470_v37 = vpop.permute.xlu0 %469  ;;  %1102 = vrot.lane.b32.xlu1 %v3785_v31, %s3265_s3  ;;  %v458_v30 = vpack.c.bf16 %v454_v7, %v450_v10  ;;  %v512_v36 = vmul.f32 %v498_v3, %v484_v26  ;;  %v553_v38 = vmul.f32 %v545_v52, %v3507_v22 }
 0x1b7   :  { %v485_v32 = vsel %vm479_vm6, %v3642_v54, %v470_v37  ;;  %v483_v9 = vsel %vm479_vm6, %v470_v37, %v3650_v56  ;;  %v601_v22 = vrot.slane %v3154_v35, %v3728_v20  ;;  %v559_v42 = vpack.c.bf16 %v3873_v29, %v551_v49  ;;  %v3155_v37 = vld [vmem:[%s5263_s1 + $0x40] ss:$8 sm:$0xf] }
 0x1b8   :  { %v516_v28 = vmul.f32 %v498_v3, %v485_v32  ;;  %1156 = vrot.lane.b32.xlu0 %v3738_v4, %s3266_s13  ;;  %880 = vmatpush1.bf16.msra.mxu0 %v455_v50  ;;  %v476_v45 = vpop.permute.xlu1 %475  ;;  %v513_v7 = vmul.f32 %v502_v27, %v482_v25  ;;  %v597_v46 = vrot.slane %v3154_v35, %v3412_v40 }
 0x1b9   :  { %920 = vmatprep.subr.bf16.mxu1 %v458_v30  ;;  %v480_v23 = vsel %vm479_vm6, %v3648_v55, %v476_v45  ;;  %v486_v15 = vsel %vm479_vm6, %v476_v45, %v3640_v53  ;;  %v517_v53 = vmul.f32 %v502_v27, %v483_v9  ;;  %v605_v26 = vrot.slane %v3154_v35, %v3409_v39 }
 0x1ba   :  { %921 = vmatpush1.bf16.msra.mxu1 %v457_v14  ;;  %v478_v41 = vpop.permute.xlu0 %477  ;;  %1158 = vrot.lane.b32.xlu1 %v3747_v44, %s3266_s13  ;;  %v520_v51 = vpack.c.bf16 %v516_v28, %v512_v36  ;;  %v511_v2 = vmul.f32 %v494_v19, %v486_v15  ;;  %v514_v24 = vmul.f32 %v506_v21, %v480_v23 }
 0x1bb   :  { %v481_v55 = vsel %vm479_vm6, %v3650_v56, %v478_v41  ;;  %v487_v48 = vsel %vm479_vm6, %v478_v41, %v3642_v54  ;;  %v561_v56 = vpack.c.bf16 %v3888_v43, %v553_v38  ;;  %v521_v30 = vpack.c.bf16 %v517_v53, %v513_v7 }
 0x1bc   :  { %v515_v10 = vmul.f32 %v494_v19, %v487_v48  ;;  %v518_v8 = vmul.f32 %v506_v21, %v481_v55  ;;  %1164 = vrot.lane.b32.xlu0 %v3768_v47, %s3266_s13  ;;  %v571_v17 = vpop.permute.xlu1 %570  ;;  %881 = vmatprep.subr.bf16.mxu0 %v520_v51  ;;  %v609_v14 = vrot.slane %v3154_v35, %v3745_v13 }
 0x1bd   :  { %v585_v54 = vsel %vm582_vm7, %v571_v17, %v3664_v59  ;;  %v587_v32 = vsel %vm582_vm7, %v3656_v57, %v571_v17  ;;  %v661_v36 = vrot.slane %v3155_v37, %v3412_v40  ;;  %v5303_v38 = vpack.c.bf16 %v3439_v63, %v3437_v62 }
 0x1be   :  { %v519_v33 = vpack.c.bf16 %v515_v10, %v511_v2  ;;  %v573_v3 = vpop.permute.xlu0 %572  ;;  %1166 = vrot.lane.b32.xlu1 %v3785_v31, %s3266_s13  ;;  %v522_v52 = vpack.c.bf16 %v518_v8, %v514_v24  ;;  %v615_v43 = vmul.f32 %v601_v22, %v585_v54  ;;  %v614_v23 = vmul.f32 %v597_v46, %v587_v32  ;;  %s3274_s13 = smov 98  }
 0x1bf   :  { %v586_v50 = vsel %vm582_vm7, %v573_v3, %v3666_v60  ;;  %v588_v29 = vsel %vm582_vm7, %v3658_v58, %v573_v3  ;;  %v5304_v2 = vpack.c.bf16 %v3443_v1, %v3441_v0  ;;  %v669_v8 = vrot.slane %v3155_v37, %v3409_v39 }
 0x1c0   :  { %v619_v19 = vmul.f32 %v601_v22, %v586_v50  ;;  %1220 = vrot.lane.b32.xlu0 %v3738_v4, %s3267_s2  ;;  %882 = vmatpush1.bf16.msra.mxu0 %v519_v33  ;;  %v579_v21 = vpop.permute.xlu1 %578  ;;  %v618_v28 = vmul.f32 %v597_v46, %v588_v29  ;;  %v3156_v33 = vld [vmem:[%s5263_s1 + $0x41] ss:$8 sm:$0xf] }
 0x1c1   :  { %922 = vmatprep.subr.bf16.mxu1 %v522_v52  ;;  %v583_v9 = vsel %vm582_vm7, %v3664_v59, %v579_v21  ;;  %883 = vmatprep.subr.bf16.mxu0 %v559_v42  ;;  %v589_v45 = vsel %vm582_vm7, %v579_v21, %v3656_v57 }
 0x1c2   :  { %923 = vmatpush1.bf16.msra.mxu1 %v521_v30  ;;  %v581_v27 = vpop.permute.xlu0 %580  ;;  %1222 = vrot.lane.b32.xlu1 %v3747_v44, %s3267_s2  ;;  %v623_v57 = vpack.c.bf16 %v619_v19, %v615_v43  ;;  %v616_v25 = vmul.f32 %v605_v26, %v583_v9  ;;  %v617_v53 = vmul.f32 %v609_v14, %v589_v45  ;;  %v5305_v9 = vld [vmem:[#allocation12_spill] sm:$0xff] }
 0x1c3   :  { %v584_v59 = vsel %vm582_vm7, %v3666_v60, %v581_v27  ;;  %v590_v15 = vsel %vm582_vm7, %v581_v27, %v3658_v58  ;;  %924 = vmatprep.subr.bf16.mxu1 %v561_v56  ;;  %v665_v60 = vrot.slane %v3155_v37, %v3728_v20  ;;  %v622_v55 = vpack.c.bf16 %v618_v28, %v614_v23 }
 0x1c4   :  { %v620_v41 = vmul.f32 %v605_v26, %v584_v59  ;;  %v621_v35 = vmul.f32 %v609_v14, %v590_v15  ;;  %1228 = vrot.lane.b32.xlu0 %v3768_v47, %s3267_s2  ;;  %v635_v49 = vpop.permute.xlu1 %634  ;;  %884 = vmatpush1.bf16.msra.mxu0 %v5303_v38  ;;  %v673_v56 = vrot.slane %v3155_v37, %v3745_v13 }
 0x1c5   :  { %v651_v58 = vsel %vm646_vm8, %v3672_v61, %v635_v49  ;;  %885 = vmatprep.subr.bf16.mxu0 %v623_v57  ;;  %v649_v51 = vsel %vm646_vm8, %v635_v49, %v3680_v6  ;;  %v729_v19 = vrot.slane %v3156_v33, %v3728_v20  ;;  %v733_v59 = vrot.slane %v3156_v33, %v3409_v39 }
 0x1c6   :  { %v624_v48 = vpack.c.bf16 %v620_v41, %v616_v25  ;;  %925 = vmatpush1.bf16.msra.mxu1 %v5304_v2  ;;  %v637_v62 = vpop.permute.xlu0 %636  ;;  %1230 = vrot.lane.b32.xlu1 %v3785_v31, %s3267_s2  ;;  %v625_v10 = vpack.c.bf16 %v621_v35, %v617_v53  ;;  %v678_v17 = vmul.f32 %v661_v36, %v651_v58  ;;  %v3157_v35 = vld [vmem:[%s5263_s1 + $0x42] ss:$8 sm:$0xf] }
 0x1c7   :  { %v650_v63 = vsel %vm646_vm8, %v637_v62, %v3682_v11  ;;  %v652_v24 = vsel %vm646_vm8, %v3674_v5, %v637_v62  ;;  %v679_v1 = vmul.f32 %v665_v60, %v649_v51  ;;  %v737_v25 = vrot.slane %v3156_v33, %v3745_v13 }
 0x1c8   :  { %v682_v22 = vmul.f32 %v661_v36, %v652_v24  ;;  %v683_v42 = vmul.f32 %v665_v60, %v650_v63  ;;  %1284 = vrot.lane.b32.xlu0 %v3738_v4, %s3268_s5  ;;  %v643_v0 = vpop.permute.xlu1 %642  ;;  %886 = vmatpush1.bf16.msra.mxu0 %v622_v55  ;;  %v789_v2 = vrot.slane %v3157_v35, %v3412_v40 }
 0x1c9   :  { %926 = vmatprep.subr.bf16.mxu1 %v625_v10  ;;  %v647_v7 = vsel %vm646_vm8, %v3680_v6, %v643_v0  ;;  %v653_v3 = vsel %vm646_vm8, %v643_v0, %v3672_v61  ;;  %v725_v61 = vrot.slane %v3156_v33, %v3412_v40  ;;  %v793_v24 = vrot.slane %v3157_v35, %v3728_v20  ;;  %v5307_v10 = vld [vmem:[#allocation13_spill] sm:$0xff]  ;;  %v5309_v0 = vld [vmem:[#allocation16_spill] sm:$0xff] }
 0x1ca   :  { %v686_v54 = vpack.c.bf16 %v682_v22, %v678_v17  ;;  %927 = vmatpush1.bf16.msra.mxu1 %v624_v48  ;;  %v645_v52 = vpop.permute.xlu0 %644  ;;  %1286 = vrot.lane.b32.xlu1 %v3747_v44, %s3268_s5  ;;  %v687_v50 = vpack.c.bf16 %v683_v42, %v679_v1  ;;  %v680_v29 = vmul.f32 %v669_v8, %v647_v7  ;;  %v5308_v17 = vld [vmem:[#allocation15_spill] sm:$0xff] }
 0x1cb   :  { %v648_v6 = vsel %vm646_vm8, %v3682_v11, %v645_v52  ;;  %v654_v46 = vsel %vm646_vm8, %v645_v52, %v3674_v5  ;;  %v681_v32 = vmul.f32 %v673_v56, %v653_v3 }
 0x1cc   :  { %v684_v26 = vmul.f32 %v669_v8, %v648_v6  ;;  %v685_v37 = vmul.f32 %v673_v56, %v654_v46  ;;  %1292 = vrot.lane.b32.xlu0 %v3768_v47, %s3268_s5  ;;  %v699_v30 = vpop.permute.xlu1 %698  ;;  %887 = vmatprep.subr.bf16.mxu0 %v687_v50  ;;  %v5310_v56 = vld [vmem:[#allocation14_spill] sm:$0xff]  ;;  %v801_v46 = vrot.slane %v3157_v35, %v3745_v13 }
 0x1cd   :  { %v715_v11 = vsel %vm710_vm9, %v3688_v12, %v699_v30  ;;  %v713_v5 = vsel %vm710_vm9, %v699_v30, %v3696_v16  ;;  %888 = vmatpush1.bf16.msra.mxu0 %v686_v54  ;;  %v797_v54 = vrot.slane %v3157_v35, %v3409_v39 }
 0x1ce   :  { %v688_v21 = vpack.c.bf16 %v684_v26, %v680_v29  ;;  %v701_v43 = vpop.permute.xlu0 %700  ;;  %1294 = vrot.lane.b32.xlu1 %v3785_v31, %s3268_s5  ;;  %v689_v45 = vpack.c.bf16 %v685_v37, %v681_v32  ;;  %v742_v27 = vmul.f32 %v725_v61, %v715_v11  ;;  %v743_v57 = vmul.f32 %v729_v19, %v713_v5  ;;  %v5311_v32 = vld [vmem:[#allocation4_spill] sm:$0xff]  ;;  %s3278_s5 = smov 94  }
 0x1cf   :  { %v714_v14 = vsel %vm710_vm9, %v701_v43, %v3698_v18  ;;  %v716_v28 = vsel %vm710_vm9, %v5305_v9, %v701_v43 }
 0x1d0   :  { %v746_v36 = vmul.f32 %v725_v61, %v716_v28  ;;  %v747_v23 = vmul.f32 %v729_v19, %v714_v14  ;;  %1348 = vrot.lane.b32.xlu0 %v3738_v4, %s3255_s22  ;;  %v707_v15 = vpop.permute.xlu1 %706  ;;  %928 = vmatprep.subr.bf16.mxu1 %v689_v45  ;;  %v3250_v28 = vld [vmem:[%s5258_s0] sm:$0xff] }
 0x1d1   :  { %v711_v41 = vsel %vm710_vm9, %v3696_v16, %v707_v15  ;;  %v717_v38 = vsel %vm710_vm9, %v707_v15, %v3688_v12  ;;  %929 = vmatpush1.bf16.msra.mxu1 %v688_v21  ;;  %v5306_v12 = vld [vmem:[#allocation11_spill] sm:$0xff]  ;;  %v5313_v15 = vld [vmem:[#allocation5_spill] sm:$0xff] }
 0x1d2   :  { %v750_v49 = vpack.c.bf16 %v746_v36, %v742_v27  ;;  %v709_v53 = vpop.permute.xlu0 %708  ;;  %1350 = vrot.lane.b32.xlu1 %v3747_v44, %s3255_s22  ;;  %v751_v58 = vpack.c.bf16 %v747_v23, %v743_v57  ;;  %v744_v55 = vmul.f32 %v733_v59, %v711_v41  ;;  %v745_v63 = vmul.f32 %v737_v25, %v717_v38  ;;  %v5312_v27 = vld [vmem:[#allocation7_spill] sm:$0xff] }
 0x1d3   :  { %v712_v16 = vsel %vm710_vm9, %v3698_v18, %v709_v53  ;;  %v718_v60 = vsel %vm710_vm9, %v709_v53, %v5305_v9  ;;  %v3158_v36 = vcombine.low %v5312_v27, %v5312_v27 }
 0x1d4   :  { %v748_v48 = vmul.f32 %v733_v59, %v712_v16  ;;  %v749_v51 = vmul.f32 %v737_v25, %v718_v60  ;;  %1352 = vrot.lane.b32.xlu0 %v5306_v12, %s3255_s22  ;;  %v763_v62 = vpop.permute.xlu1 %762  ;;  %889 = vmatprep.subr.bf16.mxu0 %v751_v58  ;;  %v3251_v25 = vld [vmem:[%s5258_s0 + $0x8] sm:$0xff]  ;;  %v5314_v60 = vld [vmem:[#allocation8_spill] sm:$0xff] }
 0x1d5   :  { %v779_v18 = vsel %vm774_vm10, %v5307_v10, %v763_v62  ;;  %v777_v22 = vsel %vm774_vm10, %v763_v62, %v5308_v17  ;;  %890 = vmatpush1.bf16.msra.mxu0 %v750_v49  ;;  %v5315_v58 = vld [vmem:[#allocation9_spill] sm:$0xff]  ;;  %v5316_v62 = vld [vmem:[#allocation10_spill] sm:$0xff] }
 0x1d6   :  { %v752_v8 = vpack.c.bf16 %v748_v48, %v744_v55  ;;  %v765_v42 = vpop.permute.xlu0 %764  ;;  %1358 = vrot.lane.b32.xlu1 %v3785_v31, %s3255_s22  ;;  %v753_v33 = vpack.c.bf16 %v749_v51, %v745_v63  ;;  %v806_v3 = vmul.f32 %v789_v2, %v779_v18  ;;  %v807_v29 = vmul.f32 %v793_v24, %v777_v22 }
 0x1d7   :  { %v778_v1 = vsel %vm774_vm10, %v765_v42, %v5309_v0  ;;  %v780_v7 = vsel %vm774_vm10, %v5310_v56, %v765_v42 }
 0x1d8   :  { %v810_v52 = vmul.f32 %v789_v2, %v780_v7  ;;  %v811_v6 = vmul.f32 %v793_v24, %v778_v1  ;;  %1356 = vrot.lane.b32.xlu0 %v3768_v47, %s3255_s22  ;;  %v771_v50 = vpop.permute.xlu1 %770  ;;  %930 = vmatprep.subr.bf16.mxu1 %v753_v33 }
 0x1d9   :  { %v775_v26 = vsel %vm774_vm10, %v5308_v17, %v771_v50  ;;  %v781_v37 = vsel %vm774_vm10, %v771_v50, %v5307_v10  ;;  %931 = vmatpush1.bf16.msra.mxu1 %v752_v8 }
 0x1da   :  { %v814_v61 = vpack.c.bf16 %v810_v52, %v806_v3  ;;  %v773_v30 = vpop.permute.xlu0 %772  ;;  %2812 = vrot.lane.b32.xlu1 %v5311_v32, %s3258_s25  ;;  %v815_v21 = vpack.c.bf16 %v811_v6, %v807_v29  ;;  %v808_v5 = vmul.f32 %v797_v54, %v775_v26  ;;  %v809_v43 = vmul.f32 %v801_v46, %v781_v37  ;;  %v986_v3 = vld [vmem:[%s5263_s1] ss:$8 sm:$0xf] }
 0x1db   :  { %v776_v19 = vsel %vm774_vm10, %v5309_v0, %v773_v30  ;;  %v782_v11 = vsel %vm774_vm10, %v773_v30, %v5310_v56  ;;  %v995_v6 = vrot.slane %v986_v3, %v3728_v20  ;;  %v991_v37 = vrot.slane %v986_v3, %v3412_v40 }
 0x1dc   :  { %v812_v14 = vmul.f32 %v797_v54, %v776_v19  ;;  %v813_v9 = vmul.f32 %v801_v46, %v782_v11  ;;  %2810 = vrot.lane.b32.xlu0 %v3250_v28, %s3258_s25  ;;  %v4087_v45 = vpop.permute.xlu1 %963  ;;  %891 = vmatprep.subr.bf16.mxu0 %v815_v21  ;;  %v1003_v19 = vrot.slane %v986_v3, %v3745_v13 }
 0x1dd   :  { %892 = vmatpush1.bf16.msra.mxu0 %v814_v61  ;;  %v999_v21 = vrot.slane %v986_v3, %v3409_v39 }
 0x1de   :  { %v816_v23 = vpack.c.bf16 %v812_v14, %v808_v5  ;;  %v4091_v59 = vpop.permute.xlu0 %961  ;;  %2816 = vrot.lane.b32.xlu1 %v5313_v15, %s3258_s25  ;;  %v817_v57 = vpack.c.bf16 %v813_v9, %v809_v43 }
 0x1e0   :  { %2814 = vrot.lane.b32.xlu0 %v3251_v25, %s3258_s25  ;;  %932 = vmatprep.subr.bf16.mxu1 %v817_v57  ;;  %v4099_v41 = vpop.permute.xlu1 %971 }
 0x1e1   :  { %908 = vmatmul.mubr.bf16.vlgmr.msra.gmra.mrb[12].mxu0 %v3158_v36  ;;  %933 = vmatpush1.bf16.msra.mxu1 %v816_v23 }
 0x1e2   :  { %v4101_v35 = vpop.permute.xlu0 %969  ;;  %2851 = vrot.lane.b32.xlu1 %v5311_v32, %s3259_s26 }
 0x1e4   :  { %2849 = vrot.lane.b32.xlu0 %v3250_v28, %s3259_s26  ;;  %949 = vmatmul.mubr.bf16.vlgmr.msra.gmra.mrb[12].mxu1 %v3158_v36  ;;  %v4106_v49 = vpop.permute.xlu1 %1026  ;;  %v3162_v28 = vld [vmem:[%s5263_s1 + $0x1] ss:$8 sm:$0xf] }
 0x1e6   :  { %v4108_v38 = vpop.permute.xlu0 %1024  ;;  %2855 = vrot.lane.b32.xlu1 %v5313_v15, %s3259_s26 }
 0x1e8   :  { %2853 = vrot.lane.b32.xlu0 %v3251_v25, %s3259_s26  ;;  %v4113_v53 = vpop.permute.xlu1 %1034 }
 0x1ea   :  { %v4115_v16 = vpop.permute.xlu0 %1032  ;;  %1408 = vrot.lane.b32.xlu1 %v5314_v60, %s3256_s23 }
 0x1ec   :  { %1406 = vrot.lane.b32.xlu0 %v5315_v58, %s3256_s23  ;;  %v4121_v55 = vpop.permute.xlu1 %1090 }
 0x1ee   :  { %v4123_v48 = vpop.permute.xlu0 %1088  ;;  %1412 = vrot.lane.b32.xlu1 %v3747_v44, %s3256_s23 }
 0x1f0   :  { %1410 = vrot.lane.b32.xlu0 %v3738_v4, %s3256_s23  ;;  %v4129_v51 = vpop.permute.xlu1 %1098 }
 0x1f2   :  { %v4131_v2 = vpop.permute.xlu0 %1096  ;;  %1416 = vrot.lane.b32.xlu1 %v5316_v62, %s3256_s23 }
 0x1f4   :  { %1414 = vrot.lane.b32.xlu0 %v5306_v12, %s3256_s23  ;;  %v4137_v63 = vpop.permute.xlu1 %1154 }
 0x1f6   :  { %v4139_v24 = vpop.permute.xlu0 %1152  ;;  %1420 = vrot.lane.b32.xlu1 %v3785_v31, %s3256_s23 }
 0x1f8   :  { %1418 = vrot.lane.b32.xlu0 %v3768_v47, %s3256_s23  ;;  %v4145_v10 = vpop.permute.xlu1 %1162 }
 0x1fa   :  { %v4147_v18 = vpop.permute.xlu0 %1160  ;;  %1470 = vrot.lane.b32.xlu1 %v5314_v60, %s3257_s24 }
 0x1fc   :  { %1468 = vrot.lane.b32.xlu0 %v5315_v58, %s3257_s24  ;;  %v4153_v8 = vpop.permute.xlu1 %1218 }
 0x1fe   :  { %v4155_v17 = vpop.permute.xlu0 %1216  ;;  %1474 = vrot.lane.b32.xlu1 %v3747_v44, %s3257_s24 }
 0x200   :  { %1472 = vrot.lane.b32.xlu0 %v3738_v4, %s3257_s24  ;;  %v4161_v22 = vpop.permute.xlu1 %1226 }
 0x202   :  { %v4163_v42 = vpop.permute.xlu0 %1224  ;;  %1478 = vrot.lane.b32.xlu1 %v5316_v62, %s3257_s24 }
 0x204   :  { %1476 = vrot.lane.b32.xlu0 %v5306_v12, %s3257_s24  ;;  %v4169_v0 = vpop.permute.xlu1 %1282 }
 0x206   :  { %v4171_v1 = vpop.permute.xlu0 %1280  ;;  %1482 = vrot.lane.b32.xlu1 %v3785_v31, %s3257_s24 }
 0x208   :  { %1480 = vrot.lane.b32.xlu0 %v3768_v47, %s3257_s24  ;;  %v4177_v56 = vpop.permute.xlu1 %1290 }
 0x20a   :  { %v4179_v7 = vpop.permute.xlu0 %1288  ;;  %1532 = vrot.lane.b32.xlu1 %v5314_v60, %s3269_s17 }
 0x20c   :  { %1530 = vrot.lane.b32.xlu0 %v5315_v58, %s3269_s17  ;;  %v4183_v33 = vpop.permute.xlu1 %1346 }
 0x20e   :  { %v4185_v54 = vpop.permute.xlu0 %1344  ;;  %1536 = vrot.lane.b32.xlu1 %v3747_v44, %s3269_s17 }
 0x210   :  { %1534 = vrot.lane.b32.xlu0 %v3738_v4, %s3269_s17  ;;  %v4192_v52 = vpop.permute.xlu1 %1354 }
 0x212   :  { %v966_v46 = vpop.permute.xlu0 %965  ;;  %1540 = vrot.lane.b32.xlu1 %v5316_v62, %s3269_s17 }
 0x213   :  { %v982_v50 = vsel %vm977_vm11, %v4091_v59, %v966_v46  ;;  %v980_v14 = vsel %vm977_vm11, %v966_v46, %v4101_v35 }
 0x214   :  { %1538 = vrot.lane.b32.xlu0 %v5306_v12, %s3269_s17  ;;  %v968_v29 = vpop.permute.xlu1 %967  ;;  %v1009_v61 = vmul.f32 %v995_v6, %v982_v50  ;;  %v1010_v46 = vmul.f32 %v999_v21, %v980_v14 }
 0x215   :  { %v983_v26 = vsel %vm977_vm11, %v4087_v45, %v968_v29  ;;  %v981_v30 = vsel %vm977_vm11, %v968_v29, %v4099_v41 }
 0x216   :  { %v1013_v32 = vmul.f32 %v995_v6, %v983_v26  ;;  %v974_v11 = vpop.permute.xlu0 %973  ;;  %1544 = vrot.lane.b32.xlu1 %v3785_v31, %s3269_s17  ;;  %v1014_v36 = vmul.f32 %v999_v21, %v981_v30  ;;  %v1059_v6 = vrot.slane %v3162_v28, %v3728_v20  ;;  %v1063_v21 = vrot.slane %v3162_v28, %v3409_v39 }
 0x217   :  { %v978_v5 = vsel %vm977_vm11, %v4101_v35, %v974_v11  ;;  %v984_v43 = vsel %vm977_vm11, %v974_v11, %v4091_v59 }
 0x218   :  { %1542 = vrot.lane.b32.xlu0 %v3768_v47, %s3269_s17  ;;  %v976_v9 = vpop.permute.xlu1 %975  ;;  %v1017_v27 = vpack.c.bf16 %v1013_v32, %v1009_v61  ;;  %v1008_v23 = vmul.f32 %v991_v37, %v984_v43  ;;  %v1011_v57 = vmul.f32 %v1003_v19, %v978_v5  ;;  %v1067_v61 = vrot.slane %v3162_v28, %v3745_v13 }
 0x219   :  { %v979_v59 = vsel %vm977_vm11, %v4099_v41, %v976_v9  ;;  %v985_v15 = vsel %vm977_vm11, %v976_v9, %v4087_v45  ;;  %v1018_v30 = vpack.c.bf16 %v1014_v36, %v1010_v46  ;;  %vm1296_vm11 = vcmp.lt.s32.totalorder %v3711_v34, 18 }
 0x21a   :  { %v1012_v25 = vmul.f32 %v991_v37, %v985_v15  ;;  %v1015_v35 = vmul.f32 %v1003_v19, %v979_v59  ;;  %v1029_v3 = vpop.permute.xlu0 %1028  ;;  %1596 = vrot.lane.b32.xlu1 %v5314_v60, %s3270_s21  ;;  %2642 = vmatprep.subr.bf16.mxu0 %v1017_v27  ;;  %v1055_v37 = vrot.slane %v3162_v28, %v3412_v40  ;;  %v3163_v28 = vld [vmem:[%s5263_s1 + $0x2] ss:$8 sm:$0xf] }
 0x21b   :  { %v1045_v41 = vsel %vm1040_vm12, %v4108_v38, %v1029_v3  ;;  %v1043_v9 = vsel %vm1040_vm12, %v1029_v3, %v4115_v16  ;;  %v1123_v3 = vrot.slane %v3163_v28, %v3728_v20 }
 0x21c   :  { %v1016_v50 = vpack.c.bf16 %v1012_v25, %v1008_v23  ;;  %1594 = vrot.lane.b32.xlu0 %v5315_v58, %s3270_s21  ;;  %v1031_v45 = vpop.permute.xlu1 %1030  ;;  %v1019_v29 = vpack.c.bf16 %v1015_v35, %v1011_v57  ;;  %v1073_v5 = vmul.f32 %v1059_v6, %v1045_v41 }
 0x21d   :  { %v1046_v26 = vsel %vm1040_vm12, %v4106_v49, %v1031_v45  ;;  %v1044_v32 = vsel %vm1040_vm12, %v1031_v45, %v4113_v53  ;;  %v1119_v45 = vrot.slane %v3163_v28, %v3412_v40 }
 0x21e   :  { %v1077_v19 = vmul.f32 %v1059_v6, %v1046_v26  ;;  %v1037_v11 = vpop.permute.xlu0 %1036  ;;  %1600 = vrot.lane.b32.xlu1 %v3747_v44, %s3270_s21  ;;  %2643 = vmatpush1.bf16.msra.mxu0 %v1016_v50  ;;  %v1078_v36 = vmul.f32 %v1063_v21, %v1044_v32  ;;  %v1074_v6 = vmul.f32 %v1063_v21, %v1043_v9 }
 0x21f   :  { %v1041_v43 = vsel %vm1040_vm12, %v4115_v16, %v1037_v11  ;;  %v1047_v14 = vsel %vm1040_vm12, %v1037_v11, %v4108_v38  ;;  %2724 = vmatprep.subr.bf16.mxu1 %v1019_v29  ;;  %v1131_v29 = vrot.slane %v3163_v28, %v3745_v13  ;;  %v1127_v32 = vrot.slane %v3163_v28, %v3409_v39 }
 0x220   :  { %2725 = vmatpush1.bf16.msra.mxu1 %v1018_v30  ;;  %1598 = vrot.lane.b32.xlu0 %v3738_v4, %s3270_s21  ;;  %v1039_v27 = vpop.permute.xlu1 %1038  ;;  %v1081_v23 = vpack.c.bf16 %v1077_v19, %v1073_v5  ;;  %v1072_v59 = vmul.f32 %v1055_v37, %v1047_v14  ;;  %v1075_v15 = vmul.f32 %v1067_v61, %v1041_v43  ;;  %v3164_v14 = vld [vmem:[%s5263_s1 + $0x3] ss:$8 sm:$0xf] }
 0x221   :  { %v1042_v38 = vsel %vm1040_vm12, %v4113_v53, %v1039_v27  ;;  %v1048_v16 = vsel %vm1040_vm12, %v1039_v27, %v4106_v49  ;;  %v1082_v26 = vpack.c.bf16 %v1078_v36, %v1074_v6  ;;  %v1195_v6 = vrot.slane %v3164_v14, %v3745_v13 }
 0x222   :  { %v1076_v57 = vmul.f32 %v1055_v37, %v1048_v16  ;;  %v1079_v25 = vmul.f32 %v1067_v61, %v1042_v38  ;;  %v1093_v35 = vpop.permute.xlu0 %1092  ;;  %1604 = vrot.lane.b32.xlu1 %v5316_v62, %s3270_s21  ;;  %2644 = vmatprep.subr.bf16.mxu0 %v1081_v23  ;;  %vm1836_vm12 = vcmp.lt.s32.totalorder %v3711_v34, 126 }
 0x223   :  { %v1109_v53 = vsel %vm1104_vm13, %v4123_v48, %v1093_v35  ;;  %v1107_v5 = vsel %vm1104_vm13, %v1093_v35, %v4131_v2 }
 0x224   :  { %v1080_v46 = vpack.c.bf16 %v1076_v57, %v1072_v59  ;;  %1602 = vrot.lane.b32.xlu0 %v5306_v12, %s3270_s21  ;;  %v1095_v49 = vpop.permute.xlu1 %1094  ;;  %v1083_v50 = vpack.c.bf16 %v1079_v25, %v1075_v15  ;;  %v1137_v19 = vmul.f32 %v1123_v3, %v1109_v53  ;;  %v1187_v59 = vrot.slane %v3164_v14, %v3728_v20 }
 0x225   :  { %v1110_v41 = vsel %vm1104_vm13, %v4121_v55, %v1095_v49  ;;  %v1108_v37 = vsel %vm1104_vm13, %v1095_v49, %v4129_v51  ;;  %v1138_v15 = vmul.f32 %v1127_v32, %v1107_v5 }
 0x226   :  { %v1141_v61 = vmul.f32 %v1123_v3, %v1110_v41  ;;  %v1101_v30 = vpop.permute.xlu0 %1100  ;;  %1608 = vrot.lane.b32.xlu1 %v3785_v31, %s3270_s21  ;;  %2645 = vmatpush1.bf16.msra.mxu0 %v1080_v46  ;;  %v1142_v9 = vmul.f32 %v1127_v32, %v1108_v37  ;;  %v1183_v3 = vrot.slane %v3164_v14, %v3412_v40 }
 0x227   :  { %v1105_v11 = vsel %vm1104_vm13, %v4131_v2, %v1101_v30  ;;  %v1111_v21 = vsel %vm1104_vm13, %v1101_v30, %v4123_v48  ;;  %2726 = vmatprep.subr.bf16.mxu1 %v1083_v50  ;;  %v1191_v41 = vrot.slane %v3164_v14, %v3409_v39  ;;  %v3165_v30 = vld [vmem:[%s5263_s1 + $0x4] ss:$8 sm:$0xf] }
 0x228   :  { %2727 = vmatpush1.bf16.msra.mxu1 %v1082_v26  ;;  %1606 = vrot.lane.b32.xlu0 %v3768_v47, %s3270_s21  ;;  %v1103_v43 = vpop.permute.xlu1 %1102  ;;  %v1145_v27 = vpack.c.bf16 %v1141_v61, %v1137_v19  ;;  %v1136_v28 = vmul.f32 %v1119_v45, %v1111_v21  ;;  %v1139_v36 = vmul.f32 %v1131_v29, %v1105_v11 }
 0x229   :  { %v1106_v48 = vsel %vm1104_vm13, %v4129_v51, %v1103_v43  ;;  %v1112_v2 = vsel %vm1104_vm13, %v1103_v43, %v4121_v55  ;;  %v1146_v46 = vpack.c.bf16 %v1142_v9, %v1138_v15  ;;  %v1251_v9 = vrot.slane %v3165_v30, %v3728_v20 }
 0x22a   :  { %v1140_v38 = vmul.f32 %v1119_v45, %v1112_v2  ;;  %v1143_v16 = vmul.f32 %v1131_v29, %v1106_v48  ;;  %v1157_v23 = vpop.permute.xlu0 %1156  ;;  %1660 = vrot.lane.b32.xlu1 %v5314_v60, %s3258_s25  ;;  %2646 = vmatprep.subr.bf16.mxu0 %v1145_v27  ;;  %vm1900_vm13 = vcmp.lt.s32.totalorder %v3711_v34, 114 }
 0x22b   :  { %v1173_v51 = vsel %vm1168_vm14, %v4139_v24, %v1157_v23  ;;  %v1171_v37 = vsel %vm1168_vm14, %v1157_v23, %v4147_v18 }
 0x22c   :  { %v1144_v57 = vpack.c.bf16 %v1140_v38, %v1136_v28  ;;  %1658 = vrot.lane.b32.xlu0 %v5315_v58, %s3258_s25  ;;  %v1159_v55 = vpop.permute.xlu1 %1158  ;;  %v1147_v25 = vpack.c.bf16 %v1143_v16, %v1139_v36  ;;  %v1201_v45 = vmul.f32 %v1187_v59, %v1173_v51  ;;  %v1202_v48 = vmul.f32 %v1191_v41, %v1171_v37 }
 0x22d   :  { %v1174_v35 = vsel %vm1168_vm14, %v4137_v63, %v1159_v55  ;;  %v1172_v53 = vsel %vm1168_vm14, %v1159_v55, %v4145_v10  ;;  %v1247_v36 = vrot.slane %v3165_v30, %v3412_v40  ;;  %v1259_v38 = vrot.slane %v3165_v30, %v3745_v13 }
 0x22e   :  { %v1205_v49 = vmul.f32 %v1187_v59, %v1174_v35  ;;  %v1165_v50 = vpop.permute.xlu0 %1164  ;;  %1664 = vrot.lane.b32.xlu1 %v3747_v44, %s3258_s25  ;;  %2647 = vmatpush1.bf16.msra.mxu0 %v1144_v57  ;;  %v1206_v32 = vmul.f32 %v1191_v41, %v1172_v53  ;;  %v1255_v57 = vrot.slane %v3165_v30, %v3409_v39 }
 0x22f   :  { %v1169_v29 = vsel %vm1168_vm14, %v4147_v18, %v1165_v50  ;;  %v1175_v26 = vsel %vm1168_vm14, %v1165_v50, %v4139_v24  ;;  %2728 = vmatprep.subr.bf16.mxu1 %v1147_v25 }
 0x230   :  { %2729 = vmatpush1.bf16.msra.mxu1 %v1146_v46  ;;  %1662 = vrot.lane.b32.xlu0 %v3738_v4, %s3258_s25  ;;  %v1167_v61 = vpop.permute.xlu1 %1166  ;;  %v1209_v19 = vpack.c.bf16 %v1205_v49, %v1201_v45  ;;  %v1200_v11 = vmul.f32 %v1183_v3, %v1175_v26  ;;  %v1203_v21 = vmul.f32 %v1195_v6, %v1169_v29 }
 0x231   :  { %v1170_v24 = vsel %vm1168_vm14, %v4145_v10, %v1167_v61  ;;  %v1176_v18 = vsel %vm1168_vm14, %v1167_v61, %v4137_v63  ;;  %v1210_v16 = vpack.c.bf16 %v1206_v32, %v1202_v48  ;;  %vm2470_vm14 = vcmp.lt.s32.totalorder %v3711_v34, 94 }
 0x232   :  { %v1204_v5 = vmul.f32 %v1183_v3, %v1176_v18  ;;  %v1207_v43 = vmul.f32 %v1195_v6, %v1170_v24  ;;  %v1221_v14 = vpop.permute.xlu0 %1220  ;;  %1668 = vrot.lane.b32.xlu1 %v5316_v62, %s3258_s25  ;;  %2648 = vmatprep.subr.bf16.mxu0 %v1209_v19  ;;  %v3166_v6 = vld [vmem:[%s5263_s1 + $0x5] ss:$8 sm:$0xf]  ;;  %v3167_v19 = vld [vmem:[%s5263_s1 + $0x6] ss:$8 sm:$0xf] }
 0x233   :  { %v1237_v10 = vsel %vm1232_vm15, %v4155_v17, %v1221_v14  ;;  %v1235_v35 = vsel %vm1232_vm15, %v1221_v14, %v4163_v42  ;;  %v1315_v26 = vrot.slane %v3166_v6, %v3728_v20  ;;  %v1311_v24 = vrot.slane %v3166_v6, %v3412_v40 }
 0x234   :  { %v1208_v2 = vpack.c.bf16 %v1204_v5, %v1200_v11  ;;  %1666 = vrot.lane.b32.xlu0 %v5306_v12, %s3258_s25  ;;  %v1223_v63 = vpop.permute.xlu1 %1222  ;;  %v1211_v27 = vpack.c.bf16 %v1207_v43, %v1203_v21  ;;  %v1265_v51 = vmul.f32 %v1251_v9, %v1237_v10  ;;  %v1266_v37 = vmul.f32 %v1255_v57, %v1235_v35 }
 0x235   :  { %v1238_v28 = vsel %vm1232_vm15, %v4153_v8, %v1223_v63  ;;  %v1236_v23 = vsel %vm1232_vm15, %v1223_v63, %v4161_v22  ;;  %v1323_v18 = vrot.slane %v3166_v6, %v3745_v13  ;;  %v1319_v14 = vrot.slane %v3166_v6, %v3409_v39 }
 0x236   :  { %v1269_v59 = vmul.f32 %v1251_v9, %v1238_v28  ;;  %v1229_v15 = vpop.permute.xlu0 %1228  ;;  %1672 = vrot.lane.b32.xlu1 %v3785_v31, %s3258_s25  ;;  %2649 = vmatpush1.bf16.msra.mxu0 %v1208_v2  ;;  %v1270_v46 = vmul.f32 %v1255_v57, %v1236_v23 }
 0x237   :  { %v1233_v55 = vsel %vm1232_vm15, %v4163_v42, %v1229_v15  ;;  %v1239_v25 = vsel %vm1232_vm15, %v1229_v15, %v4155_v17  ;;  %2730 = vmatprep.subr.bf16.mxu1 %v1211_v27  ;;  %v1377_v27 = vrot.slane %v3167_v19, %v3728_v20 }
 0x238   :  { %2731 = vmatpush1.bf16.msra.mxu1 %v1210_v16  ;;  %1670 = vrot.lane.b32.xlu0 %v3768_v47, %s3258_s25  ;;  %v1231_v3 = vpop.permute.xlu1 %1230  ;;  %v1273_v53 = vpack.c.bf16 %v1269_v59, %v1265_v51  ;;  %v1264_v49 = vmul.f32 %v1247_v36, %v1239_v25  ;;  %v1267_v50 = vmul.f32 %v1259_v38, %v1233_v55 }
 0x239   :  { %v1234_v17 = vsel %vm1232_vm15, %v4161_v22, %v1231_v3  ;;  %v1240_v42 = vsel %vm1232_vm15, %v1231_v3, %v4153_v8  ;;  %v1274_v11 = vpack.c.bf16 %v1270_v46, %v1266_v37 }
 0x23a   :  { %v1268_v41 = vmul.f32 %v1247_v36, %v1240_v42  ;;  %v1271_v45 = vmul.f32 %v1259_v38, %v1234_v17  ;;  %v1285_v29 = vpop.permute.xlu0 %1284  ;;  %1760 = vrot.lane.b32.xlu1 %v5314_v60, %s3259_s26  ;;  %2650 = vmatprep.subr.bf16.mxu0 %v1273_v53  ;;  %v1373_v17 = vrot.slane %v3167_v19, %v3412_v40 }
 0x23b   :  { %v1301_v22 = vsel %vm1296_vm11, %v4171_v1, %v1285_v29  ;;  %v1299_v10 = vsel %vm1296_vm11, %v1285_v29, %v4179_v7  ;;  %v1385_v53 = vrot.slane %v3167_v19, %v3745_v13 }
 0x23c   :  { %v1272_v61 = vpack.c.bf16 %v1268_v41, %v1264_v49  ;;  %1758 = vrot.lane.b32.xlu0 %v5315_v58, %s3259_s26  ;;  %v1287_v8 = vpop.permute.xlu1 %1286  ;;  %v1275_v30 = vpack.c.bf16 %v1271_v45, %v1267_v50  ;;  %v1329_v9 = vmul.f32 %v1315_v26, %v1301_v22  ;;  %v1330_v51 = vmul.f32 %v1319_v14, %v1299_v10 }
 0x23d   :  { %v1302_v32 = vsel %vm1296_vm11, %v4169_v0, %v1287_v8  ;;  %v1300_v21 = vsel %vm1296_vm11, %v1287_v8, %v4177_v56  ;;  %v1381_v41 = vrot.slane %v3167_v19, %v3409_v39 }
 0x23e   :  { %v1333_v5 = vmul.f32 %v1315_v26, %v1302_v32  ;;  %v1293_v43 = vpop.permute.xlu0 %1292  ;;  %1764 = vrot.lane.b32.xlu1 %v3747_v44, %s3259_s26  ;;  %2651 = vmatpush1.bf16.msra.mxu0 %v1272_v61  ;;  %v1334_v28 = vmul.f32 %v1319_v14, %v1300_v21 }
 0x23f   :  { %v1297_v48 = vsel %vm1296_vm11, %v4179_v7, %v1293_v43  ;;  %v1303_v2 = vsel %vm1296_vm11, %v1293_v43, %v4171_v1  ;;  %2732 = vmatprep.subr.bf16.mxu1 %v1275_v30 }
 0x240   :  { %2733 = vmatpush1.bf16.msra.mxu1 %v1274_v11  ;;  %1762 = vrot.lane.b32.xlu0 %v3738_v4, %s3259_s26  ;;  %v1295_v63 = vpop.permute.xlu1 %1294  ;;  %v1337_v38 = vpack.c.bf16 %v1333_v5, %v1329_v9  ;;  %v1328_v16 = vmul.f32 %v1311_v24, %v1303_v2  ;;  %v1331_v23 = vmul.f32 %v1323_v18, %v1297_v48 }
 0x241   :  { %v1298_v36 = vsel %vm1296_vm11, %v4177_v56, %v1295_v63  ;;  %v1304_v1 = vsel %vm1296_vm11, %v1295_v63, %v4169_v0  ;;  %v1338_v35 = vpack.c.bf16 %v1334_v28, %v1330_v51  ;;  %v3168_v63 = vld [vmem:[%s5263_s1 + $0x7] ss:$8 sm:$0xf] }
 0x242   :  { %v1332_v7 = vmul.f32 %v1311_v24, %v1304_v1  ;;  %v1335_v59 = vmul.f32 %v1323_v18, %v1298_v36  ;;  %v1349_v15 = vpop.permute.xlu0 %1348  ;;  %1768 = vrot.lane.b32.xlu1 %v5316_v62, %s3259_s26  ;;  %2652 = vmatprep.subr.bf16.mxu0 %v1337_v38  ;;  %v1439_v28 = vrot.slane %v3168_v63, %v3728_v20 }
 0x243   :  { %v1364_v57 = vsel %vm287_vm3, %v4185_v54, %v1349_v15 }
 0x244   :  { %v1336_v56 = vpack.c.bf16 %v1332_v7, %v1328_v16  ;;  %1766 = vrot.lane.b32.xlu0 %v5306_v12, %s3259_s26  ;;  %v1351_v0 = vpop.permute.xlu1 %1350  ;;  %v1339_v55 = vpack.c.bf16 %v1335_v59, %v1331_v23  ;;  %v1391_v3 = vmul.f32 %v1377_v27, %v1364_v57 }
 0x245   :  { %v1365_v25 = vsel %vm287_vm3, %v4183_v33, %v1351_v0  ;;  %v1363_v26 = vsel %vm287_vm3, %v1351_v0, %v4192_v52  ;;  %v1447_v0 = vrot.slane %v3168_v63, %v3745_v13 }
 0x246   :  { %v1395_v6 = vmul.f32 %v1377_v27, %v1365_v25  ;;  %v1353_v46 = vpop.permute.xlu0 %1352  ;;  %1772 = vrot.lane.b32.xlu1 %v3785_v31, %s3259_s26  ;;  %2653 = vmatpush1.bf16.msra.mxu0 %v1336_v56  ;;  %v1396_v18 = vmul.f32 %v1381_v41, %v1363_v26  ;;  %v1435_v56 = vrot.slane %v3168_v63, %v3412_v40 }
 0x247   :  { %2734 = vmatprep.subr.bf16.mxu1 %v1339_v55  ;;  %v1362_v42 = vsel %vm287_vm3, %v1349_v15, %v1353_v46  ;;  %v1443_v25 = vrot.slane %v3168_v63, %v3409_v39 }
 0x248   :  { %2735 = vmatpush1.bf16.msra.mxu1 %v1338_v35  ;;  %1770 = vrot.lane.b32.xlu0 %v3768_v47, %s3259_s26  ;;  %v1359_v49 = vpop.permute.xlu1 %1358  ;;  %v1399_v50 = vpack.c.bf16 %v1395_v6, %v1391_v3  ;;  %s3271_s26 = smov 126   ;;  %v1392_v61 = vmul.f32 %v1381_v41, %v1362_v42 }
 0x249   :  { %v1361_v45 = vsel %vm287_vm3, %v4192_v52, %v1359_v49  ;;  %v1367_v29 = vsel %vm287_vm3, %v1359_v49, %v4183_v33 }
 0x24a   :  { %v1357_v37 = vpop.permute.xlu0 %1356  ;;  %1822 = vrot.lane.b32.xlu1 %v5314_v60, %s3271_s26  ;;  %2654 = vmatprep.subr.bf16.mxu0 %v1399_v50  ;;  %v1394_v30 = vmul.f32 %v1373_v17, %v1367_v29  ;;  %v1397_v32 = vmul.f32 %v1385_v53, %v1361_v45  ;;  %v1400_v5 = vpack.c.bf16 %v1396_v18, %v1392_v61 }
 0x24b   :  { %v1360_v22 = vsel %vm287_vm3, %v1353_v46, %v1357_v37  ;;  %v1366_v8 = vsel %vm287_vm3, %v1357_v37, %v4185_v54  ;;  %vm1546_vm3 = vcmp.lt.s32.totalorder %v3711_v34, 14 }
 0x24c   :  { %v1390_v33 = vmul.f32 %v1373_v17, %v1366_v8  ;;  %v1393_v24 = vmul.f32 %v1385_v53, %v1360_v22  ;;  %1820 = vrot.lane.b32.xlu0 %v5315_v58, %s3271_s26  ;;  %v4466_v52 = vpop.permute.xlu1 %2812  ;;  %v4520_v17 = vld [vmem:[%s5265_s6] sm:$0xff] }
 0x24d   :  { %v3187_v50 = vcombine.high %v4520_v17, %v4520_v17  ;;  %v3169_v22 = vld [vmem:[%s5263_s1 + $0x20] ss:$8 sm:$0xf] }
 0x24e   :  { %v1398_v19 = vpack.c.bf16 %v1394_v30, %v1390_v33  ;;  %v4468_v11 = vpop.permute.xlu0 %2810  ;;  %1826 = vrot.lane.b32.xlu1 %v3747_v44, %s3271_s26  ;;  %v1401_v21 = vpack.c.bf16 %v1397_v32, %v1393_v24  ;;  %v1501_v24 = vrot.slane %v3169_v22, %v3728_v20 }
 0x24f   :  { %2674 = vmatprep.mubr.bf16.mxu0 %v3187_v50  ;;  %2756 = vmatprep.mubr.bf16.mxu1 %v3187_v50 }
 0x250   :  { %1824 = vrot.lane.b32.xlu0 %v3738_v4, %s3271_s26  ;;  %2736 = vmatprep.subr.bf16.mxu1 %v1401_v21  ;;  %v4472_v54 = vpop.permute.xlu1 %2816 }
 0x251   :  { %2655 = vmatpush1.bf16.msra.mxu0 %v1398_v19  ;;  %2737 = vmatpush1.bf16.msra.mxu1 %v1400_v5 }
 0x252   :  { %v4474_v43 = vpop.permute.xlu0 %2814  ;;  %1830 = vrot.lane.b32.xlu1 %v5316_v62, %s3271_s26 }
 0x254   :  { %1828 = vrot.lane.b32.xlu0 %v5306_v12, %s3271_s26  ;;  %v4478_v14 = vpop.permute.xlu1 %2851 }
 0x256   :  { %v4480_v9 = vpop.permute.xlu0 %2849  ;;  %1834 = vrot.lane.b32.xlu1 %v3785_v31, %s3271_s26 }
 0x258   :  { %1832 = vrot.lane.b32.xlu0 %v3768_v47, %s3271_s26  ;;  %v4484_v48 = vpop.permute.xlu1 %2855 }
 0x25a   :  { %v4486_v2 = vpop.permute.xlu0 %2853  ;;  %1886 = vrot.lane.b32.xlu1 %v5314_v60, %s3272_s14 }
 0x25c   :  { %1884 = vrot.lane.b32.xlu0 %v5315_v58, %s3272_s14  ;;  %v1409_v10 = vpop.permute.xlu1 %1408 }
 0x25e   :  { %v1407_v27 = vpop.permute.xlu0 %1406  ;;  %1890 = vrot.lane.b32.xlu1 %v3747_v44, %s3272_s14 }
 0x260   :  { %1888 = vrot.lane.b32.xlu0 %v3738_v4, %s3272_s14  ;;  %v1413_v36 = vpop.permute.xlu1 %1412 }
 0x261   :  { %v1427_v1 = vsel %vm351_vm4, %v1409_v10, %v1413_v36 }
 0x262   :  { %v1411_v38 = vpop.permute.xlu0 %1410  ;;  %1894 = vrot.lane.b32.xlu1 %v5316_v62, %s3272_s14  ;;  %v1457_v23 = vmul.f32 %v1439_v28, %v1427_v1 }
 0x263   :  { %v1426_v16 = vsel %vm351_vm4, %v1407_v27, %v1411_v38 }
 0x264   :  { %v1453_v7 = vmul.f32 %v1439_v28, %v1426_v16  ;;  %1892 = vrot.lane.b32.xlu0 %v5306_v12, %s3272_s14  ;;  %v1417_v59 = vpop.permute.xlu1 %1416  ;;  %v1509_v16 = vrot.slane %v3169_v22, %v3745_v13 }
 0x265   :  { %v1425_v6 = vsel %vm351_vm4, %v1413_v36, %v1417_v59 }
 0x266   :  { %v1415_v15 = vpop.permute.xlu0 %1414  ;;  %1898 = vrot.lane.b32.xlu1 %v3785_v31, %s3272_s14  ;;  %v1461_v57 = vpack.c.bf16 %v1457_v23, %v1453_v7  ;;  %v1458_v61 = vmul.f32 %v1443_v25, %v1425_v6  ;;  %v1505_v7 = vrot.slane %v3169_v22, %v3409_v39 }
 0x267   :  { %v1424_v51 = vsel %vm351_vm4, %v1411_v38, %v1415_v15  ;;  %v1497_v38 = vrot.slane %v3169_v22, %v3412_v40 }
 0x268   :  { %1896 = vrot.lane.b32.xlu0 %v3768_v47, %s3272_s14  ;;  %v1421_v55 = vpop.permute.xlu1 %1420  ;;  %2656 = vmatprep.subr.bf16.mxu0 %v1461_v57  ;;  %v1454_v42 = vmul.f32 %v1443_v25, %v1424_v51 }
 0x269   :  { %v1423_v35 = vsel %vm351_vm4, %v1417_v59, %v1421_v55  ;;  %v1429_v3 = vsel %vm351_vm4, %v1421_v55, %v1409_v10 }
 0x26a   :  { %v1419_v46 = vpop.permute.xlu0 %1418  ;;  %1950 = vrot.lane.b32.xlu1 %v5314_v60, %s3260_s27  ;;  %v1456_v41 = vmul.f32 %v1435_v56, %v1429_v3  ;;  %v1459_v45 = vmul.f32 %v1447_v0, %v1423_v35  ;;  %v1462_v33 = vpack.c.bf16 %v1458_v61, %v1454_v42 }
 0x26b   :  { %v1422_v53 = vsel %vm351_vm4, %v1415_v15, %v1419_v46  ;;  %v1428_v49 = vsel %vm351_vm4, %v1419_v46, %v1407_v27 }
 0x26c   :  { %v1452_v29 = vmul.f32 %v1435_v56, %v1428_v49  ;;  %v1455_v26 = vmul.f32 %v1447_v0, %v1422_v53  ;;  %1948 = vrot.lane.b32.xlu0 %v5315_v58, %s3260_s27  ;;  %v1471_v37 = vpop.permute.xlu1 %1470  ;;  %v3170_v53 = vld [vmem:[%s5263_s1 + $0x21] ss:$8 sm:$0xf] }
 0x26e   :  { %v1460_v8 = vpack.c.bf16 %v1456_v41, %v1452_v29  ;;  %v1469_v30 = vpop.permute.xlu0 %1468  ;;  %1954 = vrot.lane.b32.xlu1 %v3747_v44, %s3260_s27  ;;  %v1463_v32 = vpack.c.bf16 %v1459_v45, %v1455_v26  ;;  %v1565_v29 = vrot.slane %v3170_v53, %v3728_v20 }
 0x270   :  { %1952 = vrot.lane.b32.xlu0 %v3738_v4, %s3260_s27  ;;  %2738 = vmatprep.subr.bf16.mxu1 %v1463_v32  ;;  %v1475_v18 = vpop.permute.xlu1 %1474 }
 0x271   :  { %v1489_v19 = vsel %vm415_vm5, %v1471_v37, %v1475_v18  ;;  %2657 = vmatpush1.bf16.msra.mxu0 %v1460_v8  ;;  %2739 = vmatpush1.bf16.msra.mxu1 %v1462_v33 }
 0x272   :  { %v1473_v21 = vpop.permute.xlu0 %1472  ;;  %1958 = vrot.lane.b32.xlu1 %v5316_v62, %s3260_s27  ;;  %v1519_v10 = vmul.f32 %v1501_v24, %v1489_v19  ;;  %v1561_v19 = vrot.slane %v3170_v53, %v3412_v40 }
 0x273   :  { %v1488_v5 = vsel %vm415_vm5, %v1469_v30, %v1473_v21 }
 0x274   :  { %v1515_v63 = vmul.f32 %v1501_v24, %v1488_v5  ;;  %1956 = vrot.lane.b32.xlu0 %v5306_v12, %s3260_s27  ;;  %v1479_v27 = vpop.permute.xlu1 %1478 }
 0x275   :  { %v1487_v57 = vsel %vm415_vm5, %v1475_v18, %v1479_v27 }
 0x276   :  { %v1477_v28 = vpop.permute.xlu0 %1476  ;;  %1962 = vrot.lane.b32.xlu1 %v3785_v31, %s3260_s27  ;;  %v1523_v36 = vpack.c.bf16 %v1519_v10, %v1515_v63  ;;  %v1520_v42 = vmul.f32 %v1505_v7, %v1487_v57  ;;  %v1569_v10 = vrot.slane %v3170_v53, %v3409_v39 }
 0x277   :  { %v1486_v1 = vsel %vm415_vm5, %v1473_v21, %v1477_v28  ;;  %v1573_v21 = vrot.slane %v3170_v53, %v3745_v13 }
 0x278   :  { %1960 = vrot.lane.b32.xlu0 %v3768_v47, %s3260_s27  ;;  %v1483_v23 = vpop.permute.xlu1 %1482  ;;  %2658 = vmatprep.subr.bf16.mxu0 %v1523_v36  ;;  %v1516_v56 = vmul.f32 %v1505_v7, %v1486_v1 }
 0x279   :  { %v1485_v59 = vsel %vm415_vm5, %v1479_v27, %v1483_v23  ;;  %v1491_v15 = vsel %vm415_vm5, %v1483_v23, %v1471_v37 }
 0x27a   :  { %v1481_v51 = vpop.permute.xlu0 %1480  ;;  %2012 = vrot.lane.b32.xlu1 %v5314_v60, %s3261_s28  ;;  %v1518_v25 = vmul.f32 %v1497_v38, %v1491_v15  ;;  %v1521_v35 = vmul.f32 %v1509_v16, %v1485_v59  ;;  %v1524_v45 = vpack.c.bf16 %v1520_v42, %v1516_v56  ;;  %v3171_v56 = vld [vmem:[%s5263_s1 + $0x22] ss:$8 sm:$0xf] }
 0x27b   :  { %v1484_v0 = vsel %vm415_vm5, %v1477_v28, %v1481_v51  ;;  %v1490_v55 = vsel %vm415_vm5, %v1481_v51, %v1469_v30  ;;  %vm1610_vm5 = vcmp.lt.s32.totalorder %v3711_v34, 2 }
 0x27c   :  { %v1514_v3 = vmul.f32 %v1497_v38, %v1490_v55  ;;  %v1517_v6 = vmul.f32 %v1509_v16, %v1484_v0  ;;  %2010 = vrot.lane.b32.xlu0 %v5315_v58, %s3261_s28  ;;  %v1533_v46 = vpop.permute.xlu1 %1532 }
 0x27e   :  { %v1522_v49 = vpack.c.bf16 %v1518_v25, %v1514_v3  ;;  %v1531_v50 = vpop.permute.xlu0 %1530  ;;  %2016 = vrot.lane.b32.xlu1 %v3747_v44, %s3261_s28  ;;  %v1525_v41 = vpack.c.bf16 %v1521_v35, %v1517_v6  ;;  %v1629_v3 = vrot.slane %v3171_v56, %v3728_v20 }
 0x280   :  { %2014 = vrot.lane.b32.xlu0 %v3738_v4, %s3261_s28  ;;  %2740 = vmatprep.subr.bf16.mxu1 %v1525_v41  ;;  %v1537_v26 = vpop.permute.xlu1 %1536 }
 0x281   :  { %v1552_v37 = vsel %vm1546_vm3, %v1533_v46, %v1537_v26  ;;  %2659 = vmatpush1.bf16.msra.mxu0 %v1522_v49  ;;  %2741 = vmatpush1.bf16.msra.mxu1 %v1524_v45 }
 0x282   :  { %v1535_v61 = vpop.permute.xlu0 %1534  ;;  %2020 = vrot.lane.b32.xlu1 %v5316_v62, %s3261_s28  ;;  %v1583_v8 = vmul.f32 %v1565_v29, %v1552_v37  ;;  %v1625_v37 = vrot.slane %v3171_v56, %v3412_v40 }
 0x283   :  { %v1551_v22 = vsel %vm1546_vm3, %v1531_v50, %v1535_v61 }
 0x284   :  { %v1579_v30 = vmul.f32 %v1565_v29, %v1551_v22  ;;  %2018 = vrot.lane.b32.xlu0 %v5306_v12, %s3261_s28  ;;  %v1541_v32 = vpop.permute.xlu1 %1540 }
 0x285   :  { %v1550_v28 = vsel %vm1546_vm3, %v1537_v26, %v1541_v32 }
 0x286   :  { %v1539_v33 = vpop.permute.xlu0 %1538  ;;  %2024 = vrot.lane.b32.xlu1 %v3785_v31, %s3261_s28  ;;  %v1587_v24 = vpack.c.bf16 %v1583_v8, %v1579_v30  ;;  %v1584_v51 = vmul.f32 %v1569_v10, %v1550_v28  ;;  %v1633_v8 = vrot.slane %v3171_v56, %v3409_v39 }
 0x287   :  { %v1549_v18 = vsel %vm1546_vm3, %v1535_v61, %v1539_v33  ;;  %v1637_v61 = vrot.slane %v3171_v56, %v3745_v13 }
 0x288   :  { %2022 = vrot.lane.b32.xlu0 %v3768_v47, %s3261_s28  ;;  %v1545_v5 = vpop.permute.xlu1 %1544  ;;  %2660 = vmatprep.subr.bf16.mxu0 %v1587_v24  ;;  %v1580_v1 = vmul.f32 %v1569_v10, %v1549_v18 }
 0x289   :  { %v1548_v63 = vsel %vm1546_vm3, %v1541_v32, %v1545_v5  ;;  %v1554_v27 = vsel %vm1546_vm3, %v1545_v5, %v1533_v46 }
 0x28a   :  { %v1543_v36 = vpop.permute.xlu0 %1542  ;;  %2074 = vrot.lane.b32.xlu1 %v5314_v60, %s3262_s29  ;;  %v1582_v23 = vmul.f32 %v1561_v19, %v1554_v27  ;;  %v1585_v7 = vmul.f32 %v1573_v21, %v1548_v63  ;;  %v1588_v35 = vpack.c.bf16 %v1584_v51, %v1580_v1  ;;  %v3172_v1 = vld [vmem:[%s5263_s1 + $0x23] ss:$8 sm:$0xf] }
 0x28b   :  { %v1547_v38 = vsel %vm1546_vm3, %v1539_v33, %v1543_v36  ;;  %v1553_v16 = vsel %vm1546_vm3, %v1543_v36, %v1531_v50 }
 0x28c   :  { %v1578_v59 = vmul.f32 %v1561_v19, %v1553_v16  ;;  %v1581_v15 = vmul.f32 %v1573_v21, %v1547_v38  ;;  %2072 = vrot.lane.b32.xlu0 %v5315_v58, %s3262_s29  ;;  %v1597_v57 = vpop.permute.xlu1 %1596 }
 0x28e   :  { %v1586_v0 = vpack.c.bf16 %v1582_v23, %v1578_v59  ;;  %v1595_v55 = vpop.permute.xlu0 %1594  ;;  %2078 = vrot.lane.b32.xlu1 %v3747_v44, %s3262_s29  ;;  %v1589_v25 = vpack.c.bf16 %v1585_v7, %v1581_v15  ;;  %v1691_v59 = vrot.slane %v3172_v1, %v3728_v20 }
 0x290   :  { %2076 = vrot.lane.b32.xlu0 %v3738_v4, %s3262_s29  ;;  %2742 = vmatprep.subr.bf16.mxu1 %v1589_v25  ;;  %v1601_v6 = vpop.permute.xlu1 %1600 }
 0x291   :  { %v1616_v46 = vsel %vm1610_vm5, %v1597_v57, %v1601_v6  ;;  %2661 = vmatpush1.bf16.msra.mxu0 %v1586_v0  ;;  %2743 = vmatpush1.bf16.msra.mxu1 %v1588_v35 }
 0x292   :  { %v1599_v42 = vpop.permute.xlu0 %1598  ;;  %2082 = vrot.lane.b32.xlu1 %v5316_v62, %s3262_s29  ;;  %v1647_v49 = vmul.f32 %v1629_v3, %v1616_v46 }
 0x293   :  { %v1615_v53 = vsel %vm1610_vm5, %v1595_v55, %v1599_v42 }
 0x294   :  { %v1643_v50 = vmul.f32 %v1629_v3, %v1615_v53  ;;  %2080 = vrot.lane.b32.xlu0 %v5306_v12, %s3262_s29  ;;  %v1605_v41 = vpop.permute.xlu1 %1604  ;;  %v1699_v53 = vrot.slane %v3172_v1, %v3745_v13 }
 0x295   :  { %v1614_v33 = vsel %vm1610_vm5, %v1601_v6, %v1605_v41  ;;  %v3173_v6 = vld [vmem:[%s5263_s1 + $0x24] ss:$8 sm:$0xf] }
 0x296   :  { %v1603_v45 = vpop.permute.xlu0 %1602  ;;  %2086 = vrot.lane.b32.xlu1 %v3785_v31, %s3262_s29  ;;  %v1651_v29 = vpack.c.bf16 %v1647_v49, %v1643_v50  ;;  %v1648_v36 = vmul.f32 %v1633_v8, %v1614_v33  ;;  %v1695_v50 = vrot.slane %v3172_v1, %v3409_v39 }
 0x297   :  { %v1613_v26 = vsel %vm1610_vm5, %v1599_v42, %v1603_v45  ;;  %v1687_v42 = vrot.slane %v3172_v1, %v3412_v40 }
 0x298   :  { %2084 = vrot.lane.b32.xlu0 %v3768_v47, %s3262_s29  ;;  %v1609_v22 = vpop.permute.xlu1 %1608  ;;  %2662 = vmatprep.subr.bf16.mxu0 %v1651_v29  ;;  %v1644_v18 = vmul.f32 %v1633_v8, %v1613_v26  ;;  %v1729_v29 = vrot.slane %v3173_v6, %v3728_v20 }
 0x299   :  { %v1612_v30 = vsel %vm1610_vm5, %v1605_v41, %v1609_v22  ;;  %v1618_v32 = vsel %vm1610_vm5, %v1609_v22, %v1597_v57 }
 0x29a   :  { %v1607_v24 = vpop.permute.xlu0 %1606  ;;  %2136 = vrot.lane.b32.xlu1 %v5314_v60, %s3273_s11  ;;  %v1646_v5 = vmul.f32 %v1625_v37, %v1618_v32  ;;  %v1649_v10 = vmul.f32 %v1637_v61, %v1612_v30  ;;  %v1652_v7 = vpack.c.bf16 %v1648_v36, %v1644_v18  ;;  %v1747_v32 = vmul.f32 %v1729_v29, %v3747_v44 }
 0x29b   :  { %v1611_v19 = vsel %vm1610_vm5, %v1603_v45, %v1607_v24  ;;  %v1617_v21 = vsel %vm1610_vm5, %v1607_v24, %v1595_v55 }
 0x29c   :  { %v1642_v63 = vmul.f32 %v1625_v37, %v1617_v21  ;;  %v1645_v27 = vmul.f32 %v1637_v61, %v1611_v19  ;;  %2134 = vrot.lane.b32.xlu0 %v5315_v58, %s3273_s11  ;;  %v1661_v28 = vpop.permute.xlu1 %1660  ;;  %v1737_v61 = vrot.slane %v3173_v6, %v3745_v13 }
 0x29e   :  { %v1650_v38 = vpack.c.bf16 %v1646_v5, %v1642_v63  ;;  %v1659_v16 = vpop.permute.xlu0 %1658  ;;  %2140 = vrot.lane.b32.xlu1 %v3747_v44, %s3273_s11  ;;  %v1653_v23 = vpack.c.bf16 %v1649_v10, %v1645_v27  ;;  %v1749_v10 = vmul.f32 %v1737_v61, %v3785_v31  ;;  %v1725_v63 = vrot.slane %v3173_v6, %v3412_v40 }
 0x29f   :  { %v1733_v27 = vrot.slane %v3173_v6, %v3409_v39 }
 0x2a0   :  { %2138 = vrot.lane.b32.xlu0 %v3738_v4, %s3273_s11  ;;  %2744 = vmatprep.subr.bf16.mxu1 %v1653_v23  ;;  %v1665_v15 = vpop.permute.xlu1 %1664  ;;  %v1745_v23 = vmul.f32 %v1737_v61, %v3768_v47 }
 0x2a1   :  { %v1679_v57 = vsel %vm479_vm6, %v1661_v28, %v1665_v15  ;;  %2663 = vmatpush1.bf16.msra.mxu0 %v1650_v38  ;;  %2745 = vmatpush1.bf16.msra.mxu1 %v1652_v7  ;;  %v1743_v38 = vmul.f32 %v1729_v29, %v3738_v4  ;;  %v1746_v7 = vmul.f32 %v1725_v63, %v5314_v60 }
 0x2a2   :  { %v1663_v51 = vpop.permute.xlu0 %1662  ;;  %2144 = vrot.lane.b32.xlu1 %v5316_v62, %s3273_s11  ;;  %v1709_v0 = vmul.f32 %v1691_v59, %v1679_v57 }
 0x2a3   :  { %v1678_v56 = vsel %vm479_vm6, %v1659_v16, %v1663_v51 }
 0x2a4   :  { %v1705_v55 = vmul.f32 %v1691_v59, %v1678_v56  ;;  %2142 = vrot.lane.b32.xlu0 %v5306_v12, %s3273_s11  ;;  %v1669_v25 = vpop.permute.xlu1 %1668  ;;  %v1748_v59 = vmul.f32 %v1733_v27, %v5316_v62  ;;  %v1753_v56 = vpack.c.bf16 %v1749_v10, %v1745_v23 }
 0x2a5   :  { %v1677_v26 = vsel %vm479_vm6, %v1665_v15, %v1669_v25  ;;  %v3174_v15 = vld [vmem:[%s5263_s1 + $0x25] ss:$8 sm:$0xf] }
 0x2a6   :  { %v1667_v35 = vpop.permute.xlu0 %1666  ;;  %2148 = vrot.lane.b32.xlu1 %v3785_v31, %s3273_s11  ;;  %v1713_v3 = vpack.c.bf16 %v1709_v0, %v1705_v55  ;;  %v1710_v5 = vmul.f32 %v1695_v50, %v1677_v26  ;;  %v1742_v0 = vmul.f32 %v1725_v63, %v5315_v58  ;;  %v1744_v55 = vmul.f32 %v1733_v27, %v5306_v12 }
 0x2a7   :  { %v1676_v46 = vsel %vm479_vm6, %v1663_v51, %v1667_v35  ;;  %v1751_v51 = vpack.c.bf16 %v1747_v32, %v1743_v38 }
 0x2a8   :  { %2146 = vrot.lane.b32.xlu0 %v3768_v47, %s3273_s11  ;;  %v1673_v49 = vpop.permute.xlu1 %1672  ;;  %2664 = vmatprep.subr.bf16.mxu0 %v1713_v3  ;;  %v1706_v22 = vmul.f32 %v1695_v50, %v1676_v46  ;;  %v1750_v6 = vpack.c.bf16 %v1746_v7, %v1742_v0  ;;  %v1752_v46 = vpack.c.bf16 %v1748_v59, %v1744_v55  ;;  %s3277_s11 = smov 95  }
 0x2a9   :  { %v1675_v41 = vsel %vm479_vm6, %v1669_v25, %v1673_v49  ;;  %v1681_v45 = vsel %vm479_vm6, %v1673_v49, %v1661_v28  ;;  %v1791_v49 = vrot.slane %v3174_v15, %v3728_v20 }
 0x2aa   :  { %v1671_v37 = vpop.permute.xlu0 %1670  ;;  %2200 = vrot.lane.b32.xlu1 %v5314_v60, %s3274_s13  ;;  %v1708_v33 = vmul.f32 %v1687_v42, %v1681_v45  ;;  %v1711_v24 = vmul.f32 %v1699_v53, %v1675_v41  ;;  %v5317_v41 = vld [vmem:[#allocation6_spill] sm:$0xff] }
 0x2ab   :  { %v1674_v8 = vsel %vm479_vm6, %v1667_v35, %v1671_v37  ;;  %v1680_v30 = vsel %vm479_vm6, %v1671_v37, %v1659_v16  ;;  %v1714_v16 = vpack.c.bf16 %v1710_v5, %v1706_v22  ;;  %v1787_v35 = vrot.slane %v3174_v15, %v3412_v40 }
 0x2ac   :  { %v1704_v18 = vmul.f32 %v1687_v42, %v1680_v30  ;;  %v1707_v19 = vmul.f32 %v1699_v53, %v1674_v8  ;;  %2198 = vrot.lane.b32.xlu0 %v5315_v58, %s3274_s13  ;;  %v4694_v21 = vpop.permute.xlu1 %1760  ;;  %v1795_v8 = vrot.slane %v3174_v15, %v3409_v39 }
 0x2ae   :  { %v1712_v28 = vpack.c.bf16 %v1708_v33, %v1704_v18  ;;  %v4699_v36 = vpop.permute.xlu0 %1758  ;;  %2204 = vrot.lane.b32.xlu1 %v3747_v44, %s3274_s13  ;;  %v1715_v1 = vpack.c.bf16 %v1711_v24, %v1707_v19  ;;  %v1799_v19 = vrot.slane %v3174_v15, %v3745_v13 }
 0x2b0   :  { %2202 = vrot.lane.b32.xlu0 %v3738_v4, %s3274_s13  ;;  %2746 = vmatprep.subr.bf16.mxu1 %v1715_v1  ;;  %v1765_v57 = vpop.permute.xlu1 %1764 }
 0x2b1   :  { %2665 = vmatpush1.bf16.msra.mxu0 %v1712_v28  ;;  %2747 = vmatpush1.bf16.msra.mxu1 %v1714_v16  ;;  %v1779_v42 = vsel %vm582_vm7, %v4694_v21, %v1765_v57 }
 0x2b2   :  { %2666 = vmatprep.subr.bf16.mxu0 %v1751_v51  ;;  %v1763_v25 = vpop.permute.xlu0 %1762  ;;  %2208 = vrot.lane.b32.xlu1 %v5316_v62, %s3274_s13  ;;  %v1808_v32 = vmul.f32 %v1787_v35, %v1779_v42 }
 0x2b3   :  { %v1778_v3 = vsel %vm582_vm7, %v4699_v36, %v1763_v25  ;;  %2748 = vmatprep.subr.bf16.mxu1 %v1753_v56 }
 0x2b4   :  { %v909_v53 = vpop.f32.mrb[12].mxu0  ;;  %2206 = vrot.lane.b32.xlu0 %v5306_v12, %s3274_s13  ;;  %v1769_v50 = vpop.permute.xlu1 %1768  ;;  %v1804_v37 = vmul.f32 %v1787_v35, %v1778_v3 }
 0x2b5   :  { %v910_v45 = vadd.f32 %v909_v53, %v5317_v41  ;;  %v1777_v29 = vsel %vm582_vm7, %v1765_v57, %v1769_v50  ;;  %v911_v26 = vpop.f32.mrb[13].mxu0  ;;  %2667 = vmatpush1.bf16.msra.mxu0 %v1750_v6  ;;  %2749 = vmatpush1.bf16.msra.mxu1 %v1752_v46 }
 0x2b6   :  { %v912_v61 = vadd.f32 %v911_v26, %v5317_v41  ;;  %v1767_v22 = vpop.permute.xlu0 %1766  ;;  %2212 = vrot.lane.b32.xlu1 %v3785_v31, %s3274_s13  ;;  %v913_v30 = vpop.f32.mrb[14].mxu0  ;;  %v1809_v10 = vmul.f32 %v1791_v49, %v1777_v29  ;;  %v1812_v15 = vpack.c.bf16 %v1808_v32, %v1804_v37 }
 0x2b7   :  { %v957_v33 = vmax.f32 %v910_v45, 0.0  ;;  %v1776_v24 = vsel %vm582_vm7, %v1763_v25, %v1767_v22  ;;  %v950_v18 = vpop.f32.mrb[12].mxu1  ;;  %v914_v5 = vpop.f32.mrb[15].mxu0 }
 0x2b8   :  { %v958_v63 = vmax.f32 %v912_v61, 0.0  ;;  %v1805_v27 = vmul.f32 %v1791_v49, %v1776_v24  ;;  %v951_v28 = vadd.f32 %v950_v18, %v5317_v41  ;;  %2210 = vrot.lane.b32.xlu0 %v3768_v47, %s3274_s13  ;;  %v952_v1 = vpop.f32.mrb[13].mxu1  ;;  %v1773_v38 = vpop.permute.xlu1 %1772 }
 0x2b9   :  { %3122 = vst [vmem:[%s5262_s10 + $0x20] sm:$0xff] %v957_v33  ;;  %v953_v16 = vadd.f32 %v952_v1, %v5317_v41  ;;  %v1775_v23 = vsel %vm582_vm7, %v1769_v50, %v1773_v38  ;;  %v1781_v7 = vsel %vm582_vm7, %v1773_v38, %v4694_v21  ;;  %v954_v59 = vpop.f32.mrb[14].mxu1  ;;  %v3175_v41 = vld [vmem:[%s5263_s1 + $0x26] ss:$8 sm:$0xf] }
 0x2ba   :  { %3123 = vst [vmem:[%s5262_s10 + $0x28] sm:$0xff] %v958_v63  ;;  %v959_v57 = vmax.f32 %v951_v28, 0.0  ;;  %v1771_v51 = vpop.permute.xlu0 %1770  ;;  %2264 = vrot.lane.b32.xlu1 %v5314_v60, %s3275_s15  ;;  %v1813_v56 = vpack.c.bf16 %v1809_v10, %v1805_v27  ;;  %v955_v0 = vpop.f32.mrb[15].mxu1  ;;  %v1810_v25 = vmul.f32 %v1795_v8, %v1775_v23  ;;  %v1811_v3 = vmul.f32 %v1799_v19, %v1781_v7 }
 0x2bb   :  { %v960_v55 = vmax.f32 %v953_v16, 0.0  ;;  %v1774_v35 = vsel %vm582_vm7, %v1767_v22, %v1771_v51  ;;  %v1780_v21 = vsel %vm582_vm7, %v1771_v51, %v4699_v36  ;;  %v1855_v26 = vrot.slane %v3175_v41, %v3728_v20 }
 0x2bc   :  { %3124 = vst [vmem:[%s5262_s10 + $0x30] sm:$0xff] %v959_v57  ;;  %v1806_v6 = vmul.f32 %v1795_v8, %v1774_v35  ;;  %v1807_v46 = vmul.f32 %v1799_v19, %v1780_v21  ;;  %2262 = vrot.lane.b32.xlu0 %v5315_v58, %s3275_s15  ;;  %v1823_v42 = vpop.permute.xlu1 %1822  ;;  %2668 = vmatprep.subr.bf16.mxu0 %v1813_v56  ;;  %v3176_v21 = vld [vmem:[%s5263_s1 + $0x27] ss:$8 sm:$0xf] }
 0x2bd   :  { %3125 = vst [vmem:[%s5262_s10 + $0x38] sm:$0xff] %v960_v55  ;;  %2669 = vmatpush1.bf16.msra.mxu0 %v1812_v15  ;;  %v1851_v61 = vrot.slane %v3175_v41, %v3412_v40  ;;  %v1859_v24 = vrot.slane %v3175_v41, %v3409_v39  ;;  %v1863_v5 = vrot.slane %v3175_v41, %v3745_v13 }
 0x2be   :  { %v1814_v53 = vpack.c.bf16 %v1810_v25, %v1806_v6  ;;  %v1821_v49 = vpop.permute.xlu0 %1820  ;;  %2268 = vrot.lane.b32.xlu1 %v3747_v44, %s3275_s15  ;;  %v1815_v36 = vpack.c.bf16 %v1811_v3, %v1807_v46  ;;  %v1919_v46 = vrot.slane %v3176_v21, %v3728_v20 }
 0x2c0   :  { %2266 = vrot.lane.b32.xlu0 %v3738_v4, %s3275_s15  ;;  %2750 = vmatprep.subr.bf16.mxu1 %v1815_v36  ;;  %v1827_v50 = vpop.permute.xlu1 %1826 }
 0x2c1   :  { %2751 = vmatpush1.bf16.msra.mxu1 %v1814_v53  ;;  %v1842_v8 = vsel %vm1836_vm12, %v1823_v42, %v1827_v50  ;;  %v1915_v53 = vrot.slane %v3176_v21, %v3412_v40 }
 0x2c2   :  { %v1825_v45 = vpop.permute.xlu0 %1824  ;;  %2272 = vrot.lane.b32.xlu1 %v5316_v62, %s3275_s15  ;;  %v1872_v63 = vmul.f32 %v1851_v61, %v1842_v8 }
 0x2c3   :  { %v1841_v29 = vsel %vm1836_vm12, %v1821_v49, %v1825_v45 }
 0x2c4   :  { %2270 = vrot.lane.b32.xlu0 %v5306_v12, %s3275_s15  ;;  %v1831_v37 = vpop.permute.xlu1 %1830  ;;  %v1868_v32 = vmul.f32 %v1851_v61, %v1841_v29  ;;  %v1923_v29 = vrot.slane %v3176_v21, %v3409_v39  ;;  %v1927_v61 = vrot.slane %v3176_v21, %v3745_v13 }
 0x2c5   :  { %v1840_v22 = vsel %vm1836_vm12, %v1827_v50, %v1831_v37 }
 0x2c6   :  { %v1829_v30 = vpop.permute.xlu0 %1828  ;;  %2276 = vrot.lane.b32.xlu1 %v3785_v31, %s3275_s15  ;;  %v1873_v18 = vmul.f32 %v1855_v26, %v1840_v22  ;;  %v1876_v16 = vpack.c.bf16 %v1872_v63, %v1868_v32  ;;  %v4847_v63 = vld [vmem:[%s5263_s1 + $0x61] ss:$8 sm:$0xf] }
 0x2c7   :  { %v1839_v33 = vsel %vm1836_vm12, %v1825_v45, %v1829_v30 }
 0x2c8   :  { %v1869_v19 = vmul.f32 %v1855_v26, %v1839_v33  ;;  %2274 = vrot.lane.b32.xlu0 %v3768_v47, %s3275_s15  ;;  %v1835_v10 = vpop.permute.xlu1 %1834 }
 0x2c9   :  { %v1838_v27 = vsel %vm1836_vm12, %v1831_v37, %v1835_v10  ;;  %v1844_v28 = vsel %vm1836_vm12, %v1835_v10, %v1823_v42 }
 0x2ca   :  { %v1833_v1 = vpop.permute.xlu0 %1832  ;;  %2328 = vrot.lane.b32.xlu1 %v5314_v60, %s3276_s20  ;;  %v1877_v38 = vpack.c.bf16 %v1873_v18, %v1869_v19  ;;  %v1874_v23 = vmul.f32 %v1859_v24, %v1838_v27  ;;  %v1875_v15 = vmul.f32 %v1863_v5, %v1844_v28 }
 0x2cb   :  { %v1837_v7 = vsel %vm1836_vm12, %v1829_v30, %v1833_v1  ;;  %v1843_v59 = vsel %vm1836_vm12, %v1833_v1, %v1821_v49 }
 0x2cc   :  { %v1870_v57 = vmul.f32 %v1859_v24, %v1837_v7  ;;  %v1871_v51 = vmul.f32 %v1863_v5, %v1843_v59  ;;  %2326 = vrot.lane.b32.xlu0 %v5315_v58, %s3276_s20  ;;  %v1887_v56 = vpop.permute.xlu1 %1886  ;;  %2670 = vmatprep.subr.bf16.mxu0 %v1877_v38 }
 0x2cd   :  { %2671 = vmatpush1.bf16.msra.mxu0 %v1876_v16  ;;  %v3186_v16 = vcombine.low %v4520_v17, %v4520_v17  ;;  %v2828_v17 = vrot.slane %v4847_v63, %v3412_v40 }
 0x2ce   :  { %v1878_v0 = vpack.c.bf16 %v1874_v23, %v1870_v57  ;;  %v1885_v55 = vpop.permute.xlu0 %1884  ;;  %2332 = vrot.lane.b32.xlu1 %v3747_v44, %s3276_s20  ;;  %v1879_v25 = vpack.c.bf16 %v1875_v15, %v1871_v51  ;;  %v2832_v15 = vrot.slane %v4847_v63, %v3728_v20  ;;  %v3193_v57 = vld [vmem:[%s5263_s1 + $0x62] ss:$8 sm:$0xf]  ;;  %v2820_v51 = vsel %vm479_vm6, %v4468_v11, %v4466_v52 }
 0x2cf   :  { %v2871_v21 = vrot.slane %v3193_v57, %v3728_v20 }
 0x2d0   :  { %2330 = vrot.lane.b32.xlu0 %v3738_v4, %s3276_s20  ;;  %2752 = vmatprep.subr.bf16.mxu1 %v1879_v25  ;;  %v1891_v35 = vpop.permute.xlu1 %1890  ;;  %v2840_v25 = vrot.slane %v4847_v63, %v3745_v13 }
 0x2d1   :  { %2753 = vmatpush1.bf16.msra.mxu1 %v1878_v0  ;;  %v1906_v36 = vsel %vm1900_vm13, %v1887_v56, %v1891_v35  ;;  %v2821_v0 = vsel %vm479_vm6, %v4472_v54, %v4468_v11  ;;  %v4885_v11 = vadd.f32 %v2832_v15, %v2820_v51 }
 0x2d2   :  { %v1889_v3 = vpop.permute.xlu0 %1888  ;;  %2336 = vrot.lane.b32.xlu1 %v5316_v62, %s3276_s20  ;;  %v1936_v8 = vmul.f32 %v1915_v53, %v1906_v36 }
 0x2d3   :  { %v1905_v6 = vsel %vm1900_vm13, %v1885_v55, %v1889_v3 }
 0x2d4   :  { %2334 = vrot.lane.b32.xlu0 %v5306_v12, %s3276_s20  ;;  %v1895_v42 = vpop.permute.xlu1 %1894  ;;  %v1932_v41 = vmul.f32 %v1915_v53, %v1905_v6  ;;  %v2858_v53 = vsel %vm582_vm7, %v4478_v14, %v4486_v2 }
 0x2d5   :  { %v1904_v49 = vsel %vm1900_vm13, %v1891_v35, %v1895_v42  ;;  %v2867_v35 = vrot.slane %v3193_v57, %v3412_v40 }
 0x2d6   :  { %v1893_v50 = vpop.permute.xlu0 %1892  ;;  %2340 = vrot.lane.b32.xlu1 %v3785_v31, %s3276_s20  ;;  %v1937_v26 = vmul.f32 %v1919_v46, %v1904_v49  ;;  %v1940_v18 = vpack.c.bf16 %v1936_v8, %v1932_v41  ;;  %v2845_v49 = vadd.f32 %v2828_v17, %v2821_v0 }
 0x2d7   :  { %v1903_v45 = vsel %vm1900_vm13, %v1889_v3, %v1893_v50  ;;  %v3177_v3 = vld [vmem:[%s5263_s1 + $0x40] ss:$8 sm:$0xf] }
 0x2d8   :  { %v1933_v37 = vmul.f32 %v1919_v46, %v1903_v45  ;;  %2338 = vrot.lane.b32.xlu0 %v3768_v47, %s3276_s20  ;;  %v1899_v22 = vpop.permute.xlu1 %1898  ;;  %v2879_v46 = vrot.slane %v3193_v57, %v3745_v13  ;;  %v2818_v45 = vsel %vm479_vm6, %v4474_v43, %v4472_v54  ;;  %v2860_v54 = vsel %vm582_vm7, %v4484_v48, %v4480_v9 }
 0x2d9   :  { %v1902_v30 = vsel %vm1900_vm13, %v1895_v42, %v1899_v22  ;;  %v1908_v32 = vsel %vm1900_vm13, %v1899_v22, %v1887_v56  ;;  %v2875_v42 = vrot.slane %v3193_v57, %v3409_v39  ;;  %v2885_v22 = vadd.f32 %v2871_v21, %v2858_v53 }
 0x2da   :  { %v1897_v33 = vpop.permute.xlu0 %1896  ;;  %2392 = vrot.lane.b32.xlu1 %v5314_v60, %s3277_s11  ;;  %v1941_v24 = vpack.c.bf16 %v1937_v26, %v1933_v37  ;;  %v1938_v19 = vmul.f32 %v1923_v29, %v1902_v30  ;;  %v1939_v27 = vmul.f32 %v1927_v61, %v1908_v32  ;;  %v1977_v26 = vrot.slane %v3177_v3, %v3412_v40 }
 0x2db   :  { %v1901_v5 = vsel %vm1900_vm13, %v1893_v50, %v1897_v33  ;;  %v1907_v10 = vsel %vm1900_vm13, %v1897_v33, %v1885_v55  ;;  %v2836_v55 = vrot.slane %v4847_v63, %v3409_v39  ;;  %v1981_v50 = vrot.slane %v3177_v3, %v3728_v20 }
 0x2dc   :  { %v1934_v28 = vmul.f32 %v1923_v29, %v1901_v5  ;;  %v1935_v1 = vmul.f32 %v1927_v61, %v1907_v10  ;;  %2390 = vrot.lane.b32.xlu0 %v5315_v58, %s3277_s11  ;;  %v1951_v38 = vpop.permute.xlu1 %1950  ;;  %2672 = vmatprep.subr.bf16.mxu0 %v1941_v24  ;;  %v2819_v29 = vsel %vm479_vm6, %v4466_v52, %v4474_v43  ;;  %vm2214_vm6 = vcmp.lt.s32.totalorder %v3711_v34, 98 }
 0x2dd   :  { %2673 = vmatpush1.bf16.msra.mxu0 %v1940_v18  ;;  %v2859_v61 = vsel %vm582_vm7, %v4480_v9, %v4478_v14  ;;  %v2857_v43 = vsel %vm582_vm7, %v4486_v2, %v4484_v48  ;;  %v1985_v32 = vrot.slane %v3177_v3, %v3409_v39  ;;  %v2847_v9 = vadd.f32 %v2836_v55, %v2819_v29 }
 0x2de   :  { %v1942_v23 = vpack.c.bf16 %v1938_v19, %v1934_v28  ;;  %v4853_v7 = vpop.permute.xlu0 %1948  ;;  %2396 = vrot.lane.b32.xlu1 %v3747_v44, %s3277_s11  ;;  %v1943_v59 = vpack.c.bf16 %v1939_v27, %v1935_v1  ;;  %v1989_v18 = vrot.slane %v3177_v3, %v3745_v13  ;;  %v2884_v5 = vadd.f32 %v2867_v35, %v2859_v61 }
 0x2df   :  { %v2887_v63 = vadd.f32 %v2879_v46, %v2860_v54  ;;  %v2886_v27 = vadd.f32 %v2875_v42, %v2857_v43  ;;  %v2889_v28 = vmax.f32 %v4885_v11, %v2885_v22  ;;  %v2848_v0 = vadd.f32 %v2840_v25, %v2818_v45  ;;  %v3178_v42 = vld [vmem:[%s5263_s1 + $0x41] ss:$8 sm:$0xf] }
 0x2e0   :  { %2394 = vrot.lane.b32.xlu0 %v3738_v4, %s3277_s11  ;;  %2754 = vmatprep.subr.bf16.mxu1 %v1943_v59  ;;  %v1955_v56 = vpop.permute.xlu1 %1954  ;;  %v2888_v55 = vmax.f32 %v2845_v49, %v2884_v5  ;;  %v3253_v45 = vld [vmem:[%s5258_s0 + $0x8] sm:$0xff]  ;;  %v2047_v54 = vrot.slane %v3178_v42, %v3409_v39  ;;  %vm2278_vm7 = vcmp.lt.s32.totalorder %v3711_v34, 97 }
 0x2e1   :  { %2755 = vmatpush1.bf16.msra.mxu1 %v1942_v23  ;;  %2675 = vmatmul.mubr.bf16.vlgmr.msra.gmra.mrb[16].mxu0 %v3186_v16  ;;  %v1969_v8 = vsel %vm646_vm8, %v1951_v38, %v1955_v56  ;;  %v2890_v35 = vmax.f32 %v2847_v9, %v2886_v27  ;;  %v2891_v11 = vmax.f32 %v2848_v0, %v2887_v63 }
 0x2e2   :  { %v1953_v6 = vpop.permute.xlu0 %1952  ;;  %2400 = vrot.lane.b32.xlu1 %v5316_v62, %s3277_s11  ;;  %v1998_v10 = vmul.f32 %v1977_v26, %v1969_v8  ;;  %v2896_v46 = vcombine.low %v2888_v55, %v2889_v28 }
 0x2e3   :  { %v1968_v36 = vsel %vm646_vm8, %v4853_v7, %v1953_v6  ;;  %v2897_v25 = vcombine.low %v2890_v35, %v2891_v11 }
 0x2e4   :  { %2398 = vrot.lane.b32.xlu0 %v5306_v12, %s3277_s11  ;;  %v1959_v41 = vpop.permute.xlu1 %1958  ;;  %2757 = vmatmul.mubr.bf16.vlgmr.msra.gmra.mrb[16].mxu1 %v3186_v16  ;;  %v1994_v30 = vmul.f32 %v1977_v26, %v1968_v36  ;;  %v2043_v36 = vrot.slane %v3178_v42, %v3728_v20 }
 0x2e5   :  { %v1967_v37 = vsel %vm646_vm8, %v1955_v56, %v1959_v41  ;;  %v4980_v29 = vmax.f32 %v3253_v45, %v2897_v25 }
 0x2e6   :  { %v1957_v52 = vpop.permute.xlu0 %1956  ;;  %2404 = vrot.lane.b32.xlu1 %v3785_v31, %s3277_s11  ;;  %v1999_v33 = vmul.f32 %v1981_v50, %v1967_v37  ;;  %v2002_v23 = vpack.c.bf16 %v1998_v10, %v1994_v30 }
 0x2e7   :  { %v1966_v14 = vsel %vm646_vm8, %v1953_v6, %v1957_v52 }
 0x2e8   :  { %v1995_v24 = vmul.f32 %v1981_v50, %v1966_v14  ;;  %2402 = vrot.lane.b32.xlu0 %v3768_v47, %s3277_s11  ;;  %v1963_v19 = vpop.permute.xlu1 %1962 }
 0x2e9   :  { %v1965_v48 = vsel %vm646_vm8, %v1959_v41, %v1963_v19  ;;  %v1971_v2 = vsel %vm646_vm8, %v1963_v19, %v1951_v38  ;;  %v4947_v38 = vld [vmem:[%s5265_s6 + $0x8] sm:$0xff]  ;;  %v2039_v41 = vrot.slane %v3178_v42, %v3412_v40 }
 0x2ea   :  { %v1961_v1 = vpop.permute.xlu0 %1960  ;;  %2456 = vrot.lane.b32.xlu1 %v5314_v60, %s3278_s5  ;;  %v2003_v16 = vpack.c.bf16 %v1999_v33, %v1995_v24  ;;  %v2000_v59 = vmul.f32 %v1985_v32, %v1965_v48  ;;  %v2001_v51 = vmul.f32 %v1989_v18, %v1971_v2  ;;  %v3189_v6 = vcombine.high %v4947_v38, %v4947_v38 }
 0x2eb   :  { %v1964_v15 = vsel %vm646_vm8, %v1957_v52, %v1961_v1  ;;  %v1970_v57 = vsel %vm646_vm8, %v1961_v1, %v4853_v7  ;;  %v2051_v52 = vrot.slane %v3178_v42, %v3745_v13  ;;  %vm2342_vm8 = vcmp.lt.s32.totalorder %v3711_v34, 96 }
 0x2ec   :  { %v1996_v17 = vmul.f32 %v1985_v32, %v1964_v15  ;;  %v1997_v56 = vmul.f32 %v1989_v18, %v1970_v57  ;;  %2454 = vrot.lane.b32.xlu0 %v5315_v58, %s3278_s5  ;;  %v2013_v60 = vpop.permute.xlu1 %2012  ;;  %2683 = vmatprep.subr.bf16.mxu0 %v2003_v16 }
 0x2ed   :  { %2684 = vmatpush1.bf16.msra.mxu0 %v2002_v23  ;;  %3190 = vmatprep.mubr.msk.bf16.mxu0 %vm871_vm2, %v3189_v6  ;;  %v3179_v23 = vld [vmem:[%s5263_s1 + $0x42] ss:$8 sm:$0xf] }
 0x2ee   :  { %v2004_v21 = vpack.c.bf16 %v2000_v59, %v1996_v17  ;;  %v2011_v3 = vpop.permute.xlu0 %2010  ;;  %2460 = vrot.lane.b32.xlu1 %v3747_v44, %s3278_s5  ;;  %v2005_v7 = vpack.c.bf16 %v2001_v51, %v1997_v56  ;;  %3191 = vmatprep.mubr.msk.bf16.mxu1 %vm871_vm2, %v3189_v6  ;;  %v2105_v57 = vrot.slane %v3179_v23, %v3728_v20  ;;  %vm2150_vm2 = vcmp.lt.s32.totalorder %v3711_v34, 110 }
 0x2ef   :  { %v2101_v17 = vrot.slane %v3179_v23, %v3412_v40  ;;  %v2113_v11 = vrot.slane %v3179_v23, %v3745_v13 }
 0x2f0   :  { %2458 = vrot.lane.b32.xlu0 %v3738_v4, %s3278_s5  ;;  %2765 = vmatprep.subr.bf16.mxu1 %v2005_v7  ;;  %v2017_v58 = vpop.permute.xlu1 %2016  ;;  %v3252_v4 = vld [vmem:[%s5258_s0] sm:$0xff] }
 0x2f1   :  { %2766 = vmatpush1.bf16.msra.mxu1 %v2004_v21  ;;  %v4967_v53 = vmax.f32 %v3252_v4, %v2896_v46  ;;  %v2031_v26 = vsel %vm710_vm9, %v2013_v60, %v2017_v58  ;;  %v2109_v21 = vrot.slane %v3179_v23, %v3409_v39 }
 0x2f2   :  { %v2015_v44 = vpop.permute.xlu0 %2014  ;;  %2464 = vrot.lane.b32.xlu1 %v5316_v62, %s3278_s5  ;;  %v2060_v14 = vmul.f32 %v2039_v41, %v2031_v26 }
 0x2f3   :  { %v2030_v49 = vsel %vm710_vm9, %v2011_v3, %v2015_v44  ;;  %v2904_v30 = vcombine.high %v4967_v53, %v4967_v53 }
 0x2f4   :  { %2462 = vrot.lane.b32.xlu0 %v5306_v12, %s3278_s5  ;;  %v2021_v50 = vpop.permute.xlu1 %2020  ;;  %v2056_v12 = vmul.f32 %v2039_v41, %v2030_v49 }
 0x2f5   :  { %v2029_v62 = vsel %vm710_vm9, %v2017_v58, %v2021_v50 }
 0x2f6   :  { %v2019_v37 = vpop.permute.xlu0 %2018  ;;  %2468 = vrot.lane.b32.xlu1 %v3785_v31, %s3278_s5  ;;  %v2061_v22 = vmul.f32 %v2043_v36, %v2029_v62  ;;  %v2064_v24 = vpack.c.bf16 %v2060_v14, %v2056_v12 }
 0x2f7   :  { %v2028_v61 = vsel %vm710_vm9, %v2015_v44, %v2019_v37  ;;  %v2620_v44 = vld [vmem:[%s5267_s7] sm:$0xff] }
 0x2f8   :  { %v2057_v8 = vmul.f32 %v2043_v36, %v2028_v61  ;;  %2466 = vrot.lane.b32.xlu0 %v3768_v47, %s3278_s5  ;;  %v2025_v43 = vpop.permute.xlu1 %2024  ;;  %v2905_v47 = vcombine.high %v4980_v29, %v4980_v29 }
 0x2f9   :  { %v2027_v31 = vsel %vm710_vm9, %v2021_v50, %v2025_v43  ;;  %v2033_v32 = vsel %vm710_vm9, %v2025_v43, %v2013_v60 }
 0x2fa   :  { %v2023_v9 = vpop.permute.xlu0 %2022  ;;  %2910 = vrot.lane.b32.xlu1 %v2904_v30, %s3256_s23  ;;  %v2065_v33 = vpack.c.bf16 %v2061_v22, %v2057_v8  ;;  %v2062_v18 = vmul.f32 %v2047_v54, %v2027_v31  ;;  %v2063_v10 = vmul.f32 %v2051_v52, %v2033_v32 }
 0x2fb   :  { %v2026_v19 = vsel %vm710_vm9, %v2019_v37, %v2023_v9  ;;  %v2032_v5 = vsel %vm710_vm9, %v2023_v9, %v2011_v3  ;;  %v3011_v3 = vld [vmem:[%s5266_s9] sm:$0xff] }
 0x2fc   :  { %v2058_v48 = vmul.f32 %v2047_v54, %v2026_v19  ;;  %v2059_v2 = vmul.f32 %v2051_v52, %v2032_v5  ;;  %2908 = vrot.lane.b32.xlu0 %v4967_v53, %s3256_s23  ;;  %v2075_v63 = vpop.permute.xlu1 %2074  ;;  %2685 = vmatprep.subr.bf16.mxu0 %v2065_v33  ;;  %v3180_v52 = vld [vmem:[%s5263_s1 + $0x43] ss:$8 sm:$0xf] }
 0x2fd   :  { %2686 = vmatpush1.bf16.msra.mxu0 %v2064_v24  ;;  %v2169_v14 = vrot.slane %v3180_v52, %v3728_v20  ;;  %v2165_v32 = vrot.slane %v3180_v52, %v3412_v40 }
 0x2fe   :  { %v2066_v27 = vpack.c.bf16 %v2062_v18, %v2058_v48  ;;  %v2073_v28 = vpop.permute.xlu0 %2072  ;;  %2914 = vrot.lane.b32.xlu1 %v2905_v47, %s3256_s23  ;;  %v2067_v1 = vpack.c.bf16 %v2063_v10, %v2059_v2  ;;  %v2173_v10 = vrot.slane %v3180_v52, %v3409_v39  ;;  %v2177_v48 = vrot.slane %v3180_v52, %v3745_v13 }
 0x300   :  { %2912 = vrot.lane.b32.xlu0 %v4980_v29, %s3256_s23  ;;  %2767 = vmatprep.subr.bf16.mxu1 %v2067_v1  ;;  %v2079_v16 = vpop.permute.xlu1 %2078 }
 0x301   :  { %2768 = vmatpush1.bf16.msra.mxu1 %v2066_v27  ;;  %v2093_v60 = vsel %vm774_vm10, %v2075_v63, %v2079_v16 }
 0x302   :  { %v2077_v59 = vpop.permute.xlu0 %2076  ;;  %2949 = vrot.lane.b32.xlu1 %v2904_v30, %s3261_s28  ;;  %v2122_v58 = vmul.f32 %v2101_v17, %v2093_v60 }
 0x303   :  { %v2092_v15 = vsel %vm774_vm10, %v2073_v28, %v2077_v59 }
 0x304   :  { %2947 = vrot.lane.b32.xlu0 %v4967_v53, %s3261_s28  ;;  %v2083_v51 = vpop.permute.xlu1 %2082  ;;  %v2118_v55 = vmul.f32 %v2101_v17, %v2092_v15 }
 0x305   :  { %v2091_v56 = vsel %vm774_vm10, %v2079_v16, %v2083_v51 }
 0x306   :  { %v2081_v0 = vpop.permute.xlu0 %2080  ;;  %2953 = vrot.lane.b32.xlu1 %v2905_v47, %s3261_s28  ;;  %v2123_v7 = vmul.f32 %v2105_v57, %v2091_v56  ;;  %v2126_v36 = vpack.c.bf16 %v2122_v58, %v2118_v55 }
 0x307   :  { %v2090_v35 = vsel %vm774_vm10, %v2077_v59, %v2081_v0 }
 0x308   :  { %v2119_v6 = vmul.f32 %v2105_v57, %v2090_v35  ;;  %2951 = vrot.lane.b32.xlu0 %v4980_v29, %s3261_s28  ;;  %v2087_v46 = vpop.permute.xlu1 %2086 }
 0x309   :  { %v2089_v25 = vsel %vm774_vm10, %v2083_v51, %v2087_v46  ;;  %v2095_v42 = vsel %vm774_vm10, %v2087_v46, %v2075_v63 }
 0x30a   :  { %v2085_v4 = vpop.permute.xlu0 %2084  ;;  %3014 = vperm.xlu1 %3238, %v3011_v3   ;;  %v2127_v49 = vpack.c.bf16 %v2123_v7, %v2119_v6  ;;  %v2124_v50 = vmul.f32 %v2109_v21, %v2089_v25  ;;  %v2125_v45 = vmul.f32 %v2113_v11, %v2095_v42  ;;  %v3181_v3 = vld [vmem:[%s5263_s1 + $0x44] ss:$8 sm:$0xf] }
 0x30b   :  { %v2088_v41 = vsel %vm774_vm10, %v2081_v0, %v2085_v4  ;;  %v2094_v62 = vsel %vm774_vm10, %v2085_v4, %v2073_v28  ;;  %v2229_v58 = vrot.slane %v3181_v3, %v3412_v40  ;;  %vm2406_vm10 = vcmp.lt.s32.totalorder %v3711_v34, 95 }
 0x30c   :  { %v2120_v26 = vmul.f32 %v2109_v21, %v2088_v41  ;;  %v2121_v37 = vmul.f32 %v2113_v11, %v2094_v62  ;;  %2623 = vperm.xlu0 %3237, %v2620_v44   ;;  %v2137_v12 = vpop.permute.xlu1 %2136  ;;  %2687 = vmatprep.subr.bf16.mxu0 %v2127_v49  ;;  %v2233_v11 = vrot.slane %v3181_v3, %v3728_v20 }
 0x30d   :  { %2688 = vmatpush1.bf16.msra.mxu0 %v2126_v36  ;;  %v2237_v41 = vrot.slane %v3181_v3, %v3409_v39  ;;  %v2241_v62 = vrot.slane %v3181_v3, %v3745_v13 }
 0x30e   :  { %v2128_v61 = vpack.c.bf16 %v2124_v50, %v2120_v26  ;;  %v2135_v54 = vpop.permute.xlu0 %2134  ;;  %v2129_v22 = vpack.c.bf16 %v2125_v45, %v2121_v37 }
 0x310   :  { %2769 = vmatprep.subr.bf16.mxu1 %v2129_v22  ;;  %v2141_v8 = vpop.permute.xlu1 %2140 }
 0x311   :  { %2770 = vmatpush1.bf16.msra.mxu1 %v2128_v61  ;;  %v2156_v33 = vsel %vm2150_vm2, %v2137_v12, %v2141_v8 }
 0x312   :  { %v2139_v43 = vpop.permute.xlu0 %2138  ;;  %v2186_v63 = vmul.f32 %v2165_v32, %v2156_v33 }
 0x313   :  { %v2155_v30 = vsel %vm2150_vm2, %v2135_v54, %v2139_v43 }
 0x314   :  { %v2145_v31 = vpop.permute.xlu1 %2144  ;;  %v2182_v24 = vmul.f32 %v2165_v32, %v2155_v30 }
 0x315   :  { %v2154_v9 = vsel %vm2150_vm2, %v2141_v8, %v2145_v31 }
 0x316   :  { %v2143_v47 = vpop.permute.xlu0 %2142  ;;  %v2187_v19 = vmul.f32 %v2169_v14, %v2154_v9  ;;  %v2190_v23 = vpack.c.bf16 %v2186_v63, %v2182_v24 }
 0x317   :  { %v2153_v18 = vsel %vm2150_vm2, %v2139_v43, %v2143_v47 }
 0x318   :  { %v2183_v5 = vmul.f32 %v2169_v14, %v2153_v18  ;;  %v2149_v2 = vpop.permute.xlu1 %2148  ;;  %v3182_v18 = vld [vmem:[%s5263_s1 + $0x45] ss:$8 sm:$0xf] }
 0x319   :  { %v2152_v27 = vsel %vm2150_vm2, %v2145_v31, %v2149_v2  ;;  %v2158_v28 = vsel %vm2150_vm2, %v2149_v2, %v2137_v12  ;;  %v2293_v2 = vrot.slane %v3182_v18, %v3412_v40 }
 0x31a   :  { %v2147_v1 = vpop.permute.xlu0 %2146  ;;  %v2191_v16 = vpack.c.bf16 %v2187_v19, %v2183_v5  ;;  %v2188_v57 = vmul.f32 %v2173_v10, %v2152_v27  ;;  %v2189_v51 = vmul.f32 %v2177_v48, %v2158_v28 }
 0x31b   :  { %v2151_v59 = vsel %vm2150_vm2, %v2143_v47, %v2147_v1  ;;  %v2157_v15 = vsel %vm2150_vm2, %v2147_v1, %v2135_v54 }
 0x31c   :  { %v2184_v17 = vmul.f32 %v2173_v10, %v2151_v59  ;;  %v2185_v56 = vmul.f32 %v2177_v48, %v2157_v15  ;;  %v2201_v60 = vpop.permute.xlu1 %2200  ;;  %2689 = vmatprep.subr.bf16.mxu0 %v2191_v16  ;;  %v2297_v10 = vrot.slane %v3182_v18, %v3728_v20  ;;  %v2301_v15 = vrot.slane %v3182_v18, %v3409_v39 }
 0x31d   :  { %2690 = vmatpush1.bf16.msra.mxu0 %v2190_v23 }
 0x31e   :  { %v2192_v0 = vpack.c.bf16 %v2188_v57, %v2184_v17  ;;  %v2199_v55 = vpop.permute.xlu0 %2198  ;;  %v2193_v35 = vpack.c.bf16 %v2189_v51, %v2185_v56  ;;  %v2305_v57 = vrot.slane %v3182_v18, %v3745_v13 }
 0x320   :  { %2771 = vmatprep.subr.bf16.mxu1 %v2193_v35  ;;  %v2205_v21 = vpop.permute.xlu1 %2204 }
 0x321   :  { %2772 = vmatpush1.bf16.msra.mxu1 %v2192_v0  ;;  %v2220_v42 = vsel %vm2214_vm6, %v2201_v60, %v2205_v21 }
 0x322   :  { %v2203_v7 = vpop.permute.xlu0 %2202  ;;  %v2250_v26 = vmul.f32 %v2229_v58, %v2220_v42 }
 0x323   :  { %v2219_v6 = vsel %vm2214_vm6, %v2199_v55, %v2203_v7 }
 0x324   :  { %v2209_v46 = vpop.permute.xlu1 %2208  ;;  %v2246_v4 = vmul.f32 %v2229_v58, %v2219_v6 }
 0x325   :  { %v2218_v25 = vsel %vm2214_vm6, %v2205_v21, %v2209_v46 }
 0x326   :  { %v2207_v44 = vpop.permute.xlu0 %2206  ;;  %v2251_v36 = vmul.f32 %v2233_v11, %v2218_v25  ;;  %v2254_v22 = vpack.c.bf16 %v2250_v26, %v2246_v4 }
 0x327   :  { %v2217_v49 = vsel %vm2214_vm6, %v2203_v7, %v2207_v44 }
 0x328   :  { %v2247_v50 = vmul.f32 %v2233_v11, %v2217_v49  ;;  %v2213_v45 = vpop.permute.xlu1 %2212  ;;  %v3183_v49 = vld [vmem:[%s5263_s1 + $0x46] ss:$8 sm:$0xf] }
 0x329   :  { %v2216_v37 = vsel %vm2214_vm6, %v2209_v46, %v2213_v45  ;;  %v2222_v12 = vsel %vm2214_vm6, %v2213_v45, %v2201_v60  ;;  %v2357_v45 = vrot.slane %v3183_v49, %v3412_v40 }
 0x32a   :  { %v2211_v61 = vpop.permute.xlu0 %2210  ;;  %v2255_v54 = vpack.c.bf16 %v2251_v36, %v2247_v50  ;;  %v2252_v43 = vmul.f32 %v2237_v41, %v2216_v37  ;;  %v2253_v30 = vmul.f32 %v2241_v62, %v2222_v12 }
 0x32b   :  { %v2215_v8 = vsel %vm2214_vm6, %v2207_v44, %v2211_v61  ;;  %v2221_v52 = vsel %vm2214_vm6, %v2211_v61, %v2199_v55 }
 0x32c   :  { %v2248_v14 = vmul.f32 %v2237_v41, %v2215_v8  ;;  %v2249_v31 = vmul.f32 %v2241_v62, %v2221_v52  ;;  %v2265_v32 = vpop.permute.xlu1 %2264  ;;  %2691 = vmatprep.subr.bf16.mxu0 %v2255_v54  ;;  %v2361_v41 = vrot.slane %v3183_v49, %v3728_v20  ;;  %v2365_v52 = vrot.slane %v3183_v49, %v3409_v39 }
 0x32d   :  { %2692 = vmatpush1.bf16.msra.mxu0 %v2254_v22 }
 0x32e   :  { %v2256_v9 = vpack.c.bf16 %v2252_v43, %v2248_v14  ;;  %v2263_v33 = vpop.permute.xlu0 %2262  ;;  %v2257_v47 = vpack.c.bf16 %v2253_v30, %v2249_v31  ;;  %v2369_v43 = vrot.slane %v3183_v49, %v3745_v13 }
 0x330   :  { %2773 = vmatprep.subr.bf16.mxu1 %v2257_v47  ;;  %v2269_v24 = vpop.permute.xlu1 %2268 }
 0x331   :  { %2774 = vmatpush1.bf16.msra.mxu1 %v2256_v9  ;;  %v2284_v27 = vsel %vm2278_vm7, %v2265_v32, %v2269_v24 }
 0x332   :  { %v2267_v19 = vpop.permute.xlu0 %2266  ;;  %v2314_v17 = vmul.f32 %v2293_v2, %v2284_v27 }
 0x333   :  { %v2283_v5 = vsel %vm2278_vm7, %v2263_v33, %v2267_v19 }
 0x334   :  { %v2273_v48 = vpop.permute.xlu1 %2272  ;;  %v2310_v1 = vmul.f32 %v2293_v2, %v2283_v5 }
 0x335   :  { %v2282_v63 = vsel %vm2278_vm7, %v2269_v24, %v2273_v48 }
 0x336   :  { %v2271_v28 = vpop.permute.xlu0 %2270  ;;  %v2315_v23 = vmul.f32 %v2297_v10, %v2282_v63  ;;  %v2318_v35 = vpack.c.bf16 %v2314_v17, %v2310_v1 }
 0x337   :  { %v2281_v16 = vsel %vm2278_vm7, %v2267_v19, %v2271_v28 }
 0x338   :  { %v2311_v59 = vmul.f32 %v2297_v10, %v2281_v16  ;;  %v2277_v51 = vpop.permute.xlu1 %2276  ;;  %v3184_v16 = vld [vmem:[%s5263_s1 + $0x47] ss:$8 sm:$0xf] }
 0x339   :  { %v2280_v56 = vsel %vm2278_vm7, %v2273_v48, %v2277_v51  ;;  %v2286_v60 = vsel %vm2278_vm7, %v2277_v51, %v2265_v32  ;;  %v2421_v51 = vrot.slane %v3184_v16, %v3412_v40 }
 0x33a   :  { %v2275_v0 = vpop.permute.xlu0 %2274  ;;  %v2319_v55 = vpack.c.bf16 %v2315_v23, %v2311_v59  ;;  %v2316_v7 = vmul.f32 %v2301_v15, %v2280_v56  ;;  %v2317_v6 = vmul.f32 %v2305_v57, %v2286_v60 }
 0x33b   :  { %v2279_v21 = vsel %vm2278_vm7, %v2271_v28, %v2275_v0  ;;  %v2285_v3 = vsel %vm2278_vm7, %v2275_v0, %v2263_v33 }
 0x33c   :  { %v2312_v11 = vmul.f32 %v2301_v15, %v2279_v21  ;;  %v2313_v46 = vmul.f32 %v2305_v57, %v2285_v3  ;;  %v2329_v58 = vpop.permute.xlu1 %2328  ;;  %2693 = vmatprep.subr.bf16.mxu0 %v2319_v55  ;;  %v2425_v15 = vrot.slane %v3184_v16, %v3728_v20  ;;  %v2429_v3 = vrot.slane %v3184_v16, %v3409_v39 }
 0x33d   :  { %2694 = vmatpush1.bf16.msra.mxu0 %v2318_v35 }
 0x33e   :  { %v2320_v25 = vpack.c.bf16 %v2316_v7, %v2312_v11  ;;  %v2327_v42 = vpop.permute.xlu0 %2326  ;;  %v2321_v44 = vpack.c.bf16 %v2317_v6, %v2313_v46  ;;  %v2433_v7 = vrot.slane %v3184_v16, %v3745_v13 }
 0x340   :  { %2775 = vmatprep.subr.bf16.mxu1 %v2321_v44  ;;  %v2333_v4 = vpop.permute.xlu1 %2332 }
 0x341   :  { %2776 = vmatpush1.bf16.msra.mxu1 %v2320_v25  ;;  %v2348_v37 = vsel %vm2342_vm8, %v2329_v58, %v2333_v4 }
 0x342   :  { %v2331_v36 = vpop.permute.xlu0 %2330  ;;  %v2378_v14 = vmul.f32 %v2357_v45, %v2348_v37 }
 0x343   :  { %v2347_v50 = vsel %vm2342_vm8, %v2327_v42, %v2331_v36 }
 0x344   :  { %v2337_v62 = vpop.permute.xlu1 %2336  ;;  %v2374_v61 = vmul.f32 %v2357_v45, %v2347_v50 }
 0x345   :  { %v2346_v26 = vsel %vm2342_vm8, %v2333_v4, %v2337_v62 }
 0x346   :  { %v2335_v12 = vpop.permute.xlu0 %2334  ;;  %v2379_v22 = vmul.f32 %v2361_v41, %v2346_v26  ;;  %v2382_v47 = vpack.c.bf16 %v2378_v14, %v2374_v61 }
 0x347   :  { %v2345_v54 = vsel %vm2342_vm8, %v2331_v36, %v2335_v12 }
 0x348   :  { %v2375_v8 = vmul.f32 %v2361_v41, %v2345_v54  ;;  %v2341_v30 = vpop.permute.xlu1 %2340  ;;  %v3185_v54 = vld [vmem:[%s5263_s1 + $0x60] ss:$8 sm:$0xf] }
 0x349   :  { %v2344_v31 = vsel %vm2342_vm8, %v2337_v62, %v2341_v30  ;;  %v2350_v32 = vsel %vm2342_vm8, %v2341_v30, %v2329_v58  ;;  %v2485_v30 = vrot.slane %v3185_v54, %v3412_v40 }
 0x34a   :  { %v2339_v9 = vpop.permute.xlu0 %2338  ;;  %v2383_v33 = vpack.c.bf16 %v2379_v22, %v2375_v8  ;;  %v2380_v19 = vmul.f32 %v2365_v52, %v2344_v31  ;;  %v2381_v5 = vmul.f32 %v2369_v43, %v2350_v32 }
 0x34b   :  { %v2343_v24 = vsel %vm2342_vm8, %v2335_v12, %v2339_v9  ;;  %v2349_v18 = vsel %vm2342_vm8, %v2339_v9, %v2327_v42 }
 0x34c   :  { %v2376_v10 = vmul.f32 %v2365_v52, %v2343_v24  ;;  %v2377_v48 = vmul.f32 %v2369_v43, %v2349_v18  ;;  %v2393_v2 = vpop.permute.xlu1 %2392  ;;  %2695 = vmatprep.subr.bf16.mxu0 %v2383_v33  ;;  %v2489_v52 = vrot.slane %v3185_v54, %v3728_v20  ;;  %v2493_v18 = vrot.slane %v3185_v54, %v3409_v39 }
 0x34d   :  { %2696 = vmatpush1.bf16.msra.mxu0 %v2382_v47 }
 0x34e   :  { %v2384_v63 = vpack.c.bf16 %v2380_v19, %v2376_v10  ;;  %v2391_v27 = vpop.permute.xlu0 %2390  ;;  %v2385_v28 = vpack.c.bf16 %v2381_v5, %v2377_v48  ;;  %v2497_v19 = vrot.slane %v3185_v54, %v3745_v13 }
 0x350   :  { %2777 = vmatprep.subr.bf16.mxu1 %v2385_v28  ;;  %v2397_v1 = vpop.permute.xlu1 %2396 }
 0x351   :  { %2778 = vmatpush1.bf16.msra.mxu1 %v2384_v63  ;;  %v2412_v56 = vsel %vm2406_vm10, %v2393_v2, %v2397_v1 }
 0x352   :  { %v2395_v23 = vpop.permute.xlu0 %2394  ;;  %v2442_v11 = vmul.f32 %v2421_v51, %v2412_v56 }
 0x353   :  { %v2411_v59 = vsel %vm2406_vm10, %v2391_v27, %v2395_v23 }
 0x354   :  { %v2401_v57 = vpop.permute.xlu1 %2400  ;;  %v2438_v0 = vmul.f32 %v2421_v51, %v2411_v59 }
 0x355   :  { %v2410_v17 = vsel %vm2406_vm10, %v2397_v1, %v2401_v57 }
 0x356   :  { %v2399_v60 = vpop.permute.xlu0 %2398  ;;  %v2443_v35 = vmul.f32 %v2425_v15, %v2410_v17  ;;  %v2446_v44 = vpack.c.bf16 %v2442_v11, %v2438_v0 }
 0x357   :  { %v2409_v55 = vsel %vm2406_vm10, %v2395_v23, %v2399_v60  ;;  %v3188_v23 = vcombine.low %v4947_v38, %v4947_v38  ;;  %v3194_v38 = vld [vmem:[%s5263_s1 + $0x63] ss:$8 sm:$0xf] }
 0x358   :  { %v2439_v21 = vmul.f32 %v2425_v15, %v2409_v55  ;;  %v2405_v6 = vpop.permute.xlu1 %2404 }
 0x359   :  { %v2408_v46 = vsel %vm2406_vm10, %v2401_v57, %v2405_v6  ;;  %v2414_v58 = vsel %vm2406_vm10, %v2405_v6, %v2393_v2  ;;  %v2930_v6 = vrot.slane %v3194_v38, %v3728_v20 }
 0x35a   :  { %v2403_v25 = vpop.permute.xlu0 %2402  ;;  %v2447_v42 = vpack.c.bf16 %v2443_v35, %v2439_v21  ;;  %v2444_v36 = vmul.f32 %v2429_v3, %v2408_v46  ;;  %v2445_v50 = vmul.f32 %v2433_v7, %v2414_v58  ;;  %v5318_v35 = vmov 0  }
 0x35b   :  { %v2407_v4 = vsel %vm2406_vm10, %v2399_v60, %v2403_v25  ;;  %v2413_v49 = vsel %vm2406_vm10, %v2403_v25, %v2391_v27  ;;  %v2926_v25 = vrot.slane %v3194_v38, %v3412_v40 }
 0x35c   :  { %v2440_v41 = vmul.f32 %v2429_v3, %v2407_v4  ;;  %v2441_v62 = vmul.f32 %v2433_v7, %v2413_v49  ;;  %v2457_v45 = vpop.permute.xlu1 %2456  ;;  %2697 = vmatprep.subr.bf16.mxu0 %v2447_v42  ;;  %v3195_v3 = vld [vmem:[%s5263_s1 + $0x64] ss:$8 sm:$0xf]  ;;  %v2934_v42 = vrot.slane %v3194_v38, %v3409_v39 }
 0x35d   :  { %2698 = vmatpush1.bf16.msra.mxu0 %v2446_v44  ;;  %v2965_v11 = vrot.slane %v3195_v3, %v3412_v40  ;;  %v2977_v58 = vrot.slane %v3195_v3, %v3745_v13  ;;  %v2938_v44 = vrot.slane %v3194_v38, %v3745_v13 }
 0x35e   :  { %v2448_v26 = vpack.c.bf16 %v2444_v36, %v2440_v41  ;;  %v2455_v37 = vpop.permute.xlu0 %2454  ;;  %v2449_v12 = vpack.c.bf16 %v2445_v50, %v2441_v62  ;;  %v2969_v41 = vrot.slane %v3195_v3, %v3728_v20  ;;  %v2973_v62 = vrot.slane %v3195_v3, %v3409_v39 }
 0x360   :  { %2779 = vmatprep.subr.bf16.mxu1 %v2449_v12  ;;  %v2461_v61 = vpop.permute.xlu1 %2460 }
 0x361   :  { %2780 = vmatpush1.bf16.msra.mxu1 %v2448_v26  ;;  %v2476_v31 = vsel %vm2470_vm14, %v2457_v45, %v2461_v61 }
 0x362   :  { %v2459_v22 = vpop.permute.xlu0 %2458  ;;  %v2506_v10 = vmul.f32 %v2485_v30, %v2476_v31 }
 0x363   :  { %v2475_v8 = vsel %vm2470_vm14, %v2455_v37, %v2459_v22 }
 0x364   :  { %v2465_v43 = vpop.permute.xlu1 %2464  ;;  %v2502_v9 = vmul.f32 %v2485_v30, %v2475_v8 }
 0x365   :  { %v2474_v14 = vsel %vm2470_vm14, %v2461_v61, %v2465_v43 }
 0x366   :  { %v2463_v32 = vpop.permute.xlu0 %2462  ;;  %v2507_v47 = vmul.f32 %v2489_v52, %v2474_v14  ;;  %v2510_v28 = vpack.c.bf16 %v2506_v10, %v2502_v9 }
 0x367   :  { %v2473_v33 = vsel %vm2470_vm14, %v2459_v22, %v2463_v32 }
 0x368   :  { %v2503_v24 = vmul.f32 %v2489_v52, %v2473_v33  ;;  %v2469_v5 = vpop.permute.xlu1 %2468 }
 0x369   :  { %v2472_v48 = vsel %vm2470_vm14, %v2465_v43, %v2469_v5  ;;  %v2478_v2 = vsel %vm2470_vm14, %v2469_v5, %v2457_v45 }
 0x36a   :  { %v2467_v63 = vpop.permute.xlu0 %2466  ;;  %v2511_v27 = vpack.c.bf16 %v2507_v47, %v2503_v24  ;;  %v2508_v59 = vmul.f32 %v2493_v18, %v2472_v48  ;;  %v2509_v15 = vmul.f32 %v2497_v19, %v2478_v2 }
 0x36b   :  { %v2471_v1 = vsel %vm2470_vm14, %v2463_v32, %v2467_v63  ;;  %v2477_v16 = vsel %vm2470_vm14, %v2467_v63, %v2455_v37 }
 0x36c   :  { %v2504_v57 = vmul.f32 %v2493_v18, %v2471_v1  ;;  %v2505_v51 = vmul.f32 %v2497_v19, %v2477_v16  ;;  %v2911_v17 = vpop.permute.xlu1 %2910  ;;  %2699 = vmatprep.subr.bf16.mxu0 %v2511_v27 }
 0x36d   :  { %2700 = vmatpush1.bf16.msra.mxu0 %v2510_v28 }
 0x36e   :  { %v2512_v56 = vpack.c.bf16 %v2508_v59, %v2504_v57  ;;  %v2909_v60 = vpop.permute.xlu0 %2908  ;;  %v2513_v0 = vpack.c.bf16 %v2509_v15, %v2505_v51 }
 0x36f   :  { %v2918_v49 = vsel %vm351_vm4, %v2909_v60, %v2911_v17 }
 0x370   :  { %2781 = vmatprep.subr.bf16.mxu1 %v2513_v0  ;;  %v2915_v55 = vpop.permute.xlu1 %2914  ;;  %2716 = vmatmul.mubr.bf16.vlgmr.msra.gmra.mrb[16].mxu0 %v3188_v23  ;;  %v2944_v61 = vadd.f32 %v2930_v6, %v2918_v49 }
 0x371   :  { %2782 = vmatpush1.bf16.msra.mxu1 %v2512_v56  ;;  %3064 = vmatprep.mubr.bf16.mxu0 %v5318_v35  ;;  %v2919_v36 = vsel %vm351_vm4, %v2915_v55, %v2909_v60 }
 0x372   :  { %v2913_v21 = vpop.permute.xlu0 %2912  ;;  %v2943_v54 = vadd.f32 %v2926_v25, %v2919_v36 }
 0x373   :  { %v2916_v40 = vsel %vm351_vm4, %v2913_v21, %v2915_v55  ;;  %v2917_v13 = vsel %vm351_vm4, %v2911_v17, %v2913_v21 }
 0x374   :  { %2798 = vmatmul.mubr.bf16.vlgmr.msra.gmra.mrb[16].mxu1 %v3188_v23  ;;  %v2950_v7 = vpop.permute.xlu1 %2949  ;;  %v2945_v20 = vadd.f32 %v2934_v42, %v2917_v13  ;;  %v2946_v8 = vadd.f32 %v2938_v44, %v2916_v40 }
 0x375   :  { %3105 = vmatprep.mubr.bf16.mxu1 %v5318_v35 }
 0x376   :  { %v2948_v46 = vpop.permute.xlu0 %2947 }
 0x377   :  { %v2957_v4 = vsel %vm710_vm9, %v2948_v46, %v2950_v7 }
 0x378   :  { %v2954_v50 = vpop.permute.xlu1 %2953  ;;  %v2982_v26 = vadd.f32 %v2965_v11, %v2957_v4 }
 0x379   :  { %v2958_v45 = vsel %vm710_vm9, %v2954_v50, %v2948_v46 }
 0x37a   :  { %v2985_v37 = vadd.f32 %v2977_v58, %v2958_v45  ;;  %v2952_v12 = vpop.permute.xlu0 %2951  ;;  %v2986_v30 = vmax.f32 %v2943_v54, %v2982_v26 }
 0x37b   :  { %v2955_v22 = vsel %vm710_vm9, %v2952_v12, %v2954_v50  ;;  %v2956_v39 = vsel %vm710_vm9, %v2950_v7, %v2952_v12 }
 0x37c   :  { %v2983_v52 = vadd.f32 %v2969_v41, %v2956_v39  ;;  %v2984_v43 = vadd.f32 %v2973_v62, %v2955_v22  ;;  %v2989_v14 = vmax.f32 %v2946_v8, %v2985_v37 }
 0x37e   :  { %v2987_v31 = vmax.f32 %v2944_v61, %v2983_v52  ;;  %v2988_v32 = vmax.f32 %v2945_v20, %v2984_v43 }
 0x380   :  { %v2994_v9 = vcombine.low %v2986_v30, %v2987_v31  ;;  %v2995_v33 = vcombine.low %v2988_v32, %v2989_v14 }
 0x382   :  { %v2998_v47 = vmax.f32 %v4967_v53, %v2994_v9  ;;  %v2999_v24 = vmax.f32 %v4980_v29, %v2995_v33  ;;  %v3000_v53 = vld [vmem:[%s5268_s8] sm:$0xf] }
 0x384   :  { %v3003_v18 = vcombine.high %v2998_v47, %v2998_v47  ;;  %v3004_v19 = vcombine.high %v2999_v24, %v2999_v24  ;;  %v3009_v5 = vpack.c.bf16 %v2999_v24, %v2999_v24  ;;  %v3007_v10 = vpack.c.bf16 %v2998_v47, %v2998_v47 }
 0x386   :  { %v3008_v34 = vpack.c.bf16 %v3003_v18, %v3003_v18  ;;  %v3010_v48 = vpack.c.bf16 %v3004_v19, %v3004_v19  ;;  %v3027_v2 = vsel %vm114_vm0, %v3009_v5, 0  ;;  %v3021_v63 = vsel %vm114_vm0, %v3007_v10, 0 }
 0x388   :  { %3196 = vmatprep.subr.msk.bf16.mxu0 %vm114_vm0, %v3008_v34  ;;  %3198 = vmatprep.subr.msk.bf16.mxu1 %vm114_vm0, %v3010_v48 }
 0x389   :  { %3074 = vmatpush1.bf16.msra.mxu1 %v3027_v2  ;;  %3033 = vmatpush1.bf16.msra.mxu0 %v3021_v63  ;;  %v3015_v38 = vpop.permute.xlu1 %3014 }
 0x38b   :  { %v2624_v29 = vpop.permute.xlu0 %2623 }
 0x38c   :  { %3197 = vmatmul.mubr.msk.bf16.vlgmr.msra.gmra.mrb[20].mxu0 %vm104_vm1, %v3000_v53  ;;  %3199 = vmatmul.mubr.msk.bf16.vlgmr.msra.gmra.mrb[20].mxu1 %vm104_vm1, %v3000_v53 }
 0x443   :  { %v2717_v27 = vpop.f32.mrb[16].mxu0 }
 0x444   :  { %v3200_v28 = vadd.f32 %v2717_v27, %v2624_v29  ;;  %v2719_v1 = vpop.f32.mrb[17].mxu0 }
 0x445   :  { %v3201_v16 = vadd.f32 %v2719_v1, %v2624_v29  ;;  %v2721_v23 = vpop.f32.mrb[18].mxu0 }
 0x446   :  { %v2806_v59 = vmax.f32 %v3200_v28, 0.0  ;;  %v2722_v15 = vpop.f32.mrb[19].mxu0 }
 0x447   :  { %v2807_v57 = vmax.f32 %v3201_v16, 0.0  ;;  %v2799_v51 = vpop.f32.mrb[16].mxu1 }
 0x448   :  { %3126 = vst [vmem:[%s5262_s10 + $0x40] sm:$0xff] %v2806_v59  ;;  %v3202_v17 = vadd.f32 %v2799_v51, %v2624_v29  ;;  %v2801_v56 = vpop.f32.mrb[17].mxu1 }
 0x449   :  { %3127 = vst [vmem:[%s5262_s10 + $0x48] sm:$0xff] %v2807_v57  ;;  %v3203_v60 = vadd.f32 %v2801_v56, %v2624_v29  ;;  %v2803_v0 = vpop.f32.mrb[18].mxu1 }
 0x44a   :  { %v2808_v55 = vmax.f32 %v3202_v17, 0.0  ;;  %v2804_v35 = vpop.f32.mrb[19].mxu1 }
 0x44b   :  { %v2809_v21 = vmax.f32 %v3203_v60, 0.0 }
 0x44c   :  { %3128 = vst [vmem:[%s5262_s10 + $0x50] sm:$0xff] %v2808_v55 }
 0x44d   :  { %3129 = vst [vmem:[%s5262_s10 + $0x58] sm:$0xff] %v2809_v21 }
 0x45f   :  { %v3066_v3 = vpop.f32.mrb[20].mxu0  ;;  %v3107_v7 = vpop.f32.mrb[20].mxu1 }
 0x460   :  { %v3067_v6 = vadd.f32 %v3066_v3, %v3015_v38  ;;  %v3108_v11 = vadd.f32 %v3107_v7, %v3015_v38  ;;  %v3068_v46 = vpop.f32.mrb[21].mxu0  ;;  %v3109_v58 = vpop.f32.mrb[21].mxu1 }
 0x461   :  { %v3069_v25 = vadd.f32 %v3068_v46, %v3015_v38  ;;  %v3110_v42 = vadd.f32 %v3109_v58, %v3015_v38  ;;  %v3070_v44 = vpop.f32.mrb[22].mxu0  ;;  %v3111_v4 = vpop.f32.mrb[22].mxu1 }
 0x462   :  { %v3114_v49 = vmax.f32 %v3067_v6, 0.0  ;;  %v3116_v36 = vmax.f32 %v3108_v11, 0.0  ;;  %v3071_v50 = vpop.f32.mrb[23].mxu0  ;;  %v3112_v41 = vpop.f32.mrb[23].mxu1 }
 0x463   :  { %v3115_v62 = vmax.f32 %v3069_v25, 0.0  ;;  %v3117_v40 = vmax.f32 %v3110_v42, 0.0 }
 0x464   :  { %3130 = vst [vmem:[%s5262_s10 + $0x60] sm:$0xff] %v3114_v49  ;;  %3132 = vst [vmem:[%s5262_s10 + $0x70] sm:$0xff] %v3116_v36 }
 0x465   :  { %3131 = vst [vmem:[%s5262_s10 + $0x68] sm:$0xff] %v3115_v62  ;;  %3133 = vst [vmem:[%s5262_s10 + $0x78] sm:$0xff] %v3117_v40 }

</bundles_post_ra>
